<compile_context>
chip_gen: v6e
topology: v6e:2x2x1
jax: 0.10.0
libtpu: 0.0.40
codegen_flags: <defaults>
</compile_context>

<pallas_src>
import jax
import jax.numpy as jnp
from jax.experimental import pallas as pl
from jax.experimental.pallas import tpu as pltpu


def make_fused_encoder_kernel(num_heads: int, eps: float = 1e-5):
    """Whole encoder stack: one grid step = (batch block, layer)."""
    H = num_heads

    def kernel(x_ref,
               wqkv_ref, bqkv_ref, wo_ref, bo_ref, ln1g_ref, ln1b_ref,
               w1_ref, b1_ref, w2_ref, b2_ref, ln2g_ref, ln2b_ref,
               o_ref, act_ref):
        Bb, S, D = x_ref.shape
        hd = D // H
        M = Bb * S
        layer = pl.program_id(1)

        # First layer of this batch block: pull the input into the
        # VMEM-resident f32 activation carrier (stays resident across layers).
        @pl.when(layer == 0)
        def _():
            act_ref[...] = x_ref[...].reshape(M, D).astype(jnp.float32)

        x = act_ref[...]                                      # (M, D) f32

        # ---- fused QKV projection: one full-width bf16 MXU matmul ---------
        # (1/sqrt(head_dim) already folded into the Q slice of wqkv/bqkv.)
        qkv = jnp.dot(x.astype(jnp.bfloat16), wqkv_ref[0],
                      preferred_element_type=jnp.float32) + bqkv_ref[0]  # (M, 3D)
        q = qkv[:, :D]
        k = qkv[:, D:2 * D]
        v = qkv[:, 2 * D:]

        # ---- head split: single relayout per tensor ------------------------
        def split_heads(t):                                   # (M, D) -> (Bb*H, S, hd)
            t = t.reshape(Bb, S, H, hd)
            t = jnp.transpose(t, (0, 2, 1, 3))
            return t.reshape(Bb * H, S, hd)

        qh = split_heads(q).astype(jnp.bfloat16)
        kh = split_heads(k).astype(jnp.bfloat16)
        vh = split_heads(v).astype(jnp.bfloat16)

        # ---- scaled dot-product attention, all (batch, head) pairs batched -
        # TODO(synk): for long sequences on v7x (64 MiB VMEM), tile the KV axis
        # with an online softmax instead of materializing (Bb*H, S, S) scores.
        s = jnp.einsum("gqd,gkd->gqk", qh, kh,
                       preferred_element_type=jnp.float32)     # (Bb*H, S, S) f32
        s = s - jnp.max(s, axis=-1, keepdims=True)             # stable softmax
        p = jnp.exp(s)                                         # unnormalized, <= 1
        denom = jnp.sum(p, axis=-1, keepdims=True)             # (Bb*H, S, 1)
        ctx = jnp.einsum("gqk,gkd->gqd", p.astype(jnp.bfloat16), vh,
                         preferred_element_type=jnp.float32)   # (Bb*H, S, hd)
        # normalize AFTER the PV matmul: S/hd fewer VPU multiplies than on p
        ctx = ctx * pl.reciprocal(denom, approx=True)

        # ---- merge heads + single full-width output projection -------------
        ctx = ctx.reshape(Bb, H, S, hd)
        ctx = jnp.transpose(ctx, (0, 2, 1, 3)).reshape(M, D)
        attn = jnp.dot(ctx.astype(jnp.bfloat16), wo_ref[0],
                       preferred_element_type=jnp.float32) + bo_ref[0]   # (M, D)

        # ---- residual + LayerNorm 1 (post-norm, f32, lane-dense) -----------
        y = x + attn
        mu = jnp.mean(y, axis=-1, keepdims=True)
        var = jnp.mean((y - mu) ** 2, axis=-1, keepdims=True)
        y = (y - mu) * jax.lax.rsqrt(var + eps) * ln1g_ref[0] + ln1b_ref[0]

        # ---- feed-forward: linear -> ReLU -> linear (bf16 MXU, f32 accum) --
        h1 = jnp.dot(y.astype(jnp.bfloat16), w1_ref[0],
                     preferred_element_type=jnp.float32) + b1_ref[0]
        h1 = jnp.maximum(h1, 0.0)
        h2 = jnp.dot(h1.astype(jnp.bfloat16), w2_ref[0],
                     preferred_element_type=jnp.float32) + b2_ref[0]

        # ---- residual + LayerNorm 2 -----------------------------------------
        z = y + h2
        mu2 = jnp.mean(z, axis=-1, keepdims=True)
        var2 = jnp.mean((z - mu2) ** 2, axis=-1, keepdims=True)
        z = (z - mu2) * jax.lax.rsqrt(var2 + eps) * ln2g_ref[0] + ln2b_ref[0]

        act_ref[...] = z

        @pl.when(layer == pl.num_programs(1) - 1)
        def _():
            o_ref[...] = z.reshape(Bb, S, D).astype(o_ref.dtype)

    return kernel


_WEIGHT_ORDER = ("wqkv", "bqkv", "wo", "bo", "ln1g", "ln1b",
                 "w1", "b1", "w2", "b2", "ln2g", "ln2b")


def transformer_encoder(x_sbd, layer_params, num_heads, batch_block=None):
    """Equivalent of TransformerEncoder.forward(x); x_sbd: (seq, batch, embed)."""
    S, B, D = x_sbd.shape
    L = len(layer_params)
    assert D % num_heads == 0

    # Batch elements per grid step: aim for >=128 MXU rows (Bb*S) while still
    # dividing the batch.  Keeps the grid's batch axis "parallel" for megacore.
    if batch_block is None:
        target = max(1, -(-128 // S))                 # ceil(128 / S)
        batch_block = B
        for cand in range(min(B, target), 0, -1):
            if B % cand == 0:
                batch_block = cand
                break
    assert B % batch_block == 0
    Bb = batch_block

    x_bsd = jnp.transpose(x_sbd, (1, 0, 2))           # (B, S, D)

    # Stack per-layer weights on a leading layer axis (selected by index_map).
    stacked = jax.tree_util.tree_map(lambda *ws: jnp.stack(ws, axis=0),
                                     *layer_params)
    weights = tuple(stacked[k] for k in _WEIGHT_ORDER)

    def weight_spec(w):
        shape = (1,) + w.shape[1:]
        nd = len(shape)
        return pl.BlockSpec(shape, lambda b, l, _nd=nd: (l,) + (0,) * (_nd - 1))

    in_specs = [pl.BlockSpec((Bb, S, D), lambda b, l: (b, 0, 0))]
    in_specs += [weight_spec(w) for w in weights]

    # Explicit scoped-VMEM budget: double-buffered per-layer weights +
    # activation / attention working set + headroom.
    per_layer_w_bytes = sum((w.size // L) * w.dtype.itemsize for w in weights)
    act_bytes = Bb * S * D * 4
    vmem_limit = int(min(2 * per_layer_w_bytes + 32 * act_bytes + (8 << 20),
                         64 << 20))

    kernel = make_fused_encoder_kernel(num_heads)
    out = pl.pallas_call(
        kernel,
        out_shape=jax.ShapeDtypeStruct((B, S, D), x_bsd.dtype),
        grid=(B // Bb, L),
        in_specs=in_specs,
        out_specs=pl.BlockSpec((Bb, S, D), lambda b, l: (b, 0, 0)),
        scratch_shapes=[pltpu.VMEM((Bb * S, D), jnp.float32)],
        compiler_params=pltpu.CompilerParams(
            dimension_semantics=("parallel", "arbitrary"),
            vmem_limit_bytes=vmem_limit),
    )(x_bsd, *weights)

    return jnp.transpose(out, (1, 0, 2))               # (S, B, D)


def init_layer_params(key, d, f, num_heads):
    """Deterministic synthetic weights matching nn.TransformerEncoderLayer.

    PyTorch stores (out, in) with y = x @ W.T + b; weights here are kept
    pre-transposed as (in, out).  The 1/sqrt(head_dim) attention scale is
    folded into the Q slice of the fused (D, 3D) in-projection before the bf16
    cast.  Matmul weights are bf16 (MXU-native); biases / LN params stay f32.
    """
    hd = d // num_heads
    scale = 1.0 / float(hd) ** 0.5
    ks = jax.random.split(key, 9)
    s = 0.05

    wq = jax.random.normal(ks[0], (d, d), jnp.float32) * s
    wk = jax.random.normal(ks[1], (d, d), jnp.float32) * s
    wv = jax.random.normal(ks[2], (d, d), jnp.float32) * s
    bq = jax.random.normal(ks[3], (d,), jnp.float32) * s
    bk = jax.random.normal(ks[4], (d,), jnp.float32) * s
    bv = jax.random.normal(ks[5], (d,), jnp.float32) * s
    wo = jax.random.normal(ks[6], (d, d), jnp.float32) * s
    w1 = jax.random.normal(ks[7], (d, f), jnp.float32) * s
    w2 = jax.random.normal(ks[8], (f, d), jnp.float32) * s

    wqkv = jnp.concatenate([wq * scale, wk, wv], axis=1)          # (d, 3d)
    bqkv = jnp.concatenate([bq * scale, bk, bv]).reshape(1, 3 * d)

    return dict(
        wqkv=wqkv.astype(jnp.bfloat16),
        bqkv=bqkv,
        wo=wo.astype(jnp.bfloat16),
        bo=jnp.zeros((1, d), jnp.float32),
        ln1g=jnp.ones((1, d), jnp.float32),
        ln1b=jnp.zeros((1, d), jnp.float32),
        w1=w1.astype(jnp.bfloat16),
        b1=jnp.zeros((1, f), jnp.float32),
        w2=w2.astype(jnp.bfloat16),
        b2=jnp.zeros((1, d), jnp.float32),
        ln2g=jnp.ones((1, d), jnp.float32),
        ln2b=jnp.zeros((1, d), jnp.float32),
    )


if __name__ == "__main__":
    # Small config consistent with the module; D and F are multiples of 128
    # so all matmul / store last dims are lane-dense.
    seq, batch = 8, 2
    embed_dim, num_layers, num_heads, ff_dim = 128, 2, 8, 256

    key = jax.random.PRNGKey(0)
    kx, kp = jax.random.split(key)
    x = jax.random.normal(kx, (seq, batch, embed_dim), jnp.float32)  # (S, B, D)

    layer_params = [init_layer_params(jax.random.fold_in(kp, i),
                                      embed_dim, ff_dim, num_heads)
                    for i in range(num_layers)]

    out = transformer_encoder(x, layer_params, num_heads)
    out = jax.block_until_ready(out)
    assert out.shape == (seq, batch, embed_dim)
    assert bool(jnp.all(jnp.isfinite(out)))
    print("KERNEL_OK")
</pallas_src>

<mosaic_0001>
module attributes {stable_mosaic.version = 11 : i64} {
  func.func @kernel(%arg0: i32, %arg1: i32, %arg2: memref<2x8x128xf32, #tpu.memory_space<vmem>>, %arg3: memref<1x128x384xbf16, #tpu.memory_space<vmem>>, %arg4: memref<1x1x384xf32, #tpu.memory_space<vmem>>, %arg5: memref<1x128x128xbf16, #tpu.memory_space<vmem>>, %arg6: memref<1x1x128xf32, #tpu.memory_space<vmem>>, %arg7: memref<1x1x128xf32, #tpu.memory_space<vmem>>, %arg8: memref<1x1x128xf32, #tpu.memory_space<vmem>>, %arg9: memref<1x128x256xbf16, #tpu.memory_space<vmem>>, %arg10: memref<1x1x256xf32, #tpu.memory_space<vmem>>, %arg11: memref<1x256x128xbf16, #tpu.memory_space<vmem>>, %arg12: memref<1x1x128xf32, #tpu.memory_space<vmem>>, %arg13: memref<1x1x128xf32, #tpu.memory_space<vmem>>, %arg14: memref<1x1x128xf32, #tpu.memory_space<vmem>>, %arg15: memref<2x8x128xf32, #tpu.memory_space<vmem>>, %arg16: memref<16x128xf32, #tpu.memory_space<vmem>>) attributes {dimension_semantics = [#tpu.dimension_semantics<parallel>, #tpu.dimension_semantics<arbitrary>], iteration_bounds = array<i64: 1, 2>, scalar_prefetch = 0 : i64, scratch_operands = 1 : i64, tpu.core_type = #tpu.core_type<tc>, window_params = [{transform_indices = @transform_0, window_bounds = array<i64: 2, 8, 128>}, {transform_indices = @transform_1, window_bounds = array<i64: 1, 128, 384>}, {transform_indices = @transform_2, window_bounds = array<i64: 1, 1, 384>}, {transform_indices = @transform_3, window_bounds = array<i64: 1, 128, 128>}, {transform_indices = @transform_4, window_bounds = array<i64: 1, 1, 128>}, {transform_indices = @transform_5, window_bounds = array<i64: 1, 1, 128>}, {transform_indices = @transform_6, window_bounds = array<i64: 1, 1, 128>}, {transform_indices = @transform_7, window_bounds = array<i64: 1, 128, 256>}, {transform_indices = @transform_8, window_bounds = array<i64: 1, 1, 256>}, {transform_indices = @transform_9, window_bounds = array<i64: 1, 256, 128>}, {transform_indices = @transform_10, window_bounds = array<i64: 1, 1, 128>}, {transform_indices = @transform_11, window_bounds = array<i64: 1, 1, 128>}, {transform_indices = @transform_12, window_bounds = array<i64: 1, 1, 128>}, {transform_indices = @transform_13, window_bounds = array<i64: 2, 8, 128>}]} {
    %c0_i32 = arith.constant 0 : i32
    %0 = arith.cmpi eq, %arg1, %c0_i32 : i32
    %1 = arith.extui %0 : i1 to i32
    %c0_i32_0 = arith.constant 0 : i32
    %2 = arith.cmpi ne, %1, %c0_i32_0 : i32
    scf.if %2 {
      %c0_59 = arith.constant 0 : index
      %c0_60 = arith.constant 0 : index
      %c0_61 = arith.constant 0 : index
      %127 = vector.load %arg2[%c0_59, %c0_60, %c0_61] : memref<2x8x128xf32, #tpu.memory_space<vmem>>, vector<2x8x128xf32>
      %128 = vector.shape_cast %127 : vector<2x8x128xf32> to vector<16x128xf32>
      %c0_62 = arith.constant 0 : index
      %c0_63 = arith.constant 0 : index
      %129 = vector.load %arg16[%c0_62, %c0_63] : memref<16x128xf32, #tpu.memory_space<vmem>>, vector<16x128xf32>
      tpu.vector_store %arg16[%c0_62, %c0_63], %128 {strides = array<i32>} : memref<16x128xf32, #tpu.memory_space<vmem>>, vector<16x128xf32>,
    } else {
    }
    %c0 = arith.constant 0 : index
    %c0_1 = arith.constant 0 : index
    %3 = vector.load %arg16[%c0, %c0_1] : memref<16x128xf32, #tpu.memory_space<vmem>>, vector<16x128xf32>
    %4 = arith.truncf %3 : vector<16x128xf32> to vector<16x128xbf16>
    %c0_2 = arith.constant 0 : index
    %c0_3 = arith.constant 0 : index
    %c0_4 = arith.constant 0 : index
    %5 = vector.load %arg3[%c0_2, %c0_3, %c0_4] : memref<1x128x384xbf16, #tpu.memory_space<vmem>>, vector<1x128x384xbf16>
    %6 = vector.shape_cast %5 : vector<1x128x384xbf16> to vector<128x384xbf16>
    %cst = arith.constant dense<0.000000e+00> : vector<16x384xf32>
    %7 = tpu.matmul %4, %6, %cst {dimension_numbers = #tpu.dot_dimension_numbers<[1], [0], [0], [1], [0, 0, 1, 1], [], []>} : vector<16x128xbf16>, vector<128x384xbf16>, vector<16x384xf32> -> vector<16x384xf32>
    %c0_5 = arith.constant 0 : index
    %c0_6 = arith.constant 0 : index
    %c0_7 = arith.constant 0 : index
    %8 = vector.load %arg4[%c0_5, %c0_6, %c0_7] : memref<1x1x384xf32, #tpu.memory_space<vmem>>, vector<1x1x384xf32>
    %9 = vector.shape_cast %8 : vector<1x1x384xf32> to vector<1x384xf32>
    %10 = vector.broadcast %9 : vector<1x384xf32> to vector<16x384xf32>
    %11 = arith.addf %7, %10 : vector<16x384xf32>
    %12 = vector.extract_strided_slice %11 {offsets = [0, 0], sizes = [16, 128], strides = [1, 1]} : vector<16x384xf32> to vector<16x128xf32>
    %13 = vector.extract_strided_slice %11 {offsets = [0, 128], sizes = [16, 128], strides = [1, 1]} : vector<16x384xf32> to vector<16x128xf32>
    %14 = vector.extract_strided_slice %11 {offsets = [0, 256], sizes = [16, 128], strides = [1, 1]} : vector<16x384xf32> to vector<16x128xf32>
    %15 = vector.shape_cast %12 : vector<16x128xf32> to vector<2x8x8x16xf32>
    %16 = tpu.transpose %15, [0, 2, 1, 3] : vector<2x8x8x16xf32> -> vector<2x8x8x16xf32>
    %17 = vector.shape_cast %16 : vector<2x8x8x16xf32> to vector<16x8x16xf32>
    %18 = arith.truncf %17 : vector<16x8x16xf32> to vector<16x8x16xbf16>
    %19 = vector.shape_cast %13 : vector<16x128xf32> to vector<2x8x8x16xf32>
    %20 = tpu.transpose %19, [0, 2, 1, 3] : vector<2x8x8x16xf32> -> vector<2x8x8x16xf32>
    %21 = vector.shape_cast %20 : vector<2x8x8x16xf32> to vector<16x8x16xf32>
    %22 = arith.truncf %21 : vector<16x8x16xf32> to vector<16x8x16xbf16>
    %23 = vector.shape_cast %14 : vector<16x128xf32> to vector<2x8x8x16xf32>
    %24 = tpu.transpose %23, [0, 2, 1, 3] : vector<2x8x8x16xf32> -> vector<2x8x8x16xf32>
    %25 = vector.shape_cast %24 : vector<2x8x8x16xf32> to vector<16x8x16xf32>
    %26 = arith.truncf %25 : vector<16x8x16xf32> to vector<16x8x16xbf16>
    "tpu.trace_start"() <{level = 10 : i32, message = "gqd,gkd->gqk"}> : () -> ()
    %cst_8 = arith.constant dense<0.000000e+00> : vector<16x8x8xf32>
    %27 = tpu.matmul %18, %22, %cst_8 {dimension_numbers = #tpu.dot_dimension_numbers<[2], [2], [1], [1], [0, 0, 0, 1, 1, 1], [0], [0]>} : vector<16x8x16xbf16>, vector<16x8x16xbf16>, vector<16x8x8xf32> -> vector<16x8x8xf32>
    "tpu.trace_stop"() : () -> ()
    %cst_9 = arith.constant dense<0xFF800000> : vector<16x8xf32>
    %28 = vector.multi_reduction <maximumf>, %27, %cst_9 [2] : vector<16x8x8xf32> to vector<16x8xf32>
    %29 = vector.shape_cast %28 : vector<16x8xf32> to vector<16x8x1xf32>
    %30 = vector.broadcast %29 : vector<16x8x1xf32> to vector<16x8x8xf32>
    %31 = arith.subf %27, %30 : vector<16x8x8xf32>
    %32 = math.exp %31 : vector<16x8x8xf32>
    %cst_10 = arith.constant dense<0.000000e+00> : vector<16x8xf32>
    %33 = vector.multi_reduction <add>, %32, %cst_10 [2] : vector<16x8x8xf32> to vector<16x8xf32>
    %34 = vector.shape_cast %33 : vector<16x8xf32> to vector<16x8x1xf32>
    %35 = arith.truncf %32 : vector<16x8x8xf32> to vector<16x8x8xbf16>
    "tpu.trace_start"() <{level = 10 : i32, message = "gqk,gkd->gqd"}> : () -> ()
    %cst_11 = arith.constant dense<0.000000e+00> : vector<16x8x16xf32>
    %36 = tpu.matmul %35, %26, %cst_11 {dimension_numbers = #tpu.dot_dimension_numbers<[2], [1], [1], [2], [0, 0, 0, 1, 1, 2], [0], [0]>} : vector<16x8x8xbf16>, vector<16x8x16xbf16>, vector<16x8x16xf32> -> vector<16x8x16xf32>
    "tpu.trace_stop"() : () -> ()
    %37 = tpu.reciprocal %34 {approx = true} : vector<16x8x1xf32> -> vector<16x8x1xf32>
    %38 = vector.broadcast %37 : vector<16x8x1xf32> to vector<16x8x16xf32>
    %39 = arith.mulf %36, %38 : vector<16x8x16xf32>
    %40 = vector.shape_cast %39 : vector<16x8x16xf32> to vector<2x8x8x16xf32>
    %41 = tpu.transpose %40, [0, 2, 1, 3] : vector<2x8x8x16xf32> -> vector<2x8x8x16xf32>
    %42 = vector.shape_cast %41 : vector<2x8x8x16xf32> to vector<16x128xf32>
    %43 = arith.truncf %42 : vector<16x128xf32> to vector<16x128xbf16>
    %c0_12 = arith.constant 0 : index
    %c0_13 = arith.constant 0 : index
    %c0_14 = arith.constant 0 : index
    %44 = vector.load %arg5[%c0_12, %c0_13, %c0_14] : memref<1x128x128xbf16, #tpu.memory_space<vmem>>, vector<1x128x128xbf16>
    %45 = vector.shape_cast %44 : vector<1x128x128xbf16> to vector<128x128xbf16>
    %cst_15 = arith.constant dense<0.000000e+00> : vector<16x128xf32>
    %46 = tpu.matmul %43, %45, %cst_15 {dimension_numbers = #tpu.dot_dimension_numbers<[1], [0], [0], [1], [0, 0, 1, 1], [], []>} : vector<16x128xbf16>, vector<128x128xbf16>, vector<16x128xf32> -> vector<16x128xf32>
    %c0_16 = arith.constant 0 : index
    %c0_17 = arith.constant 0 : index
    %c0_18 = arith.constant 0 : index
    %47 = vector.load %arg6[%c0_16, %c0_17, %c0_18] : memref<1x1x128xf32, #tpu.memory_space<vmem>>, vector<1x1x128xf32>
    %48 = vector.shape_cast %47 : vector<1x1x128xf32> to vector<1x128xf32>
    %49 = vector.broadcast %48 : vector<1x128xf32> to vector<16x128xf32>
    %50 = arith.addf %46, %49 : vector<16x128xf32>
    %51 = arith.addf %3, %50 : vector<16x128xf32>
    %cst_19 = arith.constant dense<0.000000e+00> : vector<16xf32>
    %52 = vector.multi_reduction <add>, %51, %cst_19 [1] : vector<16x128xf32> to vector<16xf32>
    %53 = vector.shape_cast %52 : vector<16xf32> to vector<16x1xf32>
    %cst_20 = arith.constant 1.280000e+02 : f32
    %54 = vector.broadcast %cst_20 : f32 to vector<16x1xf32>
    %55 = arith.divf %53, %54 : vector<16x1xf32>
    %56 = vector.broadcast %55 : vector<16x1xf32> to vector<16x128xf32>
    %57 = arith.subf %51, %56 : vector<16x128xf32>
    %58 = arith.mulf %57, %57 : vector<16x128xf32>
    %cst_21 = arith.constant dense<0.000000e+00> : vector<16xf32>
    %59 = vector.multi_reduction <add>, %58, %cst_21 [1] : vector<16x128xf32> to vector<16xf32>
    %60 = vector.shape_cast %59 : vector<16xf32> to vector<16x1xf32>
    %cst_22 = arith.constant 1.280000e+02 : f32
    %61 = vector.broadcast %cst_22 : f32 to vector<16x1xf32>
    %62 = arith.divf %60, %61 : vector<16x1xf32>
    %63 = vector.broadcast %55 : vector<16x1xf32> to vector<16x128xf32>
    %64 = arith.subf %51, %63 : vector<16x128xf32>
    %cst_23 = arith.constant 9.99999974E-6 : f32
    %65 = vector.broadcast %cst_23 : f32 to vector<16x1xf32>
    %66 = arith.addf %62, %65 : vector<16x1xf32>
    %67 = math.rsqrt %66 : vector<16x1xf32>
    %68 = vector.broadcast %67 : vector<16x1xf32> to vector<16x128xf32>
    %69 = arith.mulf %64, %68 : vector<16x128xf32>
    %c0_24 = arith.constant 0 : index
    %c0_25 = arith.constant 0 : index
    %c0_26 = arith.constant 0 : index
    %70 = vector.load %arg7[%c0_24, %c0_25, %c0_26] : memref<1x1x128xf32, #tpu.memory_space<vmem>>, vector<1x1x128xf32>
    %71 = vector.shape_cast %70 : vector<1x1x128xf32> to vector<1x128xf32>
    %72 = vector.broadcast %71 : vector<1x128xf32> to vector<16x128xf32>
    %73 = arith.mulf %69, %72 : vector<16x128xf32>
    %c0_27 = arith.constant 0 : index
    %c0_28 = arith.constant 0 : index
    %c0_29 = arith.constant 0 : index
    %74 = vector.load %arg8[%c0_27, %c0_28, %c0_29] : memref<1x1x128xf32, #tpu.memory_space<vmem>>, vector<1x1x128xf32>
    %75 = vector.shape_cast %74 : vector<1x1x128xf32> to vector<1x128xf32>
    %76 = vector.broadcast %75 : vector<1x128xf32> to vector<16x128xf32>
    %77 = arith.addf %73, %76 : vector<16x128xf32>
    %78 = arith.truncf %77 : vector<16x128xf32> to vector<16x128xbf16>
    %c0_30 = arith.constant 0 : index
    %c0_31 = arith.constant 0 : index
    %c0_32 = arith.constant 0 : index
    %79 = vector.load %arg9[%c0_30, %c0_31, %c0_32] : memref<1x128x256xbf16, #tpu.memory_space<vmem>>, vector<1x128x256xbf16>
    %80 = vector.shape_cast %79 : vector<1x128x256xbf16> to vector<128x256xbf16>
    %cst_33 = arith.constant dense<0.000000e+00> : vector<16x256xf32>
    %81 = tpu.matmul %78, %80, %cst_33 {dimension_numbers = #tpu.dot_dimension_numbers<[1], [0], [0], [1], [0, 0, 1, 1], [], []>} : vector<16x128xbf16>, vector<128x256xbf16>, vector<16x256xf32> -> vector<16x256xf32>
    %c0_34 = arith.constant 0 : index
    %c0_35 = arith.constant 0 : index
    %c0_36 = arith.constant 0 : index
    %82 = vector.load %arg10[%c0_34, %c0_35, %c0_36] : memref<1x1x256xf32, #tpu.memory_space<vmem>>, vector<1x1x256xf32>
    %83 = vector.shape_cast %82 : vector<1x1x256xf32> to vector<1x256xf32>
    %84 = vector.broadcast %83 : vector<1x256xf32> to vector<16x256xf32>
    %85 = arith.addf %81, %84 : vector<16x256xf32>
    %cst_37 = arith.constant 0.000000e+00 : f32
    %86 = vector.broadcast %cst_37 : f32 to vector<16x256xf32>
    %87 = arith.maximumf %85, %86 : vector<16x256xf32>
    %88 = arith.truncf %87 : vector<16x256xf32> to vector<16x256xbf16>
    %c0_38 = arith.constant 0 : index
    %c0_39 = arith.constant 0 : index
    %c0_40 = arith.constant 0 : index
    %89 = vector.load %arg11[%c0_38, %c0_39, %c0_40] : memref<1x256x128xbf16, #tpu.memory_space<vmem>>, vector<1x256x128xbf16>
    %90 = vector.shape_cast %89 : vector<1x256x128xbf16> to vector<256x128xbf16>
    %cst_41 = arith.constant dense<0.000000e+00> : vector<16x128xf32>
    %91 = tpu.matmul %88, %90, %cst_41 {dimension_numbers = #tpu.dot_dimension_numbers<[1], [0], [0], [1], [0, 0, 1, 1], [], []>} : vector<16x256xbf16>, vector<256x128xbf16>, vector<16x128xf32> -> vector<16x128xf32>
    %c0_42 = arith.constant 0 : index
    %c0_43 = arith.constant 0 : index
    %c0_44 = arith.constant 0 : index
    %92 = vector.load %arg12[%c0_42, %c0_43, %c0_44] : memref<1x1x128xf32, #tpu.memory_space<vmem>>, vector<1x1x128xf32>
    %93 = vector.shape_cast %92 : vector<1x1x128xf32> to vector<1x128xf32>
    %94 = vector.broadcast %93 : vector<1x128xf32> to vector<16x128xf32>
    %95 = arith.addf %91, %94 : vector<16x128xf32>
    %96 = arith.addf %77, %95 : vector<16x128xf32>
    %cst_45 = arith.constant dense<0.000000e+00> : vector<16xf32>
    %97 = vector.multi_reduction <add>, %96, %cst_45 [1] : vector<16x128xf32> to vector<16xf32>
    %98 = vector.shape_cast %97 : vector<16xf32> to vector<16x1xf32>
    %cst_46 = arith.constant 1.280000e+02 : f32
    %99 = vector.broadcast %cst_46 : f32 to vector<16x1xf32>
    %100 = arith.divf %98, %99 : vector<16x1xf32>
    %101 = vector.broadcast %100 : vector<16x1xf32> to vector<16x128xf32>
    %102 = arith.subf %96, %101 : vector<16x128xf32>
    %103 = arith.mulf %102, %102 : vector<16x128xf32>
    %cst_47 = arith.constant dense<0.000000e+00> : vector<16xf32>
    %104 = vector.multi_reduction <add>, %103, %cst_47 [1] : vector<16x128xf32> to vector<16xf32>
    %105 = vector.shape_cast %104 : vector<16xf32> to vector<16x1xf32>
    %cst_48 = arith.constant 1.280000e+02 : f32
    %106 = vector.broadcast %cst_48 : f32 to vector<16x1xf32>
    %107 = arith.divf %105, %106 : vector<16x1xf32>
    %108 = vector.broadcast %100 : vector<16x1xf32> to vector<16x128xf32>
    %109 = arith.subf %96, %108 : vector<16x128xf32>
    %cst_49 = arith.constant 9.99999974E-6 : f32
    %110 = vector.broadcast %cst_49 : f32 to vector<16x1xf32>
    %111 = arith.addf %107, %110 : vector<16x1xf32>
    %112 = math.rsqrt %111 : vector<16x1xf32>
    %113 = vector.broadcast %112 : vector<16x1xf32> to vector<16x128xf32>
    %114 = arith.mulf %109, %113 : vector<16x128xf32>
    %c0_50 = arith.constant 0 : index
    %c0_51 = arith.constant 0 : index
    %c0_52 = arith.constant 0 : index
    %115 = vector.load %arg13[%c0_50, %c0_51, %c0_52] : memref<1x1x128xf32, #tpu.memory_space<vmem>>, vector<1x1x128xf32>
    %116 = vector.shape_cast %115 : vector<1x1x128xf32> to vector<1x128xf32>
    %117 = vector.broadcast %116 : vector<1x128xf32> to vector<16x128xf32>
    %118 = arith.mulf %114, %117 : vector<16x128xf32>
    %c0_53 = arith.constant 0 : index
    %c0_54 = arith.constant 0 : index
    %c0_55 = arith.constant 0 : index
    %119 = vector.load %arg14[%c0_53, %c0_54, %c0_55] : memref<1x1x128xf32, #tpu.memory_space<vmem>>, vector<1x1x128xf32>
    %120 = vector.shape_cast %119 : vector<1x1x128xf32> to vector<1x128xf32>
    %121 = vector.broadcast %120 : vector<1x128xf32> to vector<16x128xf32>
    %122 = arith.addf %118, %121 : vector<16x128xf32>
    %c0_56 = arith.constant 0 : index
    %c0_57 = arith.constant 0 : index
    %123 = vector.load %arg16[%c0_56, %c0_57] : memref<16x128xf32, #tpu.memory_space<vmem>>, vector<16x128xf32>
    tpu.vector_store %arg16[%c0_56, %c0_57], %122 {strides = array<i32>} : memref<16x128xf32, #tpu.memory_space<vmem>>, vector<16x128xf32>,
    %c1_i32 = arith.constant 1 : i32
    %124 = arith.cmpi eq, %arg1, %c1_i32 : i32
    %125 = arith.extui %124 : i1 to i32
    %c0_i32_58 = arith.constant 0 : i32
    %126 = arith.cmpi ne, %125, %c0_i32_58 : i32
    scf.if %126 {
      %127 = vector.shape_cast %122 : vector<16x128xf32> to vector<2x8x128xf32>
      %c0_59 = arith.constant 0 : index
      %c0_60 = arith.constant 0 : index
      %c0_61 = arith.constant 0 : index
      %128 = vector.load %arg15[%c0_59, %c0_60, %c0_61] : memref<2x8x128xf32, #tpu.memory_space<vmem>>, vector<2x8x128xf32>
      tpu.vector_store %arg15[%c0_59, %c0_60, %c0_61], %127 {strides = array<i32>} : memref<2x8x128xf32, #tpu.memory_space<vmem>>, vector<2x8x128xf32>,
    } else {
    }
    return
  }
  func.func @transform_0(%arg0: i32, %arg1: i32) -> (i32, i32, i32) {
    %c0_i32 = arith.constant 0 : i32
    %c0_i32_0 = arith.constant 0 : i32
    %c0_i32_1 = arith.constant 0 : i32
    return %arg0, %c0_i32, %c0_i32_0 : i32, i32, i32
  }
  func.func @transform_1(%arg0: i32, %arg1: i32) -> (i32, i32, i32) {
    %c0_i32 = arith.constant 0 : i32
    %c0_i32_0 = arith.constant 0 : i32
    %c0_i32_1 = arith.constant 0 : i32
    return %arg1, %c0_i32, %c0_i32_0 : i32, i32, i32
  }
  func.func @transform_2(%arg0: i32, %arg1: i32) -> (i32, i32, i32) {
    %c0_i32 = arith.constant 0 : i32
    %c0_i32_0 = arith.constant 0 : i32
    %c0_i32_1 = arith.constant 0 : i32
    return %arg1, %c0_i32, %c0_i32_0 : i32, i32, i32
  }
  func.func @transform_3(%arg0: i32, %arg1: i32) -> (i32, i32, i32) {
    %c0_i32 = arith.constant 0 : i32
    %c0_i32_0 = arith.constant 0 : i32
    %c0_i32_1 = arith.constant 0 : i32
    return %arg1, %c0_i32, %c0_i32_0 : i32, i32, i32
  }
  func.func @transform_4(%arg0: i32, %arg1: i32) -> (i32, i32, i32) {
    %c0_i32 = arith.constant 0 : i32
    %c0_i32_0 = arith.constant 0 : i32
    %c0_i32_1 = arith.constant 0 : i32
    return %arg1, %c0_i32, %c0_i32_0 : i32, i32, i32
  }
  func.func @transform_5(%arg0: i32, %arg1: i32) -> (i32, i32, i32) {
    %c0_i32 = arith.constant 0 : i32
    %c0_i32_0 = arith.constant 0 : i32
    %c0_i32_1 = arith.constant 0 : i32
    return %arg1, %c0_i32, %c0_i32_0 : i32, i32, i32
  }
  func.func @transform_6(%arg0: i32, %arg1: i32) -> (i32, i32, i32) {
    %c0_i32 = arith.constant 0 : i32
    %c0_i32_0 = arith.constant 0 : i32
    %c0_i32_1 = arith.constant 0 : i32
    return %arg1, %c0_i32, %c0_i32_0 : i32, i32, i32
  }
  func.func @transform_7(%arg0: i32, %arg1: i32) -> (i32, i32, i32) {
    %c0_i32 = arith.constant 0 : i32
    %c0_i32_0 = arith.constant 0 : i32
    %c0_i32_1 = arith.constant 0 : i32
    return %arg1, %c0_i32, %c0_i32_0 : i32, i32, i32
  }
  func.func @transform_8(%arg0: i32, %arg1: i32) -> (i32, i32, i32) {
    %c0_i32 = arith.constant 0 : i32
    %c0_i32_0 = arith.constant 0 : i32
    %c0_i32_1 = arith.constant 0 : i32
    return %arg1, %c0_i32, %c0_i32_0 : i32, i32, i32
  }
  func.func @transform_9(%arg0: i32, %arg1: i32) -> (i32, i32, i32) {
    %c0_i32 = arith.constant 0 : i32
    %c0_i32_0 = arith.constant 0 : i32
    %c0_i32_1 = arith.constant 0 : i32
    return %arg1, %c0_i32, %c0_i32_0 : i32, i32, i32
  }
  func.func @transform_10(%arg0: i32, %arg1: i32) -> (i32, i32, i32) {
    %c0_i32 = arith.constant 0 : i32
    %c0_i32_0 = arith.constant 0 : i32
    %c0_i32_1 = arith.constant 0 : i32
    return %arg1, %c0_i32, %c0_i32_0 : i32, i32, i32
  }
  func.func @transform_11(%arg0: i32, %arg1: i32) -> (i32, i32, i32) {
    %c0_i32 = arith.constant 0 : i32
    %c0_i32_0 = arith.constant 0 : i32
    %c0_i32_1 = arith.constant 0 : i32
    return %arg1, %c0_i32, %c0_i32_0 : i32, i32, i32
  }
  func.func @transform_12(%arg0: i32, %arg1: i32) -> (i32, i32, i32) {
    %c0_i32 = arith.constant 0 : i32
    %c0_i32_0 = arith.constant 0 : i32
    %c0_i32_1 = arith.constant 0 : i32
    return %arg1, %c0_i32, %c0_i32_0 : i32, i32, i32
  }
  func.func @transform_13(%arg0: i32, %arg1: i32) -> (i32, i32, i32) {
    %c0_i32 = arith.constant 0 : i32
    %c0_i32_0 = arith.constant 0 : i32
    %c0_i32_1 = arith.constant 0 : i32
    return %arg0, %c0_i32, %c0_i32_0 : i32, i32, i32
  }
}

</mosaic_0001>

<bundles_post_ra>
// kernel: tpu_custom_call.1
= control target key start
LH: loop header
LB: loop body
LE: loop exit
PB: predicated region body
PF: predicated region fallthrough
CT: control target
= control target key end

     0   :  { %s8535_s0 = inlined_call_operand.hbm [shape: f32[2,8,128], index: 0, kind: input, shape index: {}]   ;;  %s8536_s1 = inlined_call_operand.hbm [shape: bf16[2,128,384], index: 1, kind: input, shape index: {}]   ;;  %s8537_s2 = inlined_call_operand.hbm [shape: f32[2,1,384], index: 2, kind: input, shape index: {}]   ;;  %s8538_s3 = inlined_call_operand.hbm [shape: bf16[2,128,128], index: 3, kind: input, shape index: {}]   ;;  %s8539_s4 = inlined_call_operand.vmem [shape: f32[2,1,128], index: 4, kind: input, shape index: {}]   ;;  %s8540_s5 = inlined_call_operand.vmem [shape: f32[2,1,128], index: 5, kind: input, shape index: {}]   ;;  %s8541_s6 = inlined_call_operand.vmem [shape: f32[2,1,128], index: 6, kind: input, shape index: {}]   ;;  %s8542_s7 = inlined_call_operand.hbm [shape: bf16[2,128,256], index: 7, kind: input, shape index: {}]   ;;  %s8543_s8 = inlined_call_operand.vmem [shape: f32[2,1,256], index: 8, kind: input, shape index: {}]   ;;  %s8544_s9 = inlined_call_operand.hbm [shape: bf16[2,256,128], index: 9, kind: input, shape index: {}]   ;;  %s8545_s10 = inlined_call_operand.vmem [shape: f32[2,1,128], index: 10, kind: input, shape index: {}]   ;;  %s8546_s11 = inlined_call_operand.vmem [shape: f32[2,1,128], index: 11, kind: input, shape index: {}]   ;;  %s8547_s12 = inlined_call_operand.vmem [shape: f32[2,1,128], index: 12, kind: input, shape index: {}]   ;;  %s8548_s13 = inlined_call_operand.hbm [shape: f32[2,8,128], index: 13, kind: output, shape index: {}]  }
   0x1   :  { %8556 = sst [smem:[#allocation25_spill]] %s8535_s0 }
   0x2   :  { %8557 = sst [smem:[#allocation26_spill]] %s8536_s1 }
   0x3   :  { %8558 = sst [smem:[#allocation27_spill]] %s8537_s2 }
   0x4   :  { %8559 = sst [smem:[#allocation28_spill]] %s8538_s3 }
   0x5   :  { %8560 = sst [smem:[#allocation29_spill]] %s8540_s5 }
   0x6   :  { %8561 = sst [smem:[#allocation30_spill]] %s8541_s6 }
   0x7   :  { %8562 = sst [smem:[#allocation31_spill]] %s8542_s7 }
   0x8   :  { %8563 = sst [smem:[#allocation32_spill]] %s8543_s8 }
   0x9   :  { %8564 = sst [smem:[#allocation33_spill]] %s8544_s9 }
   0xa   :  { %8565 = sst [smem:[#allocation34_spill]] %s8545_s10 }
   0xb   :  { %8566 = sst [smem:[#allocation35_spill]] %s8546_s11 }
   0xc   :  { %8567 = sst [smem:[#allocation36_spill]] %s8547_s12 }
   0xd   :  { %8568 = sst [smem:[#allocation37_spill]] %s8548_s13 }
   0xe   :  { %18 = vsyncpa [#allocation4], 0 }
   0xf   :  { %19 = vsyncpa [#allocation7], 0 }
  0x10   :  { %21 = vsyncpa [#allocation7 + $0x1], 0 }
  0x11   :  { %22 = vsyncpa [#allocation10], 0 }
  0x12   :  { %24 = vsyncpa [#allocation10 + $0x1], 0 }
  0x13   :  { %25 = vsyncpa [#allocation13], 0 }
  0x14   :  { %27 = vsyncpa [#allocation13 + $0x1], 0 }
  0x15   :  { %28 = vsyncpa [#allocation5], 0  ;;  %s7088_s25 = smov 0   ;;  %s7090_s26 = smov 0  }
  0x16   :  { %s7092_s27 = smov 0   ;;  %s7094_s28 = smov 0  }
  0x17   :  { %s7096_s29 = smov 0   ;;  %s7098_s30 = smov 0  }
  0x18 LB: > { %8569 = sst [smem:[#allocation20_spill]] %s6977_s27  ;;  %s43_s14 = sadd.s32 1, %s6985_s29  ;;  %s6989_s30 = sphi %s7098_s30, %s34_s30   ;;  %s6985_s29 = sphi %s7096_s29, %s8608_s29   ;;  %s6981_s28 = sphi %s7094_s28, %s8607_s28   ;;  %s6977_s27 = sphi %s7092_s27, %s8606_s27   ;;  %s6973_s26 = sphi %s7090_s26, %s8610_s26   ;;  %s6969_s25 = sphi %s7088_s25, %s8609_s25  }
  0x19   : > { %8570 = sst [smem:[#allocation21_spill]] %s6985_s29  ;;  %s79_s15 = sadd.s32 1, %s6977_s27 }
  0x1a   : > { %8571 = sst [smem:[#allocation22_spill]] %s6989_s30  ;;  %p44_p0 = scmp.ge.s32.totalorder %s43_s14, 2 }
  0x1b   : > { %p86_p1 = scmp.ne.s32.totalorder %s6977_s27, %s6973_s26  ;;  %p87_p2 = scmp.eq.s32.totalorder %s6989_s30, 0 }
  0x1c   : > { %s8612_s14 = smov (%p44_p0, %s43_s14), 0  ;;  %p6470_p4 = scmp.lt.s32.totalorder %s6989_s30, 2 }
  0x1d   : > { %8572 = sst [smem:[#allocation23_spill]] %s8612_s14  ;;  %p88_p3 = por %p87_p2, %p86_p1 }
  0x1e   : > { %s76_s16 = ssub.s32 %s6985_s29, %s8612_s14  ;;  %s8550_s17 = sand.u32 1, %s6989_s30  }
  0x1f   : > { %p77_p5 = scmp.eq.s32.totalorder %s76_s16, 0  ;;  %s7130_s18 = sand.u32 1, %s6977_s27  }
  0x20   : > { %s6426_s19 = smul.u32 3072, %s6985_s29  ;;  %s8574_s1 = sld [smem:[#allocation26_spill]] }
  0x21   : > { %s7134_s20 = scalar_select %p77_p5, %s6977_s27, %s79_s15  }
  0x22   : > { %s6425_s21 = smul.u32 192, %s7130_s18  ;;  %p7140_p6 = pnand %p6470_p4, %p88_p3 }
  0x23   : > { %8573 = sst [smem:[#allocation24_spill]] %s7134_s20  ;;  %s7146_s16 = scalar_lea.sflag [#allocation7], %s8550_s17 }
  0x24   : > { %s448_s12 = scalar_lea.vmem [#allocation6], %s6425_s21  ;;  %p7150_p7 = pneg %p7140_p6 }
  0x25   : > { %s455_s14 = sshll.u32 %s448_s12, 4  ;;  %s456_s14 = int_to_ptr.vmem [resolvable:$true] %s455_s14 }
  0x26   : > { %s454_s24 = scalar_lea.hbm %s8574_s1, %s6426_s19  ;;  %s6746_s20 = scalar_lea.vmem %s456_s14, 3072 }
  0x27   : > { %p6747_p8 = scmp.ne.s32.totalorder %s456_s14, %s6746_s20  ;;  %s6991_s19 = smov [#allocation6]  }
  0x28   : > { %s6751_s22 = sshll.u32 %s6991_s19, 4  ;;  %s6752_s22 = int_to_ptr.vmem [resolvable:$false] %s6751_s22 }
  0x29   : > { %p6749_p9 = pnand %p6747_p8, %p7150_p7  ;;  %s6753_s21 = scalar_lea.vmem %s6752_s22, 6144 }
  0x2a   : > { %p6754_p11 = scmp.lt.s32.totalorder %s456_s14, %s6752_s22  ;;  %p6755_p12 = scmp.lt.s32.totalorder %s6753_s21, %s6746_s20 }
  0x2b   : > { %p6750_p10 = pneg %p6749_p9 }
  0x2c   : > { %p6756_p13 = por %p6755_p12, %p6754_p11 }
  0x2e   : > { %p6757_p0 = pnand %p6756_p13, %p6750_p10 }
  0x30   : > { %6760 = shalt.err (!%p6757_p0)
}
  0x31   : > { %s6992_s12 = smov 192   ;;  %s6993_s23 = smov 12  }
  0x32   : > { %6456 = dma.hbm_to_vmem [thread:$0]  (!%p7140_p6), %s454_s24, 3072, %s456_s14, %s7146_s16, %s6992_s12, %s6992_s12, %s6993_s23  }
  0x33   : > { %s5899_s17 = sshll.u32 %s7130_s18, 6  ;;  %s6086_s1 = sshll.u32 %s6985_s29, 10 }
  0x34   : > { %s8577_s3 = sld [smem:[#allocation28_spill]]  ;;  %s488_s20 = scalar_lea.vmem [#allocation9], %s5899_s17 }
  0x35   : > { %s495_s21 = sshll.u32 %s488_s20, 4  ;;  %s8578_s11 = sand.u32 1, %s6989_s30   ;;  %s496_s21 = int_to_ptr.vmem [resolvable:$true] %s495_s21 }
  0x36   : > { %s7166_s10 = scalar_lea.sflag [#allocation10], %s8578_s11  ;;  %s6774_s8 = scalar_lea.vmem %s496_s21, 1024 }
  0x37   : > { %p6775_p1 = scmp.ne.s32.totalorder %s496_s21, %s6774_s8  ;;  %s6994_s6 = smov [#allocation9]  }
  0x38   : > { %s6779_s5 = sshll.u32 %s6994_s6, 4  ;;  %s6780_s5 = int_to_ptr.vmem [resolvable:$false] %s6779_s5 }
  0x39   : > { %p6777_p2 = pnand %p6775_p1, %p7150_p7  ;;  %s6781_s14 = scalar_lea.vmem %s6780_s5, 2048 }
  0x3a   : > { %s494_s22 = scalar_lea.hbm %s8577_s3, %s6086_s1  ;;  %p6782_p4 = scmp.lt.s32.totalorder %s496_s21, %s6780_s5 }
  0x3b   : > { %p6778_p3 = pneg %p6777_p2  ;;  %p6783_p5 = scmp.lt.s32.totalorder %s6781_s14, %s6774_s8 }
  0x3d   : > { %p6784_p8 = por %p6783_p5, %p6782_p4 }
  0x3f   : > { %p6785_p9 = pnand %p6784_p8, %p6778_p3 }
  0x41   : > { %6788 = shalt.err (!%p6785_p9)
}
  0x42   : > { %s8552_s1 = smov 64   ;;  %s8553_s11 = smov 4  }
  0x43   : > { %6462 = dma.hbm_to_vmem [thread:$0]  (!%p7140_p6), %s494_s22, 1024, %s496_s21, %s7166_s10, %s8552_s1, %s8552_s1, %s8553_s11  }
  0x44   : > { %s7177_s5 = sadd.s32 4294967295, %s6989_s30   ;;  %p92_p10 = scmp.ne.s32.totalorder %s6973_s26, %s6969_s25 }
  0x45   : > { %p93_p11 = scmp.eq.s32.totalorder %s7177_s5, 0  ;;  %p5894_p12 = scmp.ge.s32.totalorder %s6989_s30, 1 }
  0x46   : > { %p415_p13 = scmp.lt.s32.totalorder %s6989_s30, 3  ;;  %s6997_s27 = smov [#allocation3]  }
  0x47   : > { %p7186_p0 = por %p93_p11, %p92_p10  ;;  %s430_s17 = sshll.u32 %s6997_s27, 4  ;;  %s431_s17 = int_to_ptr.vmem [resolvable:$true] %s430_s17 }
  0x48   : > { %p7190_p1 = pnand %p5894_p12, %p415_p13  ;;  %s6427_s24 = smul.u32 3, %s7130_s18 }
  0x49   : > { %s6428_s23 = smul.u32 48, %s6985_s29  ;;  %s8582_s2 = sld [smem:[#allocation27_spill]] }
  0x4a   : > { %p6449_p2 = pneg %p7190_p1  ;;  %s6800_s21 = scalar_lea.vmem %s431_s17, 256 }
  0x4b   : > { %p6801_p5 = scmp.ne.s32.totalorder %s431_s17, %s6800_s21  ;;  %p6808_p10 = scmp.lt.s32.totalorder %s431_s17, %s431_s17 }
  0x4c   : > { %p7200_p3 = pnand %p6449_p2, %p93_p11  ;;  %p6809_p12 = scmp.lt.s32.totalorder %s6800_s21, %s6800_s21 }
  0x4e   : > { %p6791_p4 = pneg %p7200_p3  ;;  %p6810_p13 = por %p6809_p12, %p6808_p10 }
  0x4f   : > { %s7208_s20 = scalar_lea.hbm %s8582_s2, %s6428_s23 }
  0x50   : > { %p6803_p8 = pnand %p6801_p5, %p6791_p4 }
  0x52   : > { %p6804_p9 = pneg %p6803_p8 }
  0x54   : > { %p6811_p2 = pnand %p6810_p13, %p6804_p9 }
  0x56   : > { %6814 = shalt.err (!%p6811_p2)
}
  0x57   : > { %s6998_s14 = smov 128   ;;  %s6999_s27 = smov 8  }
  0x58   : > { %s8583_s0 = sld [smem:[#allocation25_spill]]  ;;  %s469_s22 = scalar_lea.vmem [#allocation8], %s6427_s24 }
  0x59   : > { %s477_s1 = sshll.u32 %s469_s22, 4  ;;  %s6087_s21 = sshll.u32 %s6985_s29, 11  ;;  %s478_s1 = int_to_ptr.vmem [resolvable:$true] %s477_s1 }
  0x5a   : > { %s8584_s7 = sld [smem:[#allocation31_spill]]  ;;  %s6828_s3 = scalar_lea.vmem %s478_s1, 48 }
  0x5b   : > { %p6829_p4 = scmp.ne.s32.totalorder %s478_s1, %s6828_s3  ;;  %s7000_s12 = smov [#allocation8]  }
  0x5c   : > { %s6833_s30 = sshll.u32 %s7000_s12, 4  ;;  %s6834_s30 = int_to_ptr.vmem [resolvable:$false] %s6833_s30 }
  0x5d   : > { %p6831_p5 = pnand %p6829_p4, %p7150_p7  ;;  %s6835_s23 = scalar_lea.vmem %s6834_s30, 96 }
  0x5e   : > { %6452 = dma.hbm_to_vmem [thread:$0]  (!%p7200_p3), %s8583_s0, 256, %s431_s17, [#allocation4], %s6998_s14, %s6998_s14, %s6999_s27  }
  0x5f   : > { %p6832_p8 = pneg %p6831_p5  ;;  %p6836_p3 = scmp.lt.s32.totalorder %s478_s1, %s6834_s30 }
  0x60   : > { %s7226_s2 = scalar_lea.hbm %s8584_s7, %s6087_s21  ;;  %p6837_p9 = scmp.lt.s32.totalorder %s6835_s23, %s6828_s3 }
  0x62   : > { %p6838_p10 = por %p6837_p9, %p6836_p3 }
  0x64   : > { %p6839_p12 = pnand %p6838_p10, %p6832_p8 }
  0x66   : > { %6842 = shalt.err (!%p6839_p12)
}
  0x67   : > { %6459 = dma.hbm_to_vmem [thread:$0]  (!%p7140_p6), %s7208_s20, 48, %s478_s1, %s7146_s16  }
  0x68   : > { %s8585_s11 = sshll.u32 %s7130_s18, 7  ;;  %s7001_s3 = smov [#allocation11]  }
  0x69   : > { %s527_s17 = scalar_lea.vmem [#allocation11], %s8585_s11  ;;  %s6861_s30 = sshll.u32 %s7001_s3, 4  ;;  %s6862_s30 = int_to_ptr.vmem [resolvable:$false] %s6861_s30 }
  0x6a   : > { %s534_s24 = sshll.u32 %s527_s17, 4  ;;  %s6863_s19 = scalar_lea.vmem %s6862_s30, 4096  ;;  %s535_s24 = int_to_ptr.vmem [resolvable:$true] %s534_s24 }
  0x6b   : > { %s6856_s25 = scalar_lea.vmem %s535_s24, 2048  ;;  %p6864_p5 = scmp.lt.s32.totalorder %s535_s24, %s6862_s30 }
  0x6c   : > { %p6857_p13 = scmp.ne.s32.totalorder %s535_s24, %s6856_s25  ;;  %p6865_p8 = scmp.lt.s32.totalorder %s6863_s19, %s6856_s25 }
  0x6e   : > { %p6859_p2 = pnand %p6857_p13, %p7150_p7  ;;  %p6866_p3 = por %p6865_p8, %p6864_p5 }
  0x70   : > { %p6860_p4 = pneg %p6859_p2 }
  0x72   : > { %p6867_p9 = pnand %p6866_p3, %p6860_p4 }
  0x74   : > { %6870 = shalt.err (!%p6867_p9)
}
  0x75   : > { %6465 = dma.hbm_to_vmem [thread:$0]  (!%p7140_p6), %s7226_s2, 2048, %s535_s24, %s7166_s10, %s6998_s14, %s6998_s14, %s6999_s27  }
  0x76   : > { %s8586_s9 = sld [smem:[#allocation33_spill]]  ;;  %s8587_s22 = smov %s8585_s11 }
  0x77   : > { %s555_s12 = scalar_lea.vmem [#allocation12], %s8587_s22  ;;  %s552_s11 = scalar_lea.sflag [#allocation13], %s7130_s18 }
  0x78   : > { %s562_s23 = sshll.u32 %s555_s12, 4  ;;  %s7002_s25 = smov [#allocation12]   ;;  %s563_s23 = int_to_ptr.vmem [resolvable:$true] %s562_s23 }
  0x79   : > { %s6884_s17 = scalar_lea.vmem %s563_s23, 2048  ;;  %s6889_s3 = sshll.u32 %s7002_s25, 4  ;;  %s6890_s3 = int_to_ptr.vmem [resolvable:$false] %s6889_s3 }
  0x7a   : > { %p6885_p10 = scmp.ne.s32.totalorder %s563_s23, %s6884_s17  ;;  %s6891_s30 = scalar_lea.vmem %s6890_s3, 4096 }
  0x7b   : > { %p6892_p2 = scmp.lt.s32.totalorder %s563_s23, %s6890_s3  ;;  %p6893_p4 = scmp.lt.s32.totalorder %s6891_s30, %s6884_s17 }
  0x7c   : > { %s561_s20 = scalar_lea.hbm %s8586_s9, %s6087_s21  ;;  %p6887_p12 = pnand %p6885_p10, %p7150_p7 }
  0x7d   : > { %p6894_p5 = por %p6893_p4, %p6892_p2 }
  0x7e   : > { %p6888_p13 = pneg %p6887_p12 }
  0x80   : > { %p6895_p8 = pnand %p6894_p5, %p6888_p13 }
  0x82   : > { %6898 = shalt.err (!%p6895_p8)
}
  0x83   : > { %s8588_s2 = smov 4   ;;  %s8589_s10 = smov 64  }
  0x84   : > { %6468 = dma.hbm_to_vmem [thread:$0]  (!%p7140_p6), %s561_s20, 2048, %s563_s23, %s552_s11, %s8589_s10, %s8589_s10, %s8588_s2  }
  0x85   : > { %592 = sbr.rel (%p7190_p1) target bundleno = 2617 (0xa39), region = 72 }
  0x8a   : > { %6948 = dma.done.wait (%p93_p11), [#allocation4], 256  }
  0x8b   : > { %6950 = vsyncadd (%p93_p11), [#allocation4], 4294967040  ;;  %s598_s18 = sand.u32 1, %s7177_s5   ;;  %s600_s15 = sand.u32 1, %s6973_s26  }
  0x8c   : > { %s6429_s14 = smul.u32 192, %s600_s15  ;;  %s599_s13 = scalar_lea.sflag [#allocation7], %s598_s18 }
  0x8e   : > { %s7268_s27 = scalar_lea.vmem [#allocation6], %s6429_s14 }
  0x8f   : > { %6952 = dma.done.wait (%p7186_p0), %s599_s13, 3120  }
  0x90   : > { %6954 = vsyncadd (%p7186_p0), %s599_s13, 4294964176  ;;  %s6430_s8 = smul.u32 3, %s600_s15  ;;  %s5910_s21 = sshll.u32 %s600_s15, 6 }
  0x91   : > { %s617_s19 = scalar_lea.sflag [#allocation10], %s598_s18  ;;  %s7276_s16 = scalar_lea.vmem [#allocation9], %s5910_s21 }
  0x92   : > { %s7274_s24 = scalar_lea.vmem [#allocation8], %s6430_s8 }
  0x93   : > { %6956 = dma.done.wait (%p7186_p0), %s617_s19, 3072  }
  0x94   : > { %6958 = vsyncadd (%p7186_p0), %s617_s19, 4294964224  ;;  %s5911_s1 = sshll.u32 %s600_s15, 7  ;;  %s635_s22 = scalar_lea.sflag [#allocation13], %s600_s15 }
  0x95   : > { %s7282_s20 = scalar_lea.vmem [#allocation11], %s5911_s1  ;;  %s7284_s12 = scalar_lea.vmem [#allocation12], %s5911_s1 }
  0x96   : > { %6960 = dma.done.wait (%p7186_p0), %s635_s22, 2048  }
  0x97   : > { %6962 = vsyncadd (%p7186_p0), %s635_s22, 4294965248  ;;  %p719_p6 = scmp.lt.s32.totalorder %s6981_s28, 1  ;;  %s8591_s15 = sld [smem:[#allocation30_spill]] }
  0x98   : > { %s8592_s19 = sld [smem:[#allocation32_spill]]  ;;  %p5914_p7 = scmp.ne.s32.totalorder %s6981_s28, 0 }
  0x99   : > { %s7292_s23 = scalar_select %p719_p6, %s6981_s28, 1 }
  0x9a   : > { %s8593_s17 = sld [smem:[#allocation34_spill]] }
  0x9b   : > { %s5913_s13 = sshll.u32 %s7292_s23, 1  ;;  %s8594_s9 = sld [smem:[#allocation35_spill]] }
  0x9c   : > { %s8595_s6 = sld [smem:[#allocation36_spill]] }
  0x9d   : > { %s727_s14 = scalar_lea.vmem %s8591_s15, %s7292_s23 }
  0x9e   : > { %s7310_s1 = scalar_lea.vmem %s8592_s19, %s5913_s13  ;;  %746 = sbr.rel (%p5914_p7) target bundleno = 165 (0xa5), region = 100 }
  0xa0   : > { %s734_s0 = scalar_lea.vmem %s8593_s17, %s7292_s23 }
  0xa1   : > { %s737_s29 = scalar_lea.vmem %s8594_s9, %s7292_s23 }
  0xa2   : > { %s740_s2 = scalar_lea.vmem %s8595_s6, %s7292_s23 }
  0xa3   : > { %v747_v0 = vld [vmem:[#allocation3] sm:$0xff]  ;;  %v748_v1 = vld [vmem:[#allocation3 + $0x8] sm:$0xff] }
  0xa4   : > { %749 = vst [vmem:[#allocation2] sm:$0xff] %v747_v0  ;;  %750 = vst [vmem:[#allocation2 + $0x8] sm:$0xff] %v748_v1 }
  0xa5 PF: > { %v6579_v2 = vld [vmem:[%s7268_s27 + $0xac] ss:$12 sps:$4 sm:$0xff]   ;;  %v6581_v3 = vld [vmem:[%s7268_s27 + $0xa8] ss:$12 sps:$4 sm:$0xff]   ;;  %v7003_v4 = vmov 0   ;;  %v7004_v5 = vmov 0.0   ;;  %v788_v31 = vlaneseq  ;;  %s8596_s13 = scalar_lea.vmem %s8539_s4, %s7292_s23 }
  0xa6   : > { %963 = vmatprep.mubr.bf16.mxu0 %v7003_v4  ;;  %6193 = vmatprep.subr.bf16.mxu1 %v7004_v5  ;;  %v6582_v6 = vld [vmem:[%s7268_s27 + $0x94] ss:$12 sps:$4 sm:$0xff]   ;;  %v6584_v7 = vld [vmem:[%s7268_s27 + $0x90] ss:$12 sps:$4 sm:$0xff]   ;;  %v6587_v9 = vld [vmem:[%s7268_s27 + $0x78] ss:$12 sps:$4 sm:$0xff]  }
  0xa7   : > { %931 = vmatprep.subr.bf16.mxu0 %v6579_v2  ;;  %v6585_v8 = vld [vmem:[%s7268_s27 + $0x7c] ss:$12 sps:$4 sm:$0xff]   ;;  %v6588_v10 = vld [vmem:[%s7268_s27 + $0x64] ss:$12 sps:$4 sm:$0xff]   ;;  %v6590_v11 = vld [vmem:[%s7268_s27 + $0x60] ss:$12 sps:$4 sm:$0xff]  }
  0xa8   : > { %932 = vmatpush1.bf16.msra.mxu0 %v6581_v3  ;;  %v6591_v12 = vld [vmem:[%s7268_s27 + $0x4c] ss:$12 sps:$4 sm:$0xff]   ;;  %v6603_v13 = vld [vmem:[%s7268_s27 + $0xb0] ss:$12 sps:$4 sm:$0xff]   ;;  %v6593_v15 = vld [vmem:[%s7268_s27 + $0x48] ss:$12 sps:$4 sm:$0xff]  }
  0xa9   : > { %933 = vmatprep.subr.bf16.mxu0 %v6582_v6  ;;  %6194 = vmatpush3.bf16.msra.mxu1 %v6603_v13  ;;  %v6604_v14 = vld [vmem:[%s7268_s27 + $0x98] ss:$12 sps:$4 sm:$0xff]   ;;  %v6594_v16 = vld [vmem:[%s7268_s27 + $0x34] ss:$12 sps:$4 sm:$0xff]   ;;  %v6596_v17 = vld [vmem:[%s7268_s27 + $0x30] ss:$12 sps:$4 sm:$0xff]  }
  0xaa   : > { %6195 = vmatprep.subr.bf16.mxu1 %v7004_v5  ;;  %v6597_v18 = vld [vmem:[%s7268_s27 + $0x1c] ss:$12 sps:$4 sm:$0xff]   ;;  %v6605_v19 = vld [vmem:[%s7268_s27 + $0x80] ss:$12 sps:$4 sm:$0xff]   ;;  %v6599_v21 = vld [vmem:[%s7268_s27 + $0x18] ss:$12 sps:$4 sm:$0xff]  }
  0xab   : > { %v6606_v20 = vld [vmem:[%s7268_s27 + $0x68] ss:$12 sps:$4 sm:$0xff]   ;;  %v6600_v22 = vld [vmem:[%s7268_s27 + $0x4] ss:$12 sps:$4 sm:$0xff]   ;;  %v6602_v24 = vld [vmem:[%s7268_s27] ss:$12 sps:$4 sm:$0xff]  }
  0xac   : > { %934 = vmatpush1.bf16.msra.mxu0 %v6584_v7  ;;  %v6607_v23 = vld [vmem:[%s7268_s27 + $0x50] ss:$12 sps:$4 sm:$0xff]   ;;  %v751_v25 = vld [vmem:[#allocation2] sm:$0xff]  ;;  %v752_v26 = vld [vmem:[#allocation2 + $0x8] sm:$0xff]  ;;  %vm7005_vm0 = vmmov 0   ;;  %v7366_v32 = vshrl.u32 %v788_v31, 7 }
  0xad   : > { %935 = vmatprep.subr.bf16.mxu0 %v6585_v8  ;;  %6196 = vmatpush3.bf16.msra.mxu1 %v6604_v14  ;;  %v6608_v27 = vld [vmem:[%s7268_s27 + $0x38] ss:$12 sps:$4 sm:$0xff]   ;;  %v753_v28 = vpack.c.bf16 %v752_v26, %v751_v25  ;;  %v6609_v29 = vld [vmem:[%s7268_s27 + $0x20] ss:$12 sps:$4 sm:$0xff]   ;;  %v6610_v30 = vld [vmem:[%s7268_s27 + $0x8] ss:$12 sps:$4 sm:$0xff]  }
  0xae   : > { %6197 = vmatprep.subr.bf16.mxu1 %v7004_v5  ;;  %6209 = vmatprep.mubr.msk.bf16.mxu1 %vm7005_vm0, %v7004_v5  ;;  %v794_v33 = vsub.s32 1, %v7366_v32  ;;  %v786_v34 = vld [vmem:[%s7274_s24] sm:$0x7]  ;;  %v790_v35 = vsub.s32 0, %v7366_v32  ;;  %s7006_s7 = smov 80   ;;  %s7007_s9 = smov 112  }
  0xaf   : > { %s7008_s27 = smov 96   ;;  %s7009_s24 = smov 64   ;;  %v798_v46 = vsub.s32 2, %v7366_v32  ;;  %v7013_v54 = vmov 1983009808   ;;  %vm2827_vm1 = vcmask 130048  }
  0xb0   : > { %936 = vmatpush1.bf16.msra.mxu0 %v6587_v9  ;;  %v795_v36 = vrot.slane %v786_v34, %v794_v33  ;;  %v791_v39 = vrot.slane %v786_v34, %v790_v35  ;;  %s7010_s25 = smov 48   ;;  %s7011_s10 = smov 32   ;;  %v1062_v55 = vunpack.c.l.s4 %v7013_v54  ;;  %v7014_v56 = vmov 1934713408  }
  0xb1   : > { %937 = vmatprep.subr.bf16.mxu0 %v6588_v10  ;;  %6198 = vmatpush3.bf16.msra.mxu1 %v6605_v19  ;;  %s7012_s18 = smov 16   ;;  %v799_v48 = vrot.slane %v786_v34, %v798_v46  ;;  %v1126_v57 = vunpack.c.l.s4 %v7014_v56  ;;  %vm3728_vm2 = vcmask 1043456   ;;  %vm3564_vm3 = vcmask 64512   ;;  %s8597_s21 = sld [smem:[#allocation29_spill]] }
  0xb2   : > { %6199 = vmatprep.subr.bf16.mxu1 %v7004_v5  ;;  %v1063_v58 = vunpack.c.0.s8 %v1062_v55  ;;  %vm5096_vm4 = vcmask 261120   ;;  %vm5099_vm5 = vcmask 392192   ;;  %vm5102_vm6 = vcmask 523264   ;;  %p6081_p11 = scmp.ne.s32.totalorder %s6981_s28, 1 }
  0xb3   : > { %v1127_v61 = vunpack.c.0.s8 %v1126_v57  ;;  %vm5105_vm7 = vcmask 654336   ;;  %vm5108_vm8 = vcmask 785408   ;;  %vm5111_vm9 = vcmask 916480  }
  0xb4   : > { %938 = vmatpush1.bf16.msra.mxu0 %v6590_v11  ;;  %v7467_v62 = vsub.s32 %v1063_v58, %v7366_v32 }
  0xb5   : > { %939 = vmatprep.subr.bf16.mxu0 %v6591_v12  ;;  %6200 = vmatpush3.bf16.msra.mxu1 %v6606_v20  ;;  %v7472_v7 = vsub.s32 %v1127_v61, %v7366_v32  ;;  %v6062_v32 = vld [vmem:[%s734_s0] ss:$0 sm:$0xff] }
  0xb6   : > { %6201 = vmatprep.subr.bf16.mxu1 %v7004_v5 }
  0xb7   : > { %s8598_s19 = scalar_lea.vmem %s8597_s21, %s7292_s23 }
  0xb8   : > { %940 = vmatpush1.bf16.msra.mxu0 %v6593_v15 }
  0xb9   : > { %941 = vmatprep.subr.bf16.mxu0 %v6594_v16  ;;  %6202 = vmatpush3.bf16.msra.mxu1 %v6607_v23 }
  0xba   : > { %6203 = vmatprep.subr.bf16.mxu1 %v7004_v5 }
  0xbc   : > { %942 = vmatpush1.bf16.msra.mxu0 %v6596_v17 }
  0xbd   : > { %943 = vmatprep.subr.bf16.mxu0 %v6597_v18  ;;  %6204 = vmatpush3.bf16.msra.mxu1 %v6608_v27 }
  0xbe   : > { %6205 = vmatprep.subr.bf16.mxu1 %v7004_v5 }
  0xc0   : > { %944 = vmatpush1.bf16.msra.mxu0 %v6599_v21 }
  0xc1   : > { %945 = vmatprep.subr.bf16.mxu0 %v6600_v22  ;;  %6206 = vmatpush3.bf16.msra.mxu1 %v6609_v29 }
  0xc2   : > { %6207 = vmatprep.subr.bf16.mxu1 %v7004_v5 }
  0xc4   : > { %946 = vmatpush1.bf16.msra.mxu0 %v6602_v24 }
  0xc5   : > { %6237 = vmatprep.subr.bf16.mxu0 %v7004_v5  ;;  %6208 = vmatpush3.bf16.msra.mxu1 %v6610_v30 }
  0xc6   : > { %6213 = vmatprep.subr.bf16.mxu1 %v7004_v5 }
  0xc7   : > { %964 = vmatmul.mubr.bf16.vlgmr.msra.gmra.mxu0 %v753_v28 }
  0xc8   : > { %6239 = vmatprep.mubr.msk.bf16.mxu0 %vm7005_vm0, %v7004_v5  ;;  %6210 = vmatmul.mubr.bf16.vlgmr.msra.gmra.mxu1 %v753_v28 }
  0xc9   : > { %6215 = vmatprep.mubr.msk.bf16.mxu1 %vm7005_vm0, %v7004_v5 }
 0x187   : > { %v965_v37 = vpop.f32.mrf.mxu0 }
 0x188   : > { %v7381_v41 = vadd.f32 %v965_v37, %v791_v39  ;;  %v1008_v47 = vpop.f32.mrf.mxu1 }
 0x189   : > { %v967_v38 = vpop.f32.mrf.mxu0  ;;  %v7440_v50 = vadd.f32 %v1008_v47, %v799_v48 }
 0x18a   : > { %v7375_v40 = vadd.f32 %v967_v38, %v795_v36  ;;  %v6211_v49 = vpop.f32.mrf.mxu1 }
 0x18b   : > { %v969_v42 = vpop.f32.mrf.mxu0 }
 0x18c   : > { %1633 = vrot.lane.b32.xlu1 %v7375_v40, %s7006_s7  ;;  %1621 = vrot.lane.b32.xlu0 %v7375_v40, %s7007_s9  ;;  %v7413_v45 = vadd.f32 %v969_v42, %v791_v39  ;;  %v1011_v51 = vpop.f32.mrf.mxu1 }
 0x18d   : > { %v971_v43 = vpop.f32.mrf.mxu0  ;;  %v7454_v53 = vadd.f32 %v1011_v51, %v799_v48 }
 0x18e   : > { %v7407_v44 = vadd.f32 %v971_v43, %v795_v36  ;;  %v6212_v52 = vpop.f32.mrf.mxu1 }
 0x190   : > { %1627 = vrot.lane.b32.xlu0 %v7375_v40, %s7008_s27  ;;  %1017 = vrot.lane.b32.xlu1 %v7381_v41, %s7007_s9 }
 0x194   : > { %1023 = vrot.lane.b32.xlu0 %v7381_v41, %s7008_s27  ;;  %1029 = vrot.lane.b32.xlu1 %v7381_v41, %s7006_s7 }
 0x198   : > { %1639 = vrot.lane.b32.xlu0 %v7375_v40, %s7009_s24  ;;  %1645 = vrot.lane.b32.xlu1 %v7375_v40, %s7010_s25 }
 0x19c   : > { %1651 = vrot.lane.b32.xlu0 %v7375_v40, %s7011_s10  ;;  %1657 = vrot.lane.b32.xlu1 %v7375_v40, %s7012_s18 }
 0x1a0   : > { %1035 = vrot.lane.b32.xlu0 %v7381_v41, %s7009_s24  ;;  %1041 = vrot.lane.b32.xlu1 %v7381_v41, %s7010_s25 }
 0x1a4   : > { %1047 = vrot.lane.b32.xlu0 %v7381_v41, %s7011_s10  ;;  %1053 = vrot.lane.b32.xlu1 %v7381_v41, %s7012_s18 }
 0x1a8   : > { %1623 = vrot.lane.b32.xlu0 %v7407_v44, %s7007_s9  ;;  %1629 = vrot.lane.b32.xlu1 %v7407_v44, %s7008_s27 }
 0x1ac   : > { %1635 = vrot.lane.b32.xlu0 %v7407_v44, %s7006_s7  ;;  %1019 = vrot.lane.b32.xlu1 %v7413_v45, %s7007_s9 }
 0x1b0   : > { %1025 = vrot.lane.b32.xlu0 %v7413_v45, %s7008_s27  ;;  %1031 = vrot.lane.b32.xlu1 %v7413_v45, %s7006_s7 }
 0x1b4   : > { %1641 = vrot.lane.b32.xlu0 %v7407_v44, %s7009_s24  ;;  %1647 = vrot.lane.b32.xlu1 %v7407_v44, %s7010_s25 }
 0x1b8   : > { %1653 = vrot.lane.b32.xlu0 %v7407_v44, %s7011_s10  ;;  %1659 = vrot.lane.b32.xlu1 %v7407_v44, %s7012_s18 }
 0x1bc   : > { %1037 = vrot.lane.b32.xlu0 %v7413_v45, %s7009_s24  ;;  %1043 = vrot.lane.b32.xlu1 %v7413_v45, %s7010_s25 }
 0x1c0   : > { %1049 = vrot.lane.b32.xlu0 %v7413_v45, %s7011_s10  ;;  %1055 = vrot.lane.b32.xlu1 %v7413_v45, %s7012_s18 }
 0x1c4   : > { %2225 = vrot.lane.b32.xlu0 %v7440_v50, %s7007_s9  ;;  %2231 = vrot.lane.b32.xlu1 %v7440_v50, %s7008_s27 }
 0x1c8   : > { %2237 = vrot.lane.b32.xlu0 %v7440_v50, %s7006_s7  ;;  %2249 = vrot.lane.b32.xlu1 %v7440_v50, %s7010_s25 }
 0x1cc   : > { %2243 = vrot.lane.b32.xlu0 %v7440_v50, %s7009_s24  ;;  %2255 = vrot.lane.b32.xlu1 %v7440_v50, %s7011_s10 }
 0x1d0   : > { %2261 = vrot.lane.b32.xlu0 %v7440_v50, %s7012_s18  ;;  %2233 = vrot.lane.b32.xlu1 %v7454_v53, %s7008_s27 }
 0x1d4   : > { %2227 = vrot.lane.b32.xlu0 %v7454_v53, %s7007_s9  ;;  %2239 = vrot.lane.b32.xlu1 %v7454_v53, %s7006_s7 }
 0x1d8   : > { %2245 = vrot.lane.b32.xlu1 %v7454_v53, %s7009_s24 }
 0x1fe   : > { %v1634_v59 = vpop.permute.xlu1 %1633  ;;  %v1622_v60 = vpop.permute.xlu0 %1621 }
 0x1ff   : > { %v1679_v63 = vcombine.low %v1622_v60, %v1634_v59  ;;  %v1680_v0 = vcombine.high %v1622_v60, %v1634_v59 }
 0x201   : > { %v1687_v8 = vrot.slane %v1679_v63, %v7467_v62  ;;  %v1694_v9 = vrot.slane %v1680_v0, %v7467_v62 }
 0x202   : > { %v1628_v1 = vpop.permute.xlu0 %1627  ;;  %v1018_v2 = vpop.permute.xlu1 %1017 }
 0x203   : > { %v1663_v3 = vcombine.low %v7375_v40, %v1628_v1  ;;  %v1664_v6 = vcombine.high %v7375_v40, %v1628_v1 }
 0x205   : > { %v1671_v10 = vrot.slane %v1663_v3, %v7467_v62  ;;  %v1678_v11 = vrot.slane %v1664_v6, %v7467_v62 }
 0x206   : > { %v1024_v12 = vpop.permute.xlu0 %1023  ;;  %v1030_v13 = vpop.permute.xlu1 %1029 }
 0x207   : > { %v1727_v14 = vcombine.low %v1671_v10, %v1687_v8  ;;  %v1728_v15 = vcombine.high %v1671_v10, %v1687_v8  ;;  %v1743_v16 = vcombine.low %v1678_v11, %v1694_v9  ;;  %v1744_v17 = vcombine.high %v1678_v11, %v1694_v9 }
 0x208   : > { %v1059_v18 = vcombine.low %v7381_v41, %v1024_v12  ;;  %v1060_v19 = vcombine.high %v7381_v41, %v1024_v12  ;;  %v1075_v20 = vcombine.low %v1018_v2, %v1030_v13  ;;  %v1076_v21 = vcombine.high %v1018_v2, %v1030_v13 }
 0x209   : > { %v1735_v22 = vrot.slane %v1727_v14, %v7472_v7  ;;  %v1742_v23 = vrot.slane %v1728_v15, %v7472_v7  ;;  %v1751_v24 = vrot.slane %v1743_v16, %v7472_v7  ;;  %v1758_v25 = vrot.slane %v1744_v17, %v7472_v7 }
 0x20a   : > { %v1067_v26 = vrot.slane %v1059_v18, %v7467_v62  ;;  %v1074_v27 = vrot.slane %v1060_v19, %v7467_v62  ;;  %v1083_v28 = vrot.slane %v1075_v20, %v7467_v62  ;;  %v1090_v29 = vrot.slane %v1076_v21, %v7467_v62  ;;  %v1640_v30 = vpop.permute.xlu0 %1639  ;;  %v1646_v31 = vpop.permute.xlu1 %1645 }
 0x20b   : > { %v5955_v34 = vcombine.low %v1735_v22, %v1742_v23  ;;  %v5957_v36 = vcombine.high %v1735_v22, %v1742_v23  ;;  %v5959_v37 = vcombine.low %v1751_v24, %v1758_v25  ;;  %v5961_v38 = vcombine.high %v1751_v24, %v1758_v25 }
 0x20c   : > { %v1123_v39 = vcombine.low %v1067_v26, %v1083_v28  ;;  %v1124_v40 = vcombine.high %v1067_v26, %v1083_v28  ;;  %v1139_v41 = vcombine.low %v1074_v27, %v1090_v29  ;;  %v1140_v42 = vcombine.high %v1074_v27, %v1090_v29 }
 0x20d   : > { %v7489_v43 = vrot.slane %v5955_v34, %v7467_v62  ;;  %v7492_v46 = vrot.slane %v5957_v36, %v7467_v62  ;;  %v7495_v47 = vrot.slane %v5959_v37, %v7467_v62  ;;  %v7498_v48 = vrot.slane %v5961_v38, %v7467_v62 }
 0x20e   : > { %v1131_v49 = vrot.slane %v1123_v39, %v7472_v7  ;;  %v1138_v51 = vrot.slane %v1124_v40, %v7472_v7  ;;  %v1147_v52 = vrot.slane %v1139_v41, %v7472_v7  ;;  %v1154_v54 = vrot.slane %v1140_v42, %v7472_v7  ;;  %v1652_v55 = vpop.permute.xlu0 %1651  ;;  %v1658_v56 = vpop.permute.xlu1 %1657 }
 0x20f   : > { %v1695_v57 = vcombine.low %v1640_v30, %v1652_v55  ;;  %v1696_v58 = vcombine.high %v1640_v30, %v1652_v55  ;;  %v1711_v59 = vcombine.low %v1646_v31, %v1658_v56  ;;  %v1712_v60 = vcombine.high %v1646_v31, %v1658_v56 }
 0x210   : > { %v5939_v61 = vcombine.low %v1131_v49, %v1138_v51  ;;  %v5941_v63 = vcombine.high %v1131_v49, %v1138_v51  ;;  %v5943_v0 = vcombine.low %v1147_v52, %v1154_v54  ;;  %v5945_v1 = vcombine.high %v1147_v52, %v1154_v54 }
 0x211   : > { %v1703_v2 = vrot.slane %v1695_v57, %v7467_v62  ;;  %v1710_v3 = vrot.slane %v1696_v58, %v7467_v62  ;;  %v1719_v6 = vrot.slane %v1711_v59, %v7467_v62  ;;  %v1726_v8 = vrot.slane %v1712_v60, %v7467_v62 }
 0x212   : > { %v7509_v9 = vrot.slane %v5939_v61, %v7467_v62  ;;  %v7512_v10 = vrot.slane %v5941_v63, %v7467_v62  ;;  %v7515_v11 = vrot.slane %v5943_v0, %v7467_v62  ;;  %v7518_v12 = vrot.slane %v5945_v1, %v7467_v62  ;;  %v1036_v13 = vpop.permute.xlu0 %1035  ;;  %v1042_v14 = vpop.permute.xlu1 %1041 }
 0x213   : > { %v1759_v15 = vcombine.low %v1703_v2, %v1719_v6  ;;  %v1760_v16 = vcombine.high %v1703_v2, %v1719_v6  ;;  %v1775_v17 = vcombine.low %v1710_v3, %v1726_v8  ;;  %v1776_v18 = vcombine.high %v1710_v3, %v1726_v8 }
 0x214   : > { %v1395_v19 = vcombine.low %v7509_v9, %v7512_v10  ;;  %v1427_v20 = vcombine.low %v7515_v11, %v7518_v12  ;;  %v1396_v25 = vcombine.high %v7509_v9, %v7512_v10  ;;  %v1428_v28 = vcombine.high %v7515_v11, %v7518_v12 }
 0x215   : > { %v7525_v21 = vrot.slane %v1759_v15, %v7472_v7  ;;  %v7528_v22 = vrot.slane %v1760_v16, %v7472_v7  ;;  %v7531_v23 = vrot.slane %v1775_v17, %v7472_v7  ;;  %v7534_v24 = vrot.slane %v1776_v18, %v7472_v7 }
 0x216   : > { %v1048_v26 = vpop.permute.xlu0 %1047  ;;  %v1054_v27 = vpop.permute.xlu1 %1053  ;;  %v1999_v29 = vcombine.low %v7489_v43, %v7492_v46  ;;  %v2031_v30 = vcombine.low %v7495_v47, %v7498_v48  ;;  %v7545_v31 = vrot.slane %v1395_v19, %v7472_v7  ;;  %v7554_v42 = vrot.slane %v1427_v20, %v7472_v7 }
 0x217   : > { %v1091_v34 = vcombine.low %v1036_v13, %v1048_v26  ;;  %v1092_v36 = vcombine.high %v1036_v13, %v1048_v26  ;;  %v1107_v37 = vcombine.low %v1042_v14, %v1054_v27  ;;  %v1108_v38 = vcombine.high %v1042_v14, %v1054_v27 }
 0x218   : > { %v5956_v39 = vcombine.low %v7525_v21, %v7528_v22  ;;  %v5958_v40 = vcombine.high %v7525_v21, %v7528_v22  ;;  %v5960_v41 = vcombine.low %v7531_v23, %v7534_v24  ;;  %v2007_v57 = vrot.slane %v1999_v29, %v7472_v7 }
 0x219   : > { %v1099_v49 = vrot.slane %v1091_v34, %v7467_v62  ;;  %v1106_v51 = vrot.slane %v1092_v36, %v7467_v62  ;;  %v1115_v52 = vrot.slane %v1107_v37, %v7467_v62  ;;  %v1122_v54 = vrot.slane %v1108_v38, %v7467_v62 }
 0x21a   : > { %v1624_v55 = vpop.permute.xlu0 %1623  ;;  %v1630_v56 = vpop.permute.xlu1 %1629  ;;  %v2039_v58 = vrot.slane %v2031_v30, %v7472_v7  ;;  %v5962_v2 = vcombine.high %v7531_v23, %v7534_v24  ;;  %v1459_v21 = vcombine.low %v7545_v31, %v7554_v42  ;;  %v1442_v9 = vrot.slane %v1428_v28, %v7472_v7 }
 0x21b   : > { %v1799_v59 = vcombine.low %v7407_v44, %v1630_v56  ;;  %v1800_v60 = vcombine.high %v7407_v44, %v1630_v56  ;;  %v1155_v61 = vcombine.low %v1099_v49, %v1115_v52  ;;  %v1156_v63 = vcombine.high %v1099_v49, %v1115_v52 }
 0x21c   : > { %v1171_v0 = vcombine.low %v1106_v51, %v1122_v54  ;;  %v1172_v1 = vcombine.high %v1106_v51, %v1122_v54  ;;  %v2063_v3 = vcombine.low %v2007_v57, %v2039_v58  ;;  %v2064_v34 = vcombine.high %v2007_v57, %v2039_v58 }
 0x21d   : > { %v1807_v6 = vrot.slane %v1799_v59, %v7467_v62  ;;  %v1814_v8 = vrot.slane %v1800_v60, %v7467_v62  ;;  %v1163_v13 = vrot.slane %v1155_v61, %v7472_v7  ;;  %v1170_v14 = vrot.slane %v1156_v63, %v7472_v7 }
 0x21e   : > { %v1179_v15 = vrot.slane %v1171_v0, %v7472_v7  ;;  %v1186_v44 = vrot.slane %v1172_v1, %v7472_v7  ;;  %v1636_v16 = vpop.permute.xlu0 %1635  ;;  %v1020_v17 = vpop.permute.xlu1 %1019  ;;  %v2207_v18 = vpack.c.bf16 %v2063_v3, %v2063_v3  ;;  %v7591_v58 = vrot.slane %v5956_v39, %v7467_v62 }
 0x21f   : > { %v1815_v19 = vcombine.low %v1624_v55, %v1636_v16  ;;  %v1816_v20 = vcombine.high %v1624_v55, %v1636_v16  ;;  %v5940_v22 = vcombine.low %v1163_v13, %v1170_v14  ;;  %v5942_v23 = vcombine.high %v1163_v13, %v1170_v14 }
 0x220   : > { %v5944_v24 = vcombine.low %v1179_v15, %v1186_v44  ;;  %v5946_v26 = vcombine.high %v1179_v15, %v1186_v44  ;;  %v2832_v27 = vsel %vm2827_vm1, %v2207_v18, 0  ;;  %v7594_v59 = vrot.slane %v5958_v40, %v7467_v62 }
 0x221   : > { %v1823_v29 = vrot.slane %v1815_v19, %v7467_v62  ;;  %v1830_v30 = vrot.slane %v1816_v20, %v7467_v62  ;;  %v7578_v36 = vrot.slane %v5940_v22, %v7467_v62  ;;  %v7581_v37 = vrot.slane %v5942_v23, %v7467_v62  ;;  %6214 = vmatpush3.bf16.xpose.msra.mxu1 %v2832_v27 }
 0x222   : > { %v7584_v38 = vrot.slane %v5944_v24, %v7467_v62  ;;  %v7587_v49 = vrot.slane %v5946_v26, %v7467_v62  ;;  %v1026_v51 = vpop.permute.xlu0 %1025  ;;  %6219 = vmatprep.subr.bf16.mxu1 %v7004_v5  ;;  %v1032_v57 = vpop.permute.xlu1 %1031  ;;  %v7597_v60 = vrot.slane %v5960_v41, %v7467_v62  ;;  %v7600_v61 = vrot.slane %v5962_v2, %v7467_v62 }
 0x223   : > { %v1863_v52 = vcombine.low %v1807_v6, %v1823_v29  ;;  %v1864_v54 = vcombine.high %v1807_v6, %v1823_v29  ;;  %v1879_v55 = vcombine.low %v1814_v8, %v1830_v30  ;;  %v1880_v56 = vcombine.high %v1814_v8, %v1830_v30 }
 0x224   : > { %v2208_v39 = vpack.c.bf16 %v2064_v34, %v2064_v34  ;;  %v1195_v40 = vcombine.low %v7413_v45, %v1026_v51  ;;  %v1196_v6 = vcombine.high %v7413_v45, %v1026_v51  ;;  %v1211_v41 = vcombine.low %v1020_v17, %v1032_v57 }
 0x225   : > { %v1871_v63 = vrot.slane %v1863_v52, %v7472_v7  ;;  %v1878_v0 = vrot.slane %v1864_v54, %v7472_v7  ;;  %v7605_v1 = vrot.slane %v1879_v55, %v7472_v7  ;;  %v7608_v3 = vrot.slane %v1880_v56, %v7472_v7 }
 0x226   : > { %v1642_v8 = vpop.permute.xlu0 %1641  ;;  %v1411_v2 = vcombine.low %v7578_v36, %v7581_v37  ;;  %v1412_v13 = vcombine.high %v7578_v36, %v7581_v37  ;;  %v1443_v14 = vcombine.low %v7584_v38, %v7587_v49  ;;  %v1603_v15 = vpack.c.bf16 %v1459_v21, %v1459_v21  ;;  %v1648_v27 = vpop.permute.xlu1 %1647 }
 0x227   : > { %v1444_v44 = vcombine.high %v7584_v38, %v7587_v49  ;;  %v1203_v16 = vrot.slane %v1195_v40, %v7467_v62  ;;  %v1210_v18 = vrot.slane %v1196_v6, %v7467_v62  ;;  %v1212_v45 = vcombine.high %v1020_v17, %v1032_v57 }
 0x228   : > { %v5963_v19 = vcombine.low %v1871_v63, %v1878_v0  ;;  %v5965_v20 = vcombine.high %v1871_v63, %v1878_v0  ;;  %v5967_v22 = vcombine.low %v7605_v1, %v7608_v3  ;;  %6216 = vmatmul.mubr.msk.bf16.vlgmr.msra.gmra.mxu1 %vm2827_vm1, %v1603_v15  ;;  %v2878_v23 = vsel %vm2827_vm1, %v2208_v39, 0 }
 0x229   : > { %6220 = vmatpush3.bf16.xpose.msra.mxu1 %v2878_v23  ;;  %v1219_v21 = vrot.slane %v1211_v41, %v7467_v62  ;;  %v1226_v24 = vrot.slane %v1212_v45, %v7467_v62  ;;  %v2015_v26 = vcombine.low %v7591_v58, %v7594_v59  ;;  %v2047_v17 = vcombine.low %v7597_v60, %v7600_v61 }
 0x22a   : > { %6221 = vmatprep.mubr.msk.bf16.mxu1 %vm7005_vm0, %v7004_v5  ;;  %v1460_v29 = vcombine.high %v7545_v31, %v7554_v42  ;;  %6225 = vmatprep.subr.bf16.mxu1 %v7004_v5  ;;  %v2000_v30 = vcombine.high %v7489_v43, %v7492_v46  ;;  %v2032_v34 = vcombine.high %v7495_v47, %v7498_v48  ;;  %v1654_v56 = vpop.permute.xlu0 %1653  ;;  %v1660_v45 = vpop.permute.xlu1 %1659 }
 0x22b   : > { %v1259_v51 = vcombine.low %v1203_v16, %v1219_v21  ;;  %v1260_v52 = vcombine.high %v1203_v16, %v1219_v21  ;;  %v1275_v54 = vcombine.low %v1210_v18, %v1226_v24  ;;  %v1276_v55 = vcombine.high %v1210_v18, %v1226_v24 }
 0x22c   : > { %v7642_v57 = vrot.slane %v2015_v26, %v7472_v7  ;;  %v7645_v63 = vrot.slane %v2047_v17, %v7472_v7  ;;  %v1604_v31 = vpack.c.bf16 %v1460_v29, %v1460_v29  ;;  %v2014_v42 = vrot.slane %v2000_v30, %v7472_v7 }
 0x22d   : > { %v1267_v0 = vrot.slane %v1259_v51, %v7472_v7  ;;  %v1274_v43 = vrot.slane %v1260_v52, %v7472_v7  ;;  %v1283_v46 = vrot.slane %v1275_v54, %v7472_v7  ;;  %v1290_v47 = vrot.slane %v1276_v55, %v7472_v7 }
 0x22e   : > { %v2067_v48 = vcombine.low %v7642_v57, %v7645_v63  ;;  %v2046_v39 = vrot.slane %v2032_v34, %v7472_v7  ;;  %v1831_v40 = vcombine.low %v1642_v8, %v1654_v56  ;;  %v1832_v6 = vcombine.high %v1642_v8, %v1654_v56  ;;  %v1038_v51 = vpop.permute.xlu0 %1037 }
 0x22f   : > { %v5947_v41 = vcombine.low %v1267_v0, %v1274_v43  ;;  %v5949_v15 = vcombine.high %v1267_v0, %v1274_v43  ;;  %v5951_v16 = vcombine.low %v1283_v46, %v1290_v47  ;;  %v5953_v18 = vcombine.high %v1283_v46, %v1290_v47  ;;  %v1044_v47 = vpop.permute.xlu1 %1043 }
 0x230   : > { %v7656_v23 = vrot.slane %v5963_v19, %v7467_v62  ;;  %v5969_v21 = vcombine.high %v7605_v1, %v7608_v3  ;;  %v2211_v24 = vpack.c.bf16 %v2067_v48, %v2067_v48  ;;  %6222 = vmatmul.mubr.msk.bf16.vlgmr.msra.gmra.mxu1 %vm2827_vm1, %v1604_v31  ;;  %v2065_v26 = vcombine.low %v2014_v42, %v2046_v39 }
 0x231   : > { %v7662_v17 = vrot.slane %v5965_v20, %v7467_v62  ;;  %v7665_v8 = vrot.slane %v5967_v22, %v7467_v62  ;;  %v1839_v29 = vrot.slane %v1831_v40, %v7467_v62  ;;  %v1846_v30 = vrot.slane %v1832_v6, %v7467_v62  ;;  %6227 = vmatprep.mubr.msk.bf16.mxu1 %vm7005_vm0, %v7004_v5 }
 0x232   : > { %v3016_v19 = vsel %vm2827_vm1, %v2211_v24, 0  ;;  %v2209_v1 = vpack.c.bf16 %v2065_v26, %v2065_v26  ;;  %v1847_v3 = vcombine.low %v1648_v27, %v1660_v45  ;;  %v1848_v34 = vcombine.high %v1648_v27, %v1660_v45 }
 0x233   : > { %v7673_v52 = vrot.slane %v5947_v41, %v7467_v62  ;;  %v7676_v20 = vrot.slane %v5949_v15, %v7467_v62  ;;  %v7679_v22 = vrot.slane %v5951_v16, %v7467_v62  ;;  %v7682_v54 = vrot.slane %v5953_v18, %v7467_v62  ;;  %6238 = vmatpush3.bf16.xpose.msra.mxu0 %v3016_v19  ;;  %v1050_v15 = vpop.permute.xlu0 %1049 }
 0x234   : > { %v2924_v55 = vsel %vm2827_vm1, %v2209_v1, 0  ;;  %v1855_v56 = vrot.slane %v1847_v3, %v7467_v62  ;;  %v1862_v27 = vrot.slane %v1848_v34, %v7467_v62  ;;  %v7691_v31 = vrot.slane %v1411_v2, %v7472_v7  ;;  %6249 = vmatprep.subr.bf16.mxu0 %v7004_v5  ;;  %v1056_v3 = vpop.permute.xlu1 %1055 }
 0x235   : > { %6226 = vmatpush3.bf16.xpose.msra.mxu1 %v2924_v55  ;;  %v7698_v0 = vrot.slane %v1443_v14, %v7472_v7  ;;  %v2016_v43 = vcombine.high %v7591_v58, %v7594_v59  ;;  %v2048_v46 = vcombine.high %v7597_v60, %v7600_v61  ;;  %v1410_v2 = vrot.slane %v1396_v25, %v7472_v7 }
 0x236   : > { %v1895_v48 = vcombine.low %v1839_v29, %v1855_v56  ;;  %v1896_v40 = vcombine.high %v1839_v29, %v1855_v56  ;;  %v1911_v6 = vcombine.low %v1846_v30, %v1862_v27  ;;  %v1912_v41 = vcombine.high %v1846_v30, %v1862_v27  ;;  %6231 = vmatprep.subr.bf16.mxu1 %v7004_v5 }
 0x237   : > { %v1463_v14 = vcombine.low %v7691_v31, %v7698_v0  ;;  %v7712_v58 = vrot.slane %v2016_v43, %v7472_v7  ;;  %v7715_v59 = vrot.slane %v2048_v46, %v7472_v7  ;;  %v1461_v45 = vcombine.low %v1410_v2, %v1442_v9 }
 0x238   : > { %v7722_v10 = vrot.slane %v1895_v48, %v7472_v7  ;;  %v7725_v25 = vrot.slane %v1896_v40, %v7472_v7  ;;  %v7728_v60 = vrot.slane %v1911_v6, %v7472_v7  ;;  %v7731_v61 = vrot.slane %v1912_v41, %v7472_v7 }
 0x239   : > { %v1607_v16 = vpack.c.bf16 %v1463_v14, %v1463_v14  ;;  %v2069_v18 = vcombine.low %v7712_v58, %v7715_v59  ;;  %v2066_v11 = vcombine.high %v2014_v42, %v2046_v39  ;;  %v7736_v12 = vrot.slane %v5969_v21, %v7467_v62 }
 0x23a   : > { %v1531_v28 = vcombine.low %v7673_v52, %v7676_v20  ;;  %v1532_v24 = vcombine.high %v7673_v52, %v7676_v20  ;;  %v1563_v26 = vcombine.low %v7679_v22, %v7682_v54  ;;  %v1605_v30 = vpack.c.bf16 %v1461_v45, %v1461_v45 }
 0x23b   : > { %6240 = vmatmul.mubr.msk.bf16.vlgmr.msra.gmra.mxu0 %vm2827_vm1, %v1607_v16  ;;  %v2213_v29 = vpack.c.bf16 %v2069_v18, %v2069_v18  ;;  %v2210_v19 = vpack.c.bf16 %v2066_v11, %v2066_v11  ;;  %v1227_v1 = vcombine.low %v1038_v51, %v1050_v15  ;;  %v5964_v42 = vcombine.low %v7722_v10, %v7725_v25 }
 0x23c   : > { %v5966_v39 = vcombine.high %v7722_v10, %v7725_v25  ;;  %v5968_v21 = vcombine.low %v7728_v60, %v7731_v61  ;;  %v5970_v34 = vcombine.high %v7728_v60, %v7731_v61  ;;  %6251 = vmatprep.mubr.msk.bf16.mxu0 %vm7005_vm0, %v7004_v5  ;;  %6228 = vmatmul.mubr.msk.bf16.vlgmr.msra.gmra.mxu1 %vm2827_vm1, %v1605_v30 }
 0x23d   : > { %v3108_v55 = vsel %vm2827_vm1, %v2213_v29, 0  ;;  %v2970_v56 = vsel %vm2827_vm1, %v2210_v19, 0  ;;  %v1228_v27 = vcombine.high %v1038_v51, %v1050_v15  ;;  %v1235_v43 = vrot.slane %v1227_v1, %v7467_v62  ;;  %6233 = vmatprep.mubr.msk.bf16.mxu1 %vm7005_vm0, %v7004_v5 }
 0x23e   : > { %6250 = vmatpush3.bf16.xpose.msra.mxu0 %v3108_v55  ;;  %6232 = vmatpush3.bf16.xpose.msra.mxu1 %v2970_v56  ;;  %v1243_v46 = vcombine.low %v1044_v47, %v1056_v3  ;;  %v1244_v48 = vcombine.high %v1044_v47, %v1056_v3  ;;  %v7763_v40 = vrot.slane %v1412_v13, %v7472_v7 }
 0x23f   : > { %v1242_v6 = vrot.slane %v1228_v27, %v7467_v62  ;;  %v7770_v41 = vrot.slane %v1444_v44, %v7472_v7  ;;  %6261 = vmatprep.subr.bf16.mxu0 %v7004_v5  ;;  %v2135_v51 = vcombine.low %v7656_v23, %v7662_v17  ;;  %v2167_v47 = vcombine.low %v7665_v8, %v7736_v12 }
 0x240   : > { %v1251_v36 = vrot.slane %v1243_v46, %v7467_v62  ;;  %v1258_v37 = vrot.slane %v1244_v48, %v7467_v62  ;;  %v1462_v13 = vcombine.high %v1410_v2, %v1442_v9  ;;  %6243 = vmatprep.subr.bf16.mxu1 %v7004_v5  ;;  %v2068_v14 = vcombine.high %v7642_v57, %v7645_v63 }
 0x241   : > { %v1465_v38 = vcombine.low %v7763_v40, %v7770_v41  ;;  %v7785_v49 = vrot.slane %v2135_v51, %v7472_v7  ;;  %v7788_v44 = vrot.slane %v2167_v47, %v7472_v7  ;;  %v7802_v30 = vrot.slane %v1531_v28, %v7472_v7 }
 0x242   : > { %v1291_v10 = vcombine.low %v1235_v43, %v1251_v36  ;;  %v1292_v25 = vcombine.high %v1235_v43, %v1251_v36  ;;  %v1307_v60 = vcombine.low %v1242_v6, %v1258_v37  ;;  %v1308_v61 = vcombine.high %v1242_v6, %v1258_v37 }
 0x243   : > { %v1609_v15 = vpack.c.bf16 %v1465_v38, %v1465_v38  ;;  %v2199_v2 = vcombine.low %v7785_v49, %v7788_v44  ;;  %v1606_v9 = vpack.c.bf16 %v1462_v13, %v1462_v13  ;;  %v2212_v16 = vpack.c.bf16 %v2068_v14, %v2068_v14 }
 0x244   : > { %v1299_v18 = vrot.slane %v1291_v10, %v7472_v7  ;;  %v1306_v45 = vrot.slane %v1292_v25, %v7472_v7  ;;  %v1315_v11 = vrot.slane %v1307_v60, %v7472_v7  ;;  %v1322_v29 = vrot.slane %v1308_v61, %v7472_v7 }
 0x245   : > { %6252 = vmatmul.mubr.msk.bf16.vlgmr.msra.gmra.mxu0 %vm2827_vm1, %v1609_v15  ;;  %v2215_v57 = vpack.c.bf16 %v2199_v2, %v2199_v2  ;;  %6234 = vmatmul.mubr.msk.bf16.vlgmr.msra.gmra.mxu1 %vm2827_vm1, %v1606_v9  ;;  %v3062_v63 = vsel %vm2827_vm1, %v2212_v16, 0  ;;  %v7805_v19 = vrot.slane %v1563_v26, %v7472_v7  ;;  %v2086_v1 = vrot.slane %v5964_v42, %v7467_v62 }
 0x246   : > { %v2102_v3 = vrot.slane %v5966_v39, %v7467_v62  ;;  %v5948_v55 = vcombine.low %v1299_v18, %v1306_v45  ;;  %v5950_v56 = vcombine.high %v1299_v18, %v1306_v45  ;;  %6244 = vmatpush3.bf16.xpose.msra.mxu1 %v3062_v63  ;;  %v5952_v27 = vcombine.low %v1315_v11, %v1322_v29 }
 0x247   : > { %v3200_v43 = vsel %vm2827_vm1, %v2215_v57, 0  ;;  %6263 = vmatprep.mubr.msk.bf16.mxu0 %vm7005_vm0, %v7004_v5  ;;  %v2136_v28 = vcombine.high %v7656_v23, %v7662_v17  ;;  %v2168_v26 = vcombine.high %v7665_v8, %v7736_v12  ;;  %6245 = vmatprep.mubr.msk.bf16.mxu1 %vm7005_vm0, %v7004_v5  ;;  %v2118_v42 = vrot.slane %v5968_v21, %v7467_v62 }
 0x248   : > { %v2134_v39 = vrot.slane %v5970_v34, %v7467_v62  ;;  %v5954_v46 = vcombine.high %v1315_v11, %v1322_v29  ;;  %6262 = vmatpush3.bf16.xpose.msra.mxu0 %v3200_v43  ;;  %v1595_v48 = vcombine.low %v7802_v30, %v7805_v19  ;;  %v1564_v6 = vcombine.high %v7679_v22, %v7682_v54 }
 0x249   : > { %6273 = vmatprep.subr.bf16.mxu0 %v7004_v5  ;;  %v2150_v23 = vrot.slane %v2136_v28, %v7472_v7  ;;  %v2182_v17 = vrot.slane %v2168_v26, %v7472_v7  ;;  %v1464_v8 = vcombine.high %v7691_v31, %v7698_v0  ;;  %v7830_v12 = vrot.slane %v5948_v55, %v7467_v62  ;;  %v2232_v55 = vpop.permute.xlu1 %2231 }
 0x24a   : > { %v7833_v21 = vrot.slane %v5950_v56, %v7467_v62  ;;  %6255 = vmatprep.subr.bf16.mxu1 %v7004_v5  ;;  %v7837_v34 = vrot.slane %v5952_v27, %v7467_v62  ;;  %v2070_v51 = vcombine.high %v7712_v58, %v7715_v59  ;;  %v7842_v47 = vrot.slane %v5954_v46, %v7467_v62 }
 0x24b   : > { %v2201_v22 = vcombine.low %v2150_v23, %v2182_v17  ;;  %v1608_v54 = vpack.c.bf16 %v1464_v8, %v1464_v8  ;;  %v1611_v31 = vpack.c.bf16 %v1595_v48, %v1595_v48  ;;  %v2151_v0 = vcombine.low %v2086_v1, %v2102_v3 }
 0x24c   : > { %v2183_v36 = vcombine.low %v2118_v42, %v2134_v39  ;;  %v2214_v13 = vpack.c.bf16 %v2070_v51, %v2070_v51  ;;  %v7849_v38 = vrot.slane %v1532_v24, %v7472_v7  ;;  %v7852_v14 = vrot.slane %v1564_v6, %v7472_v7 }
 0x24d   : > { %v2217_v37 = vpack.c.bf16 %v2201_v22, %v2201_v22  ;;  %6246 = vmatmul.mubr.msk.bf16.vlgmr.msra.gmra.mxu1 %vm2827_vm1, %v1608_v54  ;;  %v7855_v58 = vrot.slane %v2151_v0, %v7472_v7  ;;  %v1547_v10 = vcombine.low %v7830_v12, %v7833_v21  ;;  %v2200_v24 = vcombine.high %v7785_v49, %v7788_v44 }
 0x24e   : > { %v7858_v59 = vrot.slane %v2183_v36, %v7472_v7  ;;  %6257 = vmatprep.mubr.msk.bf16.mxu1 %vm7005_vm0, %v7004_v5  ;;  %v3154_v20 = vsel %vm2827_vm1, %v2214_v13, 0  ;;  %v1579_v25 = vcombine.low %v7837_v34, %v7842_v47  ;;  %v2152_v61 = vcombine.high %v2086_v1, %v2102_v3  ;;  %v2226_v3 = vpop.permute.xlu0 %2225 }
 0x24f   : > { %6264 = vmatmul.mubr.msk.bf16.vlgmr.msra.gmra.mxu0 %vm2827_vm1, %v1611_v31  ;;  %v3292_v52 = vsel %vm2827_vm1, %v2217_v37, 0  ;;  %6256 = vmatpush3.bf16.xpose.msra.mxu1 %v3154_v20  ;;  %v1597_v15 = vcombine.low %v7849_v38, %v7852_v14  ;;  %v1466_v49 = vcombine.high %v7763_v40, %v7770_v41  ;;  %v2184_v44 = vcombine.high %v2118_v42, %v2134_v39 }
 0x250   : > { %6274 = vmatpush3.bf16.xpose.msra.mxu0 %v3292_v52  ;;  %v2203_v60 = vcombine.low %v7855_v58, %v7858_v59  ;;  %6275 = vmatprep.mubr.msk.bf16.mxu0 %vm7005_vm0, %v7004_v5  ;;  %v2216_v9 = vpack.c.bf16 %v2200_v24, %v2200_v24  ;;  %v7882_v16 = vrot.slane %v2152_v61, %v7472_v7 }
 0x251   : > { %6285 = vmatprep.subr.bf16.mxu0 %v7004_v5  ;;  %6267 = vmatprep.subr.bf16.mxu1 %v7004_v5  ;;  %v7885_v18 = vrot.slane %v2184_v44, %v7472_v7  ;;  %v1613_v45 = vpack.c.bf16 %v1597_v15, %v1597_v15  ;;  %v1610_v11 = vpack.c.bf16 %v1466_v49, %v1466_v49 }
 0x252   : > { %v2219_v2 = vpack.c.bf16 %v2203_v60, %v2203_v60  ;;  %v7888_v29 = vrot.slane %v1547_v10, %v7472_v7  ;;  %v7891_v57 = vrot.slane %v1579_v25, %v7472_v7  ;;  %v3246_v41 = vsel %vm2827_vm1, %v2216_v9, 0  ;;  %v2238_v48 = vpop.permute.xlu0 %2237 }
 0x253   : > { %v2205_v63 = vcombine.low %v7882_v16, %v7885_v18  ;;  %v2202_v1 = vcombine.high %v2150_v23, %v2182_v17  ;;  %v1548_v56 = vcombine.high %v7830_v12, %v7833_v21  ;;  %v1580_v27 = vcombine.high %v7837_v34, %v7842_v47 }
 0x254   : > { %v3384_v40 = vsel %vm2827_vm1, %v2219_v2, 0  ;;  %v2267_v43 = vcombine.low %v7440_v50, %v2232_v55  ;;  %v1599_v28 = vcombine.low %v7888_v29, %v7891_v57  ;;  %v1596_v26 = vcombine.high %v7802_v30, %v7805_v19 }
 0x255   : > { %v2268_v42 = vcombine.high %v7440_v50, %v2232_v55  ;;  %v2221_v39 = vpack.c.bf16 %v2205_v63, %v2205_v63  ;;  %v2218_v46 = vpack.c.bf16 %v2202_v1, %v2202_v1  ;;  %v1562_v6 = vrot.slane %v1548_v56, %v7472_v7 }
 0x256   : > { %6258 = vmatmul.mubr.msk.bf16.vlgmr.msra.gmra.mxu1 %vm2827_vm1, %v1610_v11  ;;  %v2275_v23 = vrot.slane %v2267_v43, %v7467_v62  ;;  %v2283_v17 = vcombine.low %v2226_v3, %v2238_v48  ;;  %v2284_v8 = vcombine.high %v2226_v3, %v2238_v48  ;;  %v1615_v12 = vpack.c.bf16 %v1599_v28, %v1599_v28 }
 0x257   : > { %6276 = vmatmul.mubr.msk.bf16.vlgmr.msra.gmra.mxu0 %vm2827_vm1, %v1613_v45  ;;  %6268 = vmatpush3.bf16.xpose.msra.mxu1 %v3246_v41  ;;  %v1612_v21 = vpack.c.bf16 %v1596_v26, %v1596_v26  ;;  %v1594_v30 = vrot.slane %v1580_v27, %v7472_v7  ;;  %v2282_v50 = vrot.slane %v2268_v42, %v7467_v62  ;;  %v3476_v22 = vsel %vm2827_vm1, %v2221_v39, 0 }
 0x258   : > { %6286 = vmatpush3.bf16.xpose.msra.mxu0 %v3384_v40  ;;  %6287 = vmatprep.mubr.msk.bf16.mxu0 %vm7005_vm0, %v7004_v5  ;;  %v2291_v19 = vrot.slane %v2283_v17, %v7467_v62  ;;  %v2298_v34 = vrot.slane %v2284_v8, %v7467_v62  ;;  %v3338_v54 = vsel %vm2827_vm1, %v2218_v46, 0  ;;  %v2204_v51 = vcombine.high %v7855_v58, %v7858_v59 }
 0x259   : > { %6297 = vmatprep.subr.bf16.mxu0 %v7004_v5  ;;  %6269 = vmatprep.mubr.msk.bf16.mxu1 %vm7005_vm0, %v7004_v5  ;;  %v1598_v47 = vcombine.high %v7849_v38, %v7852_v14  ;;  %v1601_v36 = vcombine.low %v1562_v6, %v1594_v30  ;;  %v2206_v25 = vcombine.high %v7882_v16, %v7885_v18 }
 0x25a   : > { %6279 = vmatprep.subr.bf16.mxu1 %v7004_v5  ;;  %v2331_v31 = vcombine.low %v2275_v23, %v2291_v19  ;;  %v2332_v0 = vcombine.high %v2275_v23, %v2291_v19  ;;  %v2347_v37 = vcombine.low %v2282_v50, %v2298_v34  ;;  %v2348_v13 = vcombine.high %v2282_v50, %v2298_v34 }
 0x25b   : > { %v2220_v58 = vpack.c.bf16 %v2204_v51, %v2204_v51  ;;  %v1617_v14 = vpack.c.bf16 %v1601_v36, %v1601_v36  ;;  %v1614_v10 = vpack.c.bf16 %v1598_v47, %v1598_v47  ;;  %v1600_v15 = vcombine.high %v7888_v29, %v7891_v57 }
 0x25c   : > { %v2339_v59 = vrot.slane %v2331_v31, %v7472_v7  ;;  %v2346_v38 = vrot.slane %v2332_v0, %v7472_v7  ;;  %v2355_v52 = vrot.slane %v2347_v37, %v7472_v7  ;;  %v2362_v20 = vrot.slane %v2348_v13, %v7472_v7 }
 0x25d   : > { %v3430_v24 = vsel %vm2827_vm1, %v2220_v58, 0  ;;  %v2222_v2 = vpack.c.bf16 %v2206_v25, %v2206_v25  ;;  %v1616_v18 = vpack.c.bf16 %v1600_v15, %v1600_v15  ;;  %v1602_v40 = vcombine.high %v1562_v6, %v1594_v30 }
 0x25e   : > { %6270 = vmatmul.mubr.msk.bf16.vlgmr.msra.gmra.mxu1 %vm2827_vm1, %v1612_v21  ;;  %v5971_v60 = vcombine.low %v2339_v59, %v2346_v38  ;;  %v5973_v61 = vcombine.high %v2339_v59, %v2346_v38  ;;  %v5975_v49 = vcombine.low %v2355_v52, %v2362_v20  ;;  %v5977_v44 = vcombine.high %v2355_v52, %v2362_v20 }
 0x25f   : > { %6288 = vmatmul.mubr.msk.bf16.vlgmr.msra.gmra.mxu0 %vm2827_vm1, %v1615_v12  ;;  %6280 = vmatpush3.bf16.xpose.msra.mxu1 %v3338_v54  ;;  %v3522_v29 = vsel %vm2827_vm1, %v2222_v2, 0  ;;  %v1618_v3 = vpack.c.bf16 %v1602_v40, %v1602_v40 }
 0x260   : > { %6298 = vmatpush3.bf16.xpose.msra.mxu0 %v3476_v22  ;;  %6299 = vmatprep.mubr.msk.bf16.mxu0 %vm7005_vm0, %v7004_v5  ;;  %v2547_v9 = vrot.slane %v5971_v60, %v7467_v62  ;;  %v2563_v16 = vrot.slane %v5973_v61, %v7467_v62  ;;  %v2579_v45 = vrot.slane %v5975_v49, %v7467_v62 }
 0x261   : > { %6281 = vmatprep.mubr.msk.bf16.mxu1 %vm7005_vm0, %v7004_v5  ;;  %6291 = vmatprep.subr.bf16.mxu1 %v7004_v5  ;;  %v2595_v11 = vrot.slane %v5977_v44, %v7467_v62 }
 0x262   : > { %6309 = vmatprep.subr.bf16.mxu0 %v7004_v5  ;;  %v2603_v57 = vcombine.low %v2547_v9, %v2563_v16  ;;  %v2604_v42 = vcombine.high %v2547_v9, %v2563_v16 }
 0x263   : > { %v2635_v41 = vcombine.low %v2579_v45, %v2595_v11  ;;  %v2636_v39 = vcombine.high %v2579_v45, %v2595_v11 }
 0x264   : > { %v2611_v63 = vrot.slane %v2603_v57, %v7472_v7  ;;  %v2618_v46 = vrot.slane %v2604_v42, %v7472_v7 }
 0x265   : > { %v2643_v1 = vrot.slane %v2635_v41, %v7472_v7  ;;  %v2650_v48 = vrot.slane %v2636_v39, %v7472_v7 }
 0x266   : > { %6282 = vmatmul.mubr.msk.bf16.vlgmr.msra.gmra.mxu1 %vm2827_vm1, %v1614_v10 }
 0x267   : > { %6300 = vmatmul.mubr.msk.bf16.vlgmr.msra.gmra.mxu0 %vm2827_vm1, %v1617_v14  ;;  %6292 = vmatpush3.bf16.xpose.msra.mxu1 %v3430_v24  ;;  %v2667_v55 = vcombine.low %v2611_v63, %v2643_v1  ;;  %v2668_v56 = vcombine.high %v2611_v63, %v2643_v1  ;;  %v7971_v6 = vcombine.low %v2618_v46, %v2650_v48 }
 0x268   : > { %6293 = vmatprep.mubr.msk.bf16.mxu1 %vm7005_vm0, %v7004_v5  ;;  %6303 = vmatprep.subr.bf16.mxu1 %v7004_v5  ;;  %v7973_v23 = vcombine.high %v2618_v46, %v2650_v48 }
 0x269   : > { %6311 = vmatprep.mubr.msk.bf16.mxu0 %vm7005_vm0, %v7004_v5  ;;  %v2811_v27 = vpack.c.bf16 %v2667_v55, %v2667_v55  ;;  %v2812_v43 = vpack.c.bf16 %v2668_v56, %v2668_v56 }
 0x26b   : > { %v3730_v28 = vsel %vm3728_vm2, %v2811_v27, 0  ;;  %v3776_v26 = vsel %vm3728_vm2, %v2812_v43, 0 }
 0x26c   : > { %6310 = vmatpush3.bf16.msra.mxu0 %v3730_v28 }
 0x26d   : > { %6321 = vmatprep.subr.bf16.mxu0 %v7004_v5 }
 0x26e   : > { %6294 = vmatmul.mubr.msk.bf16.vlgmr.msra.gmra.mxu1 %vm2827_vm1, %v1616_v18 }
 0x26f   : > { %6304 = vmatpush3.bf16.xpose.msra.mxu1 %v3522_v29  ;;  %6305 = vmatprep.mubr.msk.bf16.mxu1 %vm7005_vm0, %v7004_v5 }
 0x270   : > { %6315 = vmatprep.subr.bf16.mxu1 %v7004_v5 }
 0x276   : > { %6306 = vmatmul.mubr.msk.bf16.vlgmr.msra.gmra.mxu1 %vm2827_vm1, %v1618_v3 }
 0x277   : > { %6317 = vmatprep.mubr.msk.bf16.mxu1 %vm7005_vm0, %v7004_v5  ;;  %6316 = vmatpush3.bf16.msra.mxu1 %v3776_v26 }
 0x278   : > { %6327 = vmatprep.subr.bf16.mxu1 %v7004_v5 }
 0x2e8   : > { %v7975_v17 = vpop.f32.mrf.mxu1 }
 0x2e9   : > { %v3565_v8 = vsel %vm3564_vm3, %v7975_v17, -inf }
 0x2ea   : > { %3566 = vmax.xlane.f32.xlu0 %v3565_v8  ;;  %v6217_v12 = vpop.f32.mrf.mxu1 }
 0x2ec   : > { %v2871_v21 = vpop.f32.mrf.mxu1 }
 0x2ee   : > { %v6218_v30 = vpop.f32.mrf.mxu1 }
 0x2f0   : > { %v7979_v50 = vpop.f32.mrf.mxu1 }
 0x2f1   : > { %v3568_v19 = vsel %vm3564_vm3, %v7979_v50, -inf }
 0x2f2   : > { %3569 = vmax.xlane.f32.xlu1 %v3568_v19  ;;  %v6223_v34 = vpop.f32.mrf.mxu1 }
 0x2f4   : > { %v2917_v22 = vpop.f32.mrf.mxu1 }
 0x2f6   : > { %v6224_v54 = vpop.f32.mrf.mxu1 }
 0x2fb   : > { %v7983_v51 = vpop.f32.mrf.mxu0 }
 0x2fc   : > { %v3577_v47 = vsel %vm3564_vm3, %v7983_v51, -inf  ;;  %v7987_v0 = vpop.f32.mrf.mxu1 }
 0x2fd   : > { %3578 = vmax.xlane.f32.xlu0 %v3577_v47  ;;  %v6241_v31 = vpop.f32.mrf.mxu0  ;;  %v3571_v60 = vsel %vm3564_vm3, %v7987_v0, -inf }
 0x2fe   : > { %v6229_v37 = vpop.f32.mrf.mxu1 }
 0x2ff   : > { %v3055_v36 = vpop.f32.mrf.mxu0 }
 0x300   : > { %v2963_v58 = vpop.f32.mrf.mxu1 }
 0x301   : > { %v6242_v13 = vpop.f32.mrf.mxu0 }
 0x302   : > { %v6230_v59 = vpop.f32.mrf.mxu1 }
 0x305   : > { %v7989_v38 = vpop.f32.mrf.mxu0  ;;  %v7991_v14 = vpop.f32.mrf.mxu1 }
 0x306   : > { %v3583_v10 = vsel %vm3564_vm3, %v7989_v38, -inf  ;;  %v3574_v57 = vsel %vm3564_vm3, %v7991_v14, -inf }
 0x307   : > { %3584 = vmax.xlane.f32.xlu1 %v3583_v10  ;;  %v6253_v52 = vpop.f32.mrf.mxu0  ;;  %v6235_v20 = vpop.f32.mrf.mxu1 }
 0x309   : > { %v3147_v24 = vpop.f32.mrf.mxu0  ;;  %v3009_v25 = vpop.f32.mrf.mxu1 }
 0x30b   : > { %3572 = vmax.xlane.f32.xlu1 %v3571_v60  ;;  %v6254_v61 = vpop.f32.mrf.mxu0  ;;  %v6236_v15 = vpop.f32.mrf.mxu1 }
 0x30d   : > { %v7997_v49 = vpop.f32.mrf.mxu1 }
 0x30e   : > { %v3580_v44 = vsel %vm3564_vm3, %v7997_v49, -inf }
 0x30f   : > { %v8001_v2 = vpop.f32.mrf.mxu0  ;;  %v6247_v9 = vpop.f32.mrf.mxu1  ;;  %3581 = vmax.xlane.f32.xlu1 %v3580_v44 }
 0x310   : > { %v3589_v16 = vsel %vm3564_vm3, %v8001_v2, -inf  ;;  %v2250_v9 = vpop.permute.xlu1 %2249 }
 0x311   : > { %3590 = vmax.xlane.f32.xlu0 %v3589_v16  ;;  %v6265_v18 = vpop.f32.mrf.mxu0  ;;  %v3101_v45 = vpop.f32.mrf.mxu1 }
 0x312   : > { %v2244_v18 = vpop.permute.xlu0 %2243 }
 0x313   : > { %v3239_v11 = vpop.f32.mrf.mxu0  ;;  %v6248_v29 = vpop.f32.mrf.mxu1 }
 0x314   : > { %v2256_v11 = vpop.permute.xlu1 %2255 }
 0x315   : > { %3575 = vmax.xlane.f32.xlu0 %v3574_v57  ;;  %v6266_v40 = vpop.f32.mrf.mxu0 }
 0x316   : > { %v8009_v63 = vpop.f32.mrf.mxu1  ;;  %v2262_v29 = vpop.permute.xlu0 %2261 }
 0x317   : > { %v8007_v41 = vpop.f32.mrf.mxu0  ;;  %v3586_v30 = vsel %vm3564_vm3, %v8009_v63, -inf }
 0x318   : > { %v3595_v1 = vsel %vm3564_vm3, %v8007_v41, -inf  ;;  %v6259_v55 = vpop.f32.mrf.mxu1  ;;  %v8045_v57 = vpop.permute.xlu1 %2233 }
 0x319   : > { %3596 = vmax.xlane.f32.xlu0 %v3595_v1  ;;  %v6277_v3 = vpop.f32.mrf.mxu0 }
 0x31a   : > { %v3193_v27 = vpop.f32.mrf.mxu1  ;;  %v8047_v40 = vpop.permute.xlu0 %2227 }
 0x31b   : > { %v3331_v56 = vpop.f32.mrf.mxu0 }
 0x31c   : > { %v6260_v28 = vpop.f32.mrf.mxu1  ;;  %v8049_v1 = vpop.permute.xlu1 %2239 }
 0x31d   : > { %v6278_v43 = vpop.f32.mrf.mxu0 }
 0x31e   : > { %v8015_v42 = vpop.f32.mrf.mxu1 }
 0x31f   : > { %v8013_v26 = vpop.f32.mrf.mxu0  ;;  %v3592_v46 = vsel %vm3564_vm3, %v8015_v42, -inf }
 0x320   : > { %v3601_v39 = vsel %vm3564_vm3, %v8013_v26, -inf  ;;  %3593 = vmax.xlane.f32.xlu1 %v3592_v46  ;;  %v6271_v8 = vpop.f32.mrf.mxu1  ;;  %v8052_v27 = vpop.permute.xlu1 %2245  ;;  %v2299_v46 = vcombine.low %v2244_v18, %v2256_v11 }
 0x321   : > { %3602 = vmax.xlane.f32.xlu0 %v3601_v39  ;;  %v6289_v48 = vpop.f32.mrf.mxu0  ;;  %v2300_v8 = vcombine.high %v2244_v18, %v2256_v11  ;;  %v2403_v18 = vcombine.low %v7454_v53, %v8045_v57  ;;  %v2419_v11 = vcombine.low %v8047_v40, %v8049_v1 }
 0x322   : > { %v3285_v21 = vpop.f32.mrf.mxu1  ;;  %v2315_v48 = vcombine.low %v2250_v9, %v2262_v29 }
 0x323   : > { %v3423_v12 = vpop.f32.mrf.mxu0  ;;  %v2307_v21 = vrot.slane %v2299_v46, %v7467_v62 }
 0x324   : > { %v6272_v34 = vpop.f32.mrf.mxu1  ;;  %v2316_v12 = vcombine.high %v2250_v9, %v2262_v29 }
 0x325   : > { %3587 = vmax.xlane.f32.xlu0 %v3586_v30  ;;  %v6290_v19 = vpop.f32.mrf.mxu0  ;;  %v2323_v30 = vrot.slane %v2315_v48, %v7467_v62  ;;  %v2314_v34 = vrot.slane %v2300_v8, %v7467_v62 }
 0x326   : > { %v8025_v54 = vpop.f32.mrf.mxu1 }
 0x327   : > { %v8023_v22 = vpop.f32.mrf.mxu0  ;;  %v3598_v47 = vsel %vm3564_vm3, %v8025_v54, -inf }
 0x328   : > { %3599 = vmax.xlane.f32.xlu1 %v3598_v47  ;;  %v6283_v36 = vpop.f32.mrf.mxu1  ;;  %v3607_v45 = vsel %vm3564_vm3, %v8023_v22, -inf  ;;  %v2330_v47 = vrot.slane %v2316_v12, %v7467_v62 }
 0x329   : > { %v6301_v31 = vpop.f32.mrf.mxu0 }
 0x32a   : > { %v3377_v13 = vpop.f32.mrf.mxu1 }
 0x32b   : > { %v3515_v37 = vpop.f32.mrf.mxu0  ;;  %v2363_v13 = vcombine.low %v2307_v21, %v2323_v30 }
 0x32c   : > { %v6284_v59 = vpop.f32.mrf.mxu1 }
 0x32d   : > { %v6302_v58 = vpop.f32.mrf.mxu0 }
 0x32e   : > { %v8029_v10 = vpop.f32.mrf.mxu1  ;;  %v2364_v58 = vcombine.high %v2307_v21, %v2323_v30 }
 0x32f   : > { %v3604_v52 = vsel %vm3564_vm3, %v8029_v10, -inf }
 0x330   : > { %v6295_v20 = vpop.f32.mrf.mxu1  ;;  %3605 = vmax.xlane.f32.xlu0 %v3604_v52  ;;  %v2379_v52 = vcombine.low %v2314_v34, %v2330_v47 }
 0x332   : > { %v3469_v24 = vpop.f32.mrf.mxu1 }
 0x333   : > { %v2371_v24 = vrot.slane %v2363_v13, %v7472_v7 }
 0x334   : > { %v6296_v25 = vpop.f32.mrf.mxu1 }
 0x335   : > { %v2814_v25 = vpack.c.bf16 %v7973_v23, %v7973_v23 }
 0x336   : > { %v8033_v60 = vpop.f32.mrf.mxu1 }
 0x337   : > { %v3610_v16 = vsel %vm3564_vm3, %v8033_v60, -inf }
 0x338   : > { %v6307_v61 = vpop.f32.mrf.mxu1 }
 0x339   : > { %2257 = vrot.lane.b32.xlu1 %v7454_v53, %s7011_s10 }
 0x33a   : > { %v3561_v15 = vpop.f32.mrf.mxu1 }
 0x33b   : > { %v2387_v15 = vrot.slane %v2379_v52, %v7472_v7 }
 0x33c   : > { %v6308_v44 = vpop.f32.mrf.mxu1 }
 0x33d   : > { %2263 = vrot.lane.b32.xlu1 %v7454_v53, %s7012_s18 }
 0x346   : > { %2251 = vrot.lane.b32.xlu0 %v7454_v53, %s7010_s25 }
 0x361   : > { %3611 = vmax.xlane.f32.xlu1 %v3610_v16 }
 0x365   : > { %3608 = vmax.xlane.f32.xlu0 %v3607_v45  ;;  %v2404_v45 = vcombine.high %v7454_v53, %v8045_v57  ;;  %v2411_v53 = vrot.slane %v2403_v18, %v7467_v62  ;;  %v2427_v57 = vrot.slane %v2419_v11, %v7467_v62 }
 0x367   : > { %v2418_v48 = vrot.slane %v2404_v45, %v7467_v62 }
 0x373   : > { %v3567_v3 = vpop.xlane.xlu0 %3566 }
 0x374   : > { %v3613_v55 = vsub.f32 %v7975_v17, %v3567_v3  ;;  %v2813_v17 = vpack.c.bf16 %v7971_v6, %v7971_v6  ;;  %v2380_v6 = vcombine.high %v2314_v34, %v2330_v47  ;;  %v2420_v3 = vcombine.high %v8047_v40, %v8049_v1 }
 0x376   : > { %v3629_v56 = vmul.f32 1.442695, %v3613_v55  ;;  %v3822_v59 = vsel %vm3728_vm2, %v2813_v17, 0  ;;  %v2394_v44 = vrot.slane %v2380_v6, %v7472_v7  ;;  %v2434_v8 = vrot.slane %v2420_v3, %v7467_v62 }
 0x377   : > { %v2467_v17 = vcombine.low %v2411_v53, %v2427_v57 }
 0x378   : > { %6659 = vpow2.f32 %v3629_v56  ;;  %v3868_v56 = vsel %vm3728_vm2, %v2814_v25, 0 }
 0x379   : > { %v2475_v52 = vrot.slane %v2467_v17, %v7472_v7 }
 0x37b   : > { %v3570_v43 = vpop.xlane.xlu1 %3569 }
 0x37c   : > { %v3614_v28 = vsub.f32 %v7979_v50, %v3570_v43  ;;  %v5976_v43 = vcombine.low %v2387_v15, %v2394_v44 }
 0x37e   : > { %v3631_v39 = vmul.f32 1.442695, %v3614_v28  ;;  %v5978_v28 = vcombine.high %v2387_v15, %v2394_v44  ;;  %v2586_v12 = vrot.slane %v5976_v43, %v7467_v62 }
 0x380   : > { %6661 = vpow2.f32 %v3631_v39  ;;  %v2602_v21 = vrot.slane %v5978_v28, %v7467_v62 }
 0x382   : > { %v2651_v13 = vcombine.low %v2586_v12, %v2602_v21 }
 0x384   : > { %v2659_v15 = vrot.slane %v2651_v13, %v7472_v7 }
 0x385   : > { %v6660_v19 = vpop.eup %6659 }
 0x386   : > { %v3579_v31 = vpop.xlane.xlu0 %3578  ;;  %v3661_v50 = vsel %vm3564_vm3, %v6660_v19, 0.0  ;;  %v3709_v36 = vpack.c.bf16 %v6660_v19, %v6660_v19  ;;  %v2468_v19 = vcombine.high %v2411_v53, %v2427_v57 }
 0x387   : > { %v3617_v37 = vsub.f32 %v7983_v51, %v3579_v31  ;;  %3662 = vadd.xlane.f32.xlu0 %v3661_v50  ;;  %v2378_v51 = vrot.slane %v2364_v58, %v7472_v7  ;;  %v2483_v31 = vcombine.low %v2418_v48, %v2434_v8  ;;  %v2484_v50 = vcombine.high %v2418_v48, %v2434_v8 }
 0x388   : > { %6312 = vmatmul.mubr.msk.bf16.vlgmr.msra.gmra.mxu0 %vm3564_vm3, %v3709_v36 }
 0x389   : > { %v3637_v20 = vmul.f32 1.442695, %v3617_v37  ;;  %6322 = vmatpush3.bf16.msra.mxu0 %v3822_v59  ;;  %6323 = vmatprep.mubr.msk.bf16.mxu0 %vm7005_vm0, %v7004_v5  ;;  %v5972_v29 = vcombine.low %v2371_v24, %v2378_v51  ;;  %v5974_v23 = vcombine.high %v2371_v24, %v2378_v51  ;;  %v2498_v24 = vrot.slane %v2484_v50, %v7472_v7 }
 0x38a   : > { %6333 = vmatprep.subr.bf16.mxu0 %v7004_v5 }
 0x38b   : > { %6663 = vpow2.f32 %v3637_v20  ;;  %v2554_v1 = vrot.slane %v5972_v29, %v7467_v62  ;;  %v2570_v46 = vrot.slane %v5974_v23, %v7467_v62  ;;  %v2491_v20 = vrot.slane %v2483_v31, %v7472_v7 }
 0x38d   : > { %v6662_v61 = vpop.eup %6661  ;;  %v2619_v37 = vcombine.low %v2554_v1, %v2570_v46  ;;  %v5983_v45 = vcombine.low %v2491_v20, %v2498_v24  ;;  %v5985_v11 = vcombine.high %v2491_v20, %v2498_v24 }
 0x38e   : > { %v3664_v9 = vsel %vm3564_vm3, %v6662_v61, 0.0  ;;  %v3710_v16 = vpack.c.bf16 %v6662_v61, %v6662_v61 }
 0x38f   : > { %3665 = vadd.xlane.f32.xlu0 %v3664_v9  ;;  %v2627_v61 = vrot.slane %v2619_v37, %v7472_v7  ;;  %v8123_v53 = vrot.slane %v5983_v45, %v7467_v62  ;;  %v8126_v57 = vrot.slane %v5985_v11, %v7467_v62 }
 0x390   : > { %v3585_v55 = vpop.xlane.xlu1 %3584  ;;  %6318 = vmatmul.mubr.msk.bf16.vlgmr.msra.gmra.mxu1 %vm3564_vm3, %v3710_v16 }
 0x391   : > { %v3619_v39 = vsub.f32 %v7989_v38, %v3585_v55  ;;  %6328 = vmatpush3.bf16.msra.mxu1 %v3868_v56  ;;  %6329 = vmatprep.mubr.msk.bf16.mxu1 %vm7005_vm0, %v7004_v5  ;;  %v2671_v3 = vcombine.low %v2627_v61, %v2659_v15  ;;  %v2652_v55 = vcombine.high %v2586_v12, %v2602_v21 }
 0x392   : > { %6339 = vmatprep.subr.bf16.mxu1 %v7004_v5  ;;  %v2771_v21 = vcombine.low %v8123_v53, %v8126_v57  ;;  %v2672_v50 = vcombine.high %v2627_v61, %v2659_v15  ;;  %v2772_v15 = vcombine.high %v8123_v53, %v8126_v57 }
 0x393   : > { %v3641_v40 = vmul.f32 1.442695, %v3619_v39 }
 0x394   : > { %v3573_v38 = vpop.xlane.xlu1 %3572  ;;  %v2816_v24 = vpack.c.bf16 %v2672_v50, %v2672_v50 }
 0x395   : > { %6665 = vpow2.f32 %v3641_v40  ;;  %v3615_v30 = vsub.f32 %v7987_v0, %v3573_v38  ;;  %v2482_v0 = vrot.slane %v2468_v19, %v7472_v7 }
 0x396   : > { %v3960_v45 = vsel %vm3728_vm2, %v2816_v24, 0 }
 0x397   : > { %v3633_v34 = vmul.f32 1.442695, %v3615_v30  ;;  %v5979_v9 = vcombine.low %v2475_v52, %v2482_v0  ;;  %v5981_v18 = vcombine.high %v2475_v52, %v2482_v0 }
 0x398   : > { %v8098_v47 = vpop.eup %6663  ;;  %v3582_v59 = vpop.xlane.xlu1 %3581 }
 0x399   : > { %6667 = vpow2.f32 %v3633_v34  ;;  %v3673_v36 = vsel %vm3564_vm3, %v8098_v47, 0.0  ;;  %v3618_v25 = vsub.f32 %v7997_v49, %v3582_v59  ;;  %v8114_v43 = vrot.slane %v5979_v9, %v7467_v62 }
 0x39a   : > { %v3591_v58 = vpop.xlane.xlu0 %3590  ;;  %3674 = vadd.xlane.f32.xlu1 %v3673_v36  ;;  %v8120_v39 = vrot.slane %v5981_v18, %v7467_v62  ;;  %v3713_v20 = vpack.c.bf16 %v8098_v47, %v8098_v47 }
 0x39b   : > { %v3621_v6 = vsub.f32 %v8001_v2, %v3591_v58  ;;  %v2620_v2 = vcombine.high %v2554_v1, %v2570_v46  ;;  %v3639_v23 = vmul.f32 1.442695, %v3618_v25  ;;  %v2815_v46 = vpack.c.bf16 %v2671_v3, %v2671_v3 }
 0x39c   : > { %v2739_v12 = vcombine.low %v8114_v43, %v8120_v39  ;;  %v2779_v58 = vrot.slane %v2771_v21, %v7472_v7  ;;  %v2740_v61 = vcombine.high %v8114_v43, %v8120_v39  ;;  %v2786_v3 = vrot.slane %v2772_v15, %v7472_v7 }
 0x39d   : > { %v3645_v51 = vmul.f32 1.442695, %v3621_v6  ;;  %v2634_v40 = vrot.slane %v2620_v2, %v7472_v7  ;;  %v3914_v30 = vsel %vm3728_vm2, %v2815_v46, 0 }
 0x39e   : > { %v3576_v44 = vpop.xlane.xlu0 %3575  ;;  %v2747_v13 = vrot.slane %v2739_v12, %v7472_v7 }
 0x39f   : > { %6669 = vpow2.f32 %v3645_v51  ;;  %v3616_v16 = vsub.f32 %v7991_v14, %v3576_v44 }
 0x3a0   : > { %v2803_v25 = vcombine.low %v2747_v13, %v2779_v58  ;;  %v2804_v46 = vcombine.high %v2747_v13, %v2779_v58 }
 0x3a1   : > { %v3635_v29 = vmul.f32 1.442695, %v3616_v16 }
 0x3a2   : > { %v8111_v56 = vpop.eup %6665  ;;  %v3597_v49 = vpop.xlane.xlu0 %3596  ;;  %v2819_v43 = vpack.c.bf16 %v2803_v25, %v2803_v25 }
 0x3a3   : > { %6671 = vpow2.f32 %v3635_v29  ;;  %v3623_v28 = vsub.f32 %v8007_v41, %v3597_v49  ;;  %v3679_v14 = vsel %vm3564_vm3, %v8111_v56, 0.0  ;;  %v2666_v41 = vrot.slane %v2652_v55, %v7472_v7 }
 0x3a4   : > { %3680 = vadd.xlane.f32.xlu1 %v3679_v14  ;;  %6673 = vpow2.f32 %v3639_v23  ;;  %v2754_v23 = vrot.slane %v2740_v61, %v7472_v7 }
 0x3a5   : > { %v3649_v1 = vmul.f32 1.442695, %v3623_v28  ;;  %v2673_v17 = vcombine.low %v2634_v40, %v2666_v41  ;;  %v2674_v2 = vcombine.high %v2634_v40, %v2666_v41  ;;  %v3715_v28 = vpack.c.bf16 %v8111_v56, %v8111_v56 }
 0x3a6   : > { %v6668_v48 = vpop.eup %6667  ;;  %v2805_v53 = vcombine.low %v2754_v23, %v2786_v3  ;;  %v4098_v40 = vsel %vm3728_vm2, %v2819_v43, 0 }
 0x3a7   : > { %6675 = vpow2.f32 %v3649_v1  ;;  %v3667_v8 = vsel %vm3564_vm3, %v6668_v48, 0.0  ;;  %v3711_v38 = vpack.c.bf16 %v6668_v48, %v6668_v48  ;;  %v2817_v0 = vpack.c.bf16 %v2673_v17, %v2673_v17 }
 0x3a8   : > { %3668 = vadd.xlane.f32.xlu1 %v3667_v8  ;;  %v2818_v14 = vpack.c.bf16 %v2674_v2, %v2674_v2  ;;  %v2821_v12 = vpack.c.bf16 %v2805_v53, %v2805_v53 }
 0x3a9   : > { %6324 = vmatmul.mubr.msk.bf16.vlgmr.msra.gmra.mxu0 %vm3564_vm3, %v3711_v38  ;;  %v3594_v34 = vpop.xlane.xlu1 %3593 }
 0x3aa   : > { %v3603_v19 = vpop.xlane.xlu0 %3602  ;;  %6334 = vmatpush3.bf16.msra.mxu0 %v3914_v30  ;;  %6335 = vmatprep.mubr.msk.bf16.mxu0 %vm7005_vm0, %v7004_v5  ;;  %v3622_v37 = vsub.f32 %v8015_v42, %v3594_v34  ;;  %v4052_v41 = vsel %vm3728_vm2, %v2818_v14, 0  ;;  %v4190_v58 = vsel %vm3728_vm2, %v2821_v12, 0 }
 0x3ab   : > { %v3625_v31 = vsub.f32 %v8013_v26, %v3603_v19  ;;  %6345 = vmatprep.subr.bf16.mxu0 %v7004_v5  ;;  %v2820_v19 = vpack.c.bf16 %v2804_v46, %v2804_v46 }
 0x3ac   : > { %v8141_v36 = vpop.eup %6669  ;;  %v3647_v42 = vmul.f32 1.442695, %v3622_v37 }
 0x3ad   : > { %v3653_v59 = vmul.f32 1.442695, %v3625_v31  ;;  %v3685_v52 = vsel %vm3564_vm3, %v8141_v36, 0.0 }
 0x3ae   : > { %v3588_v6 = vpop.xlane.xlu0 %3587  ;;  %3686 = vadd.xlane.f32.xlu1 %v3685_v52 }
 0x3af   : > { %6677 = vpow2.f32 %v3653_v59  ;;  %v3620_v26 = vsub.f32 %v8009_v63, %v3588_v6  ;;  %v4006_v63 = vsel %vm3728_vm2, %v2817_v0, 0 }
 0x3b0   : > { %v6672_v51 = vpop.eup %6671 }
 0x3b1   : > { %v3643_v44 = vmul.f32 1.442695, %v3620_v26  ;;  %v3670_v9 = vsel %vm3564_vm3, %v6672_v51, 0.0  ;;  %v3712_v16 = vpack.c.bf16 %v6672_v51, %v6672_v51  ;;  %6336 = vmatmul.mubr.msk.bf16.vlgmr.msra.gmra.mxu0 %vm3564_vm3, %v3713_v20  ;;  %v6674_v18 = vpop.eup %6673  ;;  %v3600_v47 = vpop.xlane.xlu1 %3599  ;;  %v2806_v20 = vcombine.high %v2754_v23, %v2786_v3 }
 0x3b2   : > { %3671 = vadd.xlane.f32.xlu0 %v3670_v9  ;;  %6346 = vmatpush3.bf16.msra.mxu0 %v4006_v63  ;;  %v3624_v11 = vsub.f32 %v8025_v54, %v3600_v47  ;;  %v3676_v54 = vsel %vm3564_vm3, %v6674_v18, 0.0  ;;  %v3714_v57 = vpack.c.bf16 %v6674_v18, %v6674_v18 }
 0x3b3   : > { %6679 = vpow2.f32 %v3643_v44  ;;  %6330 = vmatmul.mubr.msk.bf16.vlgmr.msra.gmra.mxu1 %vm3564_vm3, %v3712_v16  ;;  %6347 = vmatprep.mubr.msk.bf16.mxu0 %vm7005_vm0, %v7004_v5 }
 0x3b4   : > { %v8163_v29 = vpop.eup %6675  ;;  %6681 = vpow2.f32 %v3647_v42  ;;  %6340 = vmatpush3.bf16.msra.mxu1 %v3960_v45  ;;  %6341 = vmatprep.mubr.msk.bf16.mxu1 %vm7005_vm0, %v7004_v5  ;;  %v3651_v49 = vmul.f32 1.442695, %v3624_v11  ;;  %v2822_v45 = vpack.c.bf16 %v2806_v20, %v2806_v20 }
 0x3b5   : > { %v3691_v55 = vsel %vm3564_vm3, %v8163_v29, 0.0  ;;  %6351 = vmatprep.subr.bf16.mxu1 %v7004_v5  ;;  %6357 = vmatprep.subr.bf16.mxu0 %v7004_v5  ;;  %v2258_v39 = vpop.permute.xlu1 %2257  ;;  %v3719_v47 = vpack.c.bf16 %v8163_v29, %v8163_v29 }
 0x3b6   : > { %3692 = vadd.xlane.f32.xlu1 %v3691_v55  ;;  %3677 = vadd.xlane.f32.xlu0 %v3676_v54  ;;  %6683 = vpow2.f32 %v3651_v49  ;;  %v2435_v8 = vcombine.low %v8052_v27, %v2258_v39  ;;  %v2436_v38 = vcombine.high %v8052_v27, %v2258_v39  ;;  %v3717_v27 = vpack.c.bf16 %v8141_v36, %v8141_v36 }
 0x3b7   : > { %v4144_v36 = vsel %vm3728_vm2, %v2820_v19, 0  ;;  %v4236_v29 = vsel %vm3728_vm2, %v2822_v45, 0 }
 0x3b8   : > { %v2443_v37 = vrot.slane %v2435_v8, %v7467_v62  ;;  %v2450_v13 = vrot.slane %v2436_v38, %v7467_v62 }
 0x3b9   : > { %6348 = vmatmul.mubr.msk.bf16.vlgmr.msra.gmra.mxu0 %vm3564_vm3, %v3715_v28  ;;  %v3606_v1 = vpop.xlane.xlu0 %3605 }
 0x3ba   : > { %6358 = vmatpush3.bf16.msra.mxu0 %v4098_v40  ;;  %6359 = vmatprep.mubr.msk.bf16.mxu0 %vm7005_vm0, %v7004_v5  ;;  %v3626_v56 = vsub.f32 %v8029_v10, %v3606_v1  ;;  %v2264_v10 = vpop.permute.xlu1 %2263 }
 0x3bb   : > { %6342 = vmatmul.mubr.msk.bf16.vlgmr.msra.gmra.mxu1 %vm3564_vm3, %v3714_v57  ;;  %6369 = vmatprep.subr.bf16.mxu0 %v7004_v5 }
 0x3bc   : > { %v8184_v48 = vpop.eup %6677  ;;  %6352 = vmatpush3.bf16.msra.mxu1 %v4052_v41  ;;  %6353 = vmatprep.mubr.msk.bf16.mxu1 %vm7005_vm0, %v7004_v5  ;;  %v3655_v21 = vmul.f32 1.442695, %v3626_v56 }
 0x3bd   : > { %v3697_v30 = vsel %vm3564_vm3, %v8184_v48, 0.0  ;;  %6363 = vmatprep.subr.bf16.mxu1 %v7004_v5  ;;  %v2252_v17 = vpop.permute.xlu0 %2251 }
 0x3be   : > { %3698 = vadd.xlane.f32.xlu1 %v3697_v30  ;;  %6685 = vpow2.f32 %v3655_v21  ;;  %v2451_v34 = vcombine.low %v2252_v17, %v2264_v10  ;;  %v2452_v31 = vcombine.high %v2252_v17, %v2264_v10 }
 0x3c0   : > { %v6680_v50 = vpop.eup %6679  ;;  %v2459_v52 = vrot.slane %v2451_v34, %v7467_v62  ;;  %v2466_v0 = vrot.slane %v2452_v31, %v7467_v62 }
 0x3c1   : > { %v6682_v59 = vpop.eup %6681  ;;  %v3682_v6 = vsel %vm3564_vm3, %v6680_v50, 0.0  ;;  %v3716_v26 = vpack.c.bf16 %v6680_v50, %v6680_v50  ;;  %6360 = vmatmul.mubr.msk.bf16.vlgmr.msra.gmra.mxu0 %vm3564_vm3, %v3717_v27  ;;  %v3721_v50 = vpack.c.bf16 %v8184_v48, %v8184_v48 }
 0x3c2   : > { %3683 = vadd.xlane.f32.xlu0 %v3682_v6  ;;  %6370 = vmatpush3.bf16.msra.mxu0 %v4190_v58  ;;  %v2499_v24 = vcombine.low %v2443_v37, %v2459_v52  ;;  %v2500_v51 = vcombine.high %v2443_v37, %v2459_v52  ;;  %v2515_v42 = vcombine.low %v2450_v13, %v2466_v0  ;;  %v3688_v15 = vsel %vm3564_vm3, %v6682_v59, 0.0 }
 0x3c3   : > { %v2516_v25 = vcombine.high %v2450_v13, %v2466_v0  ;;  %6354 = vmatmul.mubr.msk.bf16.vlgmr.msra.gmra.mxu1 %vm3564_vm3, %v3716_v26  ;;  %v6684_v61 = vpop.eup %6683  ;;  %6371 = vmatprep.mubr.msk.bf16.mxu0 %vm7005_vm0, %v7004_v5  ;;  %v3718_v55 = vpack.c.bf16 %v6682_v59, %v6682_v59 }
 0x3c4   : > { %6364 = vmatpush3.bf16.msra.mxu1 %v4144_v36  ;;  %6365 = vmatprep.mubr.msk.bf16.mxu1 %vm7005_vm0, %v7004_v5  ;;  %v2507_v44 = vrot.slane %v2499_v24, %v7472_v7  ;;  %v2514_v9 = vrot.slane %v2500_v51, %v7472_v7  ;;  %v2523_v16 = vrot.slane %v2515_v42, %v7472_v7  ;;  %v3694_v18 = vsel %vm3564_vm3, %v6684_v61, 0.0 }
 0x3c5   : > { %v2530_v63 = vrot.slane %v2516_v25, %v7472_v7  ;;  %6375 = vmatprep.subr.bf16.mxu1 %v7004_v5  ;;  %6381 = vmatprep.subr.bf16.mxu0 %v7004_v5  ;;  %v3720_v30 = vpack.c.bf16 %v6684_v61, %v6684_v61 }
 0x3c6   : > { %3689 = vadd.xlane.f32.xlu0 %v3688_v15  ;;  %v5980_v11 = vcombine.low %v2507_v44, %v2514_v9  ;;  %v5982_v2 = vcombine.high %v2507_v44, %v2514_v9 }
 0x3c7   : > { %v5984_v23 = vcombine.low %v2523_v16, %v2530_v63  ;;  %v5986_v3 = vcombine.high %v2523_v16, %v2530_v63 }
 0x3c8   : > { %v2690_v54 = vrot.slane %v5980_v11, %v7467_v62  ;;  %v2706_v49 = vrot.slane %v5982_v2, %v7467_v62 }
 0x3c9   : > { %v2722_v43 = vrot.slane %v5984_v23, %v7467_v62  ;;  %v2738_v28 = vrot.slane %v5986_v3, %v7467_v62  ;;  %6372 = vmatmul.mubr.msk.bf16.vlgmr.msra.gmra.mxu0 %vm3564_vm3, %v3719_v47 }
 0x3ca   : > { %3695 = vadd.xlane.f32.xlu0 %v3694_v18  ;;  %6383 = vmatprep.mubr.msk.bf16.mxu0 %vm7005_vm0, %v7004_v5  ;;  %v2755_v14 = vcombine.low %v2690_v54, %v2706_v49  ;;  %v2756_v53 = vcombine.high %v2690_v54, %v2706_v49 }
 0x3cb   : > { %6366 = vmatmul.mubr.msk.bf16.vlgmr.msra.gmra.mxu1 %vm3564_vm3, %v3718_v55  ;;  %v2787_v39 = vcombine.low %v2722_v43, %v2738_v28  ;;  %v2788_v57 = vcombine.high %v2722_v43, %v2738_v28  ;;  %v6686_v40 = vpop.eup %6685 }
 0x3cc   : > { %6376 = vmatpush3.bf16.msra.mxu1 %v4236_v29  ;;  %6377 = vmatprep.mubr.msk.bf16.mxu1 %vm7005_vm0, %v7004_v5  ;;  %v3700_v1 = vsel %vm3564_vm3, %v6686_v40, 0.0  ;;  %v2763_v46 = vrot.slane %v2755_v14, %v7472_v7  ;;  %v2770_v56 = vrot.slane %v2756_v53, %v7472_v7  ;;  %v3722_v58 = vpack.c.bf16 %v6686_v40, %v6686_v40 }
 0x3cd   : > { %6387 = vmatprep.subr.bf16.mxu1 %v7004_v5  ;;  %v2795_v41 = vrot.slane %v2787_v39, %v7472_v7  ;;  %v2802_v8 = vrot.slane %v2788_v57, %v7472_v7 }
 0x3ce   : > { %3701 = vadd.xlane.f32.xlu0 %v3700_v1 }
 0x3cf   : > { %v2807_v38 = vcombine.low %v2763_v46, %v2795_v41  ;;  %v2808_v12 = vcombine.high %v2763_v46, %v2795_v41  ;;  %v2809_v21 = vcombine.low %v2770_v56, %v2802_v8  ;;  %v2810_v27 = vcombine.high %v2770_v56, %v2802_v8 }
 0x3d1   : > { %v2823_v10 = vpack.c.bf16 %v2807_v38, %v2807_v38  ;;  %v2824_v17 = vpack.c.bf16 %v2808_v12, %v2808_v12  ;;  %v2825_v31 = vpack.c.bf16 %v2809_v21, %v2809_v21  ;;  %v2826_v13 = vpack.c.bf16 %v2810_v27, %v2810_v27 }
 0x3d3   : > { %6378 = vmatmul.mubr.msk.bf16.vlgmr.msra.gmra.mxu1 %vm3564_vm3, %v3720_v30  ;;  %v4282_v19 = vsel %vm3728_vm2, %v2823_v10, 0  ;;  %v4328_v34 = vsel %vm3728_vm2, %v2824_v17, 0  ;;  %v4374_v37 = vsel %vm3728_vm2, %v2825_v31, 0  ;;  %v4420_v48 = vsel %vm3728_vm2, %v2826_v13, 0 }
 0x3d4   : > { %6382 = vmatpush3.bf16.msra.mxu0 %v4282_v19  ;;  %6388 = vmatpush3.bf16.msra.mxu1 %v4328_v34 }
 0x3d5   : > { %6389 = vmatprep.mubr.msk.bf16.mxu1 %vm7005_vm0, %v7004_v5  ;;  %6393 = vmatprep.subr.bf16.mxu0 %v7004_v5 }
 0x3d6   : > { %6399 = vmatprep.subr.bf16.mxu1 %v7004_v5 }
 0x3d7   : > { %6384 = vmatmul.mubr.msk.bf16.vlgmr.msra.gmra.mxu0 %vm3564_vm3, %v3721_v50 }
 0x3d8   : > { %6394 = vmatpush3.bf16.msra.mxu0 %v4374_v37  ;;  %6395 = vmatprep.mubr.msk.bf16.mxu0 %vm7005_vm0, %v7004_v5 }
 0x3d9   : > { %6405 = vmatprep.subr.bf16.mxu0 %v7004_v5 }
 0x3db   : > { %6390 = vmatmul.mubr.msk.bf16.vlgmr.msra.gmra.mxu1 %vm3564_vm3, %v3722_v58 }
 0x3dc   : > { %6400 = vmatpush3.bf16.msra.mxu1 %v4420_v48  ;;  %6401 = vmatprep.mubr.msk.bf16.mxu1 %vm7005_vm0, %v7004_v5 }
 0x3ea   : > { %v3612_v59 = vpop.xlane.xlu1 %3611 }
 0x3eb   : > { %v3628_v52 = vsub.f32 %v8033_v60, %v3612_v59 }
 0x3ed   : > { %v3659_v0 = vmul.f32 1.442695, %v3628_v52 }
 0x3ee   : > { %v3609_v6 = vpop.xlane.xlu0 %3608 }
 0x3ef   : > { %6687 = vpow2.f32 %v3659_v0  ;;  %v3627_v26 = vsub.f32 %v8023_v22, %v3609_v6 }
 0x3f1   : > { %v3657_v36 = vmul.f32 1.442695, %v3627_v26 }
 0x3f3   : > { %6689 = vpow2.f32 %v3657_v36 }
 0x3fc   : > { %v6688_v20 = vpop.eup %6687 }
 0x3fd   : > { %v3706_v24 = vsel %vm3564_vm3, %v6688_v20, 0.0  ;;  %v3724_v51 = vpack.c.bf16 %v6688_v20, %v6688_v20 }
 0x3fe   : > { %3707 = vadd.xlane.f32.xlu0 %v3706_v24 }
 0x3ff   : > { %6402 = vmatmul.mubr.msk.bf16.vlgmr.msra.gmra.mxu1 %vm3564_vm3, %v3724_v51 }
 0x400   : > { %v6690_v42 = vpop.eup %6689  ;;  %5411 = vmatprep.mubr.bf16.mxu1 %v7003_v4 }
 0x401   : > { %v3703_v25 = vsel %vm3564_vm3, %v6690_v42, 0.0  ;;  %v3723_v60 = vpack.c.bf16 %v6690_v42, %v6690_v42 }
 0x402   : > { %3704 = vadd.xlane.f32.xlu1 %v3703_v25 }
 0x403   : > { %6396 = vmatmul.mubr.msk.bf16.vlgmr.msra.gmra.mxu0 %vm3564_vm3, %v3723_v60 }
 0x404   : > { %6421 = vmatprep.mubr.msk.bf16.mxu0 %vm7005_vm0, %v7004_v5 }
 0x410   : > { %v3663_v4 = vpop.xlane.xlu0 %3662 }
 0x418   : > { %v3666_v11 = vpop.xlane.xlu0 %3665 }
 0x423   : > { %v3675_v18 = vpop.xlane.xlu1 %3674 }
 0x42d   : > { %v3681_v45 = vpop.xlane.xlu1 %3680 }
 0x431   : > { %v3669_v2 = vpop.xlane.xlu1 %3668 }
 0x432   : > { %6691 = vrcp.f32 %v3669_v2 }
 0x433   : > { %6693 = vrcp.f32 %v3663_v4 }
 0x434   : > { %6695 = vrcp.f32 %v3675_v18 }
 0x435   : > { %6697 = vrcp.f32 %v3666_v11 }
 0x437   : > { %v3687_v0 = vpop.xlane.xlu1 %3686 }
 0x43b   : > { %v3672_v23 = vpop.xlane.xlu0 %3671 }
 0x43c   : > { %6699 = vrcp.f32 %v3672_v23 }
 0x43d   : > { %6701 = vrcp.f32 %v3681_v45 }
 0x43f   : > { %v3678_v49 = vpop.xlane.xlu0 %3677  ;;  %v6692_v43 = vpop.eup %6691 }
 0x440   : > { %v6694_v29 = vpop.eup %6693  ;;  %6703 = vrcp.f32 %v3678_v49  ;;  %v3693_v18 = vpop.xlane.xlu1 %3692 }
 0x441   : > { %v6696_v39 = vpop.eup %6695 }
 0x442   : > { %v6698_v57 = vpop.eup %6697 }
 0x448   : > { %v3766_v22 = vpop.f32.mrf.mxu0 }
 0x449   : > { %v4478_v1 = vmul.f32 %v6694_v29, %v3766_v22  ;;  %v6700_v41 = vpop.eup %6699 }
 0x44a   : > { %v6313_v61 = vpop.f32.mrf.mxu0  ;;  %v6702_v52 = vpop.eup %6701 }
 0x44b   : > { %v3684_v40 = vpop.xlane.xlu0 %3683 }
 0x44c   : > { %v3769_v15 = vpop.f32.mrf.mxu0  ;;  %6705 = vrcp.f32 %v3684_v40 }
 0x44d   : > { %6707 = vrcp.f32 %v3693_v18  ;;  %v6704_v29 = vpop.eup %6703 }
 0x44e   : > { %v6314_v44 = vpop.f32.mrf.mxu0  ;;  %6709 = vrcp.f32 %v3687_v0 }
 0x44f   : > { %v3690_v25 = vpop.xlane.xlu0 %3689 }
 0x450   : > { %v3812_v9 = vpop.f32.mrf.mxu1  ;;  %6711 = vrcp.f32 %v3690_v25 }
 0x451   : > { %v4479_v38 = vmul.f32 %v6698_v57, %v3812_v9 }
 0x452   : > { %v6319_v16 = vpop.f32.mrf.mxu1 }
 0x454   : > { %v3815_v63 = vpop.f32.mrf.mxu1 }
 0x456   : > { %v6320_v47 = vpop.f32.mrf.mxu1 }
 0x459   : > { %v6706_v40 = vpop.eup %6705 }
 0x469   : > { %v3858_v3 = vpop.f32.mrf.mxu0 }
 0x46a   : > { %v4480_v14 = vmul.f32 %v6692_v43, %v3858_v3 }
 0x46b   : > { %v6325_v55 = vpop.f32.mrf.mxu0 }
 0x46c   : > { %v4494_v12 = vcombine.low %v4478_v1, %v4480_v14  ;;  %v4495_v21 = vcombine.high %v4478_v1, %v4480_v14  ;;  %v3696_v14 = vpop.xlane.xlu0 %3695 }
 0x46d   : > { %v3861_v54 = vpop.f32.mrf.mxu0  ;;  %6713 = vrcp.f32 %v3696_v14 }
 0x46e   : > { %v4502_v50 = vrot.slane %v4494_v12, %v7467_v62  ;;  %v4509_v37 = vrot.slane %v4495_v21, %v7467_v62 }
 0x46f   : > { %v6326_v28 = vpop.f32.mrf.mxu0 }
 0x471   : > { %v3950_v53 = vpop.f32.mrf.mxu0 }
 0x472   : > { %v8262_v46 = vmul.f32 %v6696_v39, %v3950_v53 }
 0x473   : > { %v3904_v56 = vpop.f32.mrf.mxu1  ;;  %v6337_v8 = vpop.f32.mrf.mxu0 }
 0x474   : > { %v4481_v30 = vmul.f32 %v6700_v41, %v3904_v56 }
 0x475   : > { %v6331_v10 = vpop.f32.mrf.mxu1  ;;  %v3953_v17 = vpop.f32.mrf.mxu0 }
 0x476   : > { %v4510_v19 = vcombine.low %v4479_v38, %v4481_v30  ;;  %v4511_v34 = vcombine.high %v4479_v38, %v4481_v30 }
 0x477   : > { %v3907_v31 = vpop.f32.mrf.mxu1  ;;  %v6338_v27 = vpop.f32.mrf.mxu0 }
 0x478   : > { %v4518_v13 = vrot.slane %v4510_v19, %v7467_v62  ;;  %v4525_v58 = vrot.slane %v4511_v34, %v7467_v62 }
 0x479   : > { %v6332_v48 = vpop.f32.mrf.mxu1  ;;  %v4042_v59 = vpop.f32.mrf.mxu0 }
 0x47a   : > { %v4558_v6 = vcombine.low %v4502_v50, %v4518_v13  ;;  %v4559_v26 = vcombine.high %v4502_v50, %v4518_v13  ;;  %v4574_v36 = vcombine.low %v4509_v37, %v4525_v58  ;;  %v4575_v20 = vcombine.high %v4509_v37, %v4525_v58 }
 0x47b   : > { %v3996_v24 = vpop.f32.mrf.mxu1  ;;  %v4484_v51 = vmul.f32 %v6702_v52, %v4042_v59  ;;  %v6349_v42 = vpop.f32.mrf.mxu0 }
 0x47c   : > { %v4566_v60 = vrot.slane %v4558_v6, %v7472_v7  ;;  %v4573_v22 = vrot.slane %v4559_v26, %v7472_v7  ;;  %v4582_v61 = vrot.slane %v4574_v36, %v7472_v7  ;;  %v4589_v15 = vrot.slane %v4575_v20, %v7472_v7 }
 0x47d   : > { %v4526_v44 = vcombine.low %v8262_v46, %v4484_v51  ;;  %v4527_v9 = vcombine.high %v8262_v46, %v4484_v51  ;;  %v6343_v16 = vpop.f32.mrf.mxu1  ;;  %v4045_v63 = vpop.f32.mrf.mxu0  ;;  %v4483_v1 = vmul.f32 %v6704_v29, %v3996_v24 }
 0x47e   : > { %v6019_v47 = vcombine.low %v4566_v60, %v4573_v22  ;;  %v6021_v45 = vcombine.high %v4566_v60, %v4573_v22  ;;  %v6023_v4 = vcombine.low %v4582_v61, %v4589_v15  ;;  %v6025_v11 = vcombine.high %v4582_v61, %v4589_v15  ;;  %v6708_v16 = vpop.eup %6707 }
 0x47f   : > { %v3999_v2 = vpop.f32.mrf.mxu1  ;;  %v6350_v23 = vpop.f32.mrf.mxu0  ;;  %v4534_v48 = vrot.slane %v4526_v44, %v7467_v62  ;;  %v4541_v59 = vrot.slane %v4527_v9, %v7467_v62 }
 0x480   : > { %v4774_v3 = vrot.slane %v6019_v47, %v7467_v62  ;;  %v4790_v55 = vrot.slane %v6021_v45, %v7467_v62  ;;  %v4806_v54 = vrot.slane %v6023_v4, %v7467_v62  ;;  %v4822_v49 = vrot.slane %v6025_v11, %v7467_v62  ;;  %v6710_v4 = vpop.eup %6709 }
 0x481   : > { %v6344_v43 = vpop.f32.mrf.mxu1  ;;  %v4134_v28 = vpop.f32.mrf.mxu0 }
 0x482   : > { %v4831_v39 = vcombine.high %v4774_v3, %v4790_v55  ;;  %v4863_v53 = vcombine.high %v4806_v54, %v4822_v49  ;;  %v4830_v57 = vcombine.low %v4774_v3, %v4790_v55  ;;  %v4862_v56 = vcombine.low %v4806_v54, %v4822_v49  ;;  %v6712_v3 = vpop.eup %6711 }
 0x483   : > { %v4088_v46 = vpop.f32.mrf.mxu1  ;;  %v6361_v41 = vpop.f32.mrf.mxu0  ;;  %v4486_v29 = vmul.f32 %v6710_v4, %v4134_v28 }
 0x484   : > { %v4485_v8 = vmul.f32 %v6706_v40, %v4088_v46  ;;  %v8279_v38 = vrot.slane %v4831_v39, %v7472_v7  ;;  %v8282_v12 = vrot.slane %v4863_v53, %v7472_v7  ;;  %v8285_v21 = vrot.slane %v4830_v57, %v7472_v7  ;;  %v6714_v39 = vpop.eup %6713 }
 0x485   : > { %v6355_v30 = vpop.f32.mrf.mxu1  ;;  %v4137_v10 = vpop.f32.mrf.mxu0  ;;  %v8288_v17 = vrot.slane %v4862_v56, %v7472_v7 }
 0x486   : > { %v4542_v19 = vcombine.low %v4483_v1, %v4485_v8  ;;  %v4543_v34 = vcombine.high %v4483_v1, %v4485_v8  ;;  %v4896_v31 = vcombine.low %v8279_v38, %v8282_v12  ;;  %v4897_v27 = vcombine.high %v8279_v38, %v8282_v12 }
 0x487   : > { %v4091_v50 = vpop.f32.mrf.mxu1  ;;  %v6362_v37 = vpop.f32.mrf.mxu0  ;;  %v4894_v13 = vcombine.low %v8285_v21, %v8288_v17  ;;  %v4895_v58 = vcombine.high %v8285_v21, %v8288_v17 }
 0x488   : > { %v4550_v52 = vrot.slane %v4542_v19, %v7467_v62  ;;  %v4557_v0 = vrot.slane %v4543_v34, %v7467_v62 }
 0x489   : > { %v6356_v6 = vpop.f32.mrf.mxu1  ;;  %v4226_v26 = vpop.f32.mrf.mxu0 }
 0x48a   : > { %v4590_v36 = vcombine.low %v4534_v48, %v4550_v52  ;;  %v4591_v20 = vcombine.high %v4534_v48, %v4550_v52  ;;  %v4606_v24 = vcombine.low %v4541_v59, %v4557_v0  ;;  %v4607_v51 = vcombine.high %v4541_v59, %v4557_v0 }
 0x48b   : > { %v4180_v42 = vpop.f32.mrf.mxu1  ;;  %v6373_v25 = vpop.f32.mrf.mxu0  ;;  %v4488_v11 = vmul.f32 %v6708_v16, %v4226_v26 }
 0x48c   : > { %v4598_v60 = vrot.slane %v4590_v36, %v7472_v7  ;;  %v4605_v22 = vrot.slane %v4591_v20, %v7472_v7  ;;  %v4614_v61 = vrot.slane %v4606_v24, %v7472_v7  ;;  %v4621_v15 = vrot.slane %v4607_v51, %v7472_v7 }
 0x48d   : > { %v6367_v44 = vpop.f32.mrf.mxu1  ;;  %v4229_v9 = vpop.f32.mrf.mxu0  ;;  %v4487_v46 = vmul.f32 %v6712_v3, %v4180_v42  ;;  %v4630_v41 = vcombine.low %v4486_v29, %v4488_v11  ;;  %v4631_v56 = vcombine.high %v4486_v29, %v4488_v11 }
 0x48e   : > { %v6020_v63 = vcombine.low %v4598_v60, %v4605_v22  ;;  %v6022_v18 = vcombine.high %v4598_v60, %v4605_v22  ;;  %v6024_v47 = vcombine.low %v4614_v61, %v4621_v15  ;;  %v6026_v45 = vcombine.high %v4614_v61, %v4621_v15 }
 0x48f   : > { %v4183_v2 = vpop.f32.mrf.mxu1  ;;  %v6374_v23 = vpop.f32.mrf.mxu0  ;;  %v4638_v20 = vrot.slane %v4630_v41, %v7467_v62  ;;  %v4645_v24 = vrot.slane %v4631_v56, %v7467_v62 }
 0x490   : > { %v4781_v55 = vrot.slane %v6020_v63, %v7467_v62  ;;  %v4797_v54 = vrot.slane %v6022_v18, %v7467_v62  ;;  %v4813_v49 = vrot.slane %v6024_v47, %v7467_v62  ;;  %v4829_v43 = vrot.slane %v6026_v45, %v7467_v62 }
 0x491   : > { %v6368_v14 = vpop.f32.mrf.mxu1 }
 0x492   : > { %v4846_v53 = vcombine.low %v4781_v55, %v4797_v54  ;;  %v4878_v57 = vcombine.low %v4813_v49, %v4829_v43  ;;  %v4847_v40 = vcombine.high %v4781_v55, %v4797_v54  ;;  %v4879_v1 = vcombine.high %v4813_v49, %v4829_v43 }
 0x493   : > { %v4272_v8 = vpop.f32.mrf.mxu1 }
 0x494   : > { %v4489_v30 = vmul.f32 %v6714_v39, %v4272_v8  ;;  %v8311_v10 = vrot.slane %v4846_v53, %v7472_v7  ;;  %v8314_v19 = vrot.slane %v4878_v57, %v7472_v7  ;;  %v8317_v34 = vrot.slane %v4847_v40, %v7472_v7 }
 0x495   : > { %v6379_v28 = vpop.f32.mrf.mxu1  ;;  %v8320_v50 = vrot.slane %v4879_v1, %v7472_v7 }
 0x496   : > { %v4646_v37 = vcombine.low %v4487_v46, %v4489_v30  ;;  %v4647_v48 = vcombine.high %v4487_v46, %v4489_v30  ;;  %v4899_v59 = vcombine.high %v8311_v10, %v8314_v19  ;;  %v4898_v52 = vcombine.low %v8311_v10, %v8314_v19  ;;  %v6611_v46 = vld [vmem:[%s7276_s16 + $0x38] sm:$0xff]   ;;  %v6612_v28 = vld [vmem:[%s7276_s16 + $0x30] sm:$0xff]  }
 0x497   : > { %v4275_v0 = vpop.f32.mrf.mxu1  ;;  %v8326_v6 = vpop.f32.mrf.mxu0  ;;  %v4901_v26 = vcombine.high %v8317_v34, %v8320_v50  ;;  %v4900_v36 = vcombine.low %v8317_v34, %v8320_v50  ;;  %6406 = vmatpush3.bf16.msra.mxu0 %v6611_v46 }
 0x498   : > { %v4654_v51 = vrot.slane %v4646_v37, %v7467_v62  ;;  %v4661_v42 = vrot.slane %v4647_v48, %v7467_v62  ;;  %6407 = vmatprep.subr.bf16.mxu0 %v7004_v5 }
 0x499   : > { %v6380_v25 = vpop.f32.mrf.mxu1  ;;  %v6385_v60 = vpop.f32.mrf.mxu0 }
 0x49a   : > { %v4694_v22 = vcombine.low %v4638_v20, %v4654_v51  ;;  %v4695_v61 = vcombine.high %v4638_v20, %v4654_v51  ;;  %v4710_v15 = vcombine.low %v4645_v24, %v4661_v42  ;;  %v4711_v44 = vcombine.high %v4645_v24, %v4661_v42  ;;  %v6613_v42 = vld [vmem:[%s7276_s16 + $0x28] sm:$0xff]   ;;  %v3702_v25 = vpop.xlane.xlu0 %3701  ;;  %v6614_v60 = vld [vmem:[%s7276_s16 + $0x20] sm:$0xff]  }
 0x49b   : > { %v8336_v9 = vpop.f32.mrf.mxu1  ;;  %v4321_v16 = vpop.f32.mrf.mxu0  ;;  %6408 = vmatpush3.bf16.msra.mxu0 %v6612_v28 }
 0x49c   : > { %v4702_v63 = vrot.slane %v4694_v22, %v7472_v7  ;;  %v4709_v18 = vrot.slane %v4695_v61, %v7472_v7  ;;  %v4718_v47 = vrot.slane %v4710_v15, %v7472_v7  ;;  %v4725_v45 = vrot.slane %v4711_v44, %v7472_v7  ;;  %6409 = vmatprep.subr.bf16.mxu0 %v7004_v5  ;;  %v6615_v61 = vld [vmem:[%s7276_s16 + $0x18] sm:$0xff]   ;;  %v6616_v44 = vld [vmem:[%s7276_s16 + $0x10] sm:$0xff]  }
 0x49d   : > { %v6391_v4 = vpop.f32.mrf.mxu1  ;;  %v6386_v11 = vpop.f32.mrf.mxu0 }
 0x49e   : > { %v6027_v2 = vcombine.low %v4702_v63, %v4709_v18  ;;  %v6029_v23 = vcombine.high %v4702_v63, %v4709_v18  ;;  %v6031_v3 = vcombine.low %v4718_v47, %v4725_v45  ;;  %v6033_v55 = vcombine.high %v4718_v47, %v4725_v45  ;;  %v3708_v22 = vpop.xlane.xlu0 %3707 }
 0x49f   : > { %v4367_v54 = vpop.f32.mrf.mxu1  ;;  %6410 = vmatpush3.bf16.msra.mxu0 %v6613_v42  ;;  %6715 = vrcp.f32 %v3708_v22 }
 0x4a0   : > { %v4910_v49 = vrot.slane %v6027_v2, %v7467_v62  ;;  %v4926_v43 = vrot.slane %v6029_v23, %v7467_v62  ;;  %v4942_v29 = vrot.slane %v6031_v3, %v7467_v62  ;;  %v4958_v14 = vrot.slane %v6033_v55, %v7467_v62  ;;  %6411 = vmatprep.subr.bf16.mxu0 %v7004_v5 }
 0x4a1   : > { %v6392_v39 = vpop.f32.mrf.mxu1  ;;  %6717 = vrcp.f32 %v3702_v25  ;;  %v6617_v25 = vld [vmem:[%s7276_s16 + $0x8] sm:$0xff]  }
 0x4a2   : > { %v4967_v53 = vcombine.high %v4910_v49, %v4926_v43  ;;  %v4999_v57 = vcombine.high %v4942_v29, %v4958_v14  ;;  %v4966_v40 = vcombine.low %v4910_v49, %v4926_v43  ;;  %v4998_v1 = vcombine.low %v4942_v29, %v4958_v14 }
 0x4a3   : > { %6412 = vmatpush3.bf16.msra.mxu0 %v6614_v60 }
 0x4a4   : > { %v4981_v41 = vrot.slane %v4967_v53, %v7472_v7  ;;  %v5013_v56 = vrot.slane %v4999_v57, %v7472_v7  ;;  %v8350_v8 = vrot.slane %v4966_v40, %v7472_v7  ;;  %v8353_v30 = vrot.slane %v4998_v1, %v7472_v7  ;;  %6413 = vmatprep.subr.bf16.mxu0 %v7004_v5 }
 0x4a6   : > { %v5032_v37 = vcombine.low %v4981_v41, %v5013_v56  ;;  %v5031_v48 = vcombine.high %v8350_v8, %v8353_v30  ;;  %v5030_v0 = vcombine.low %v8350_v8, %v8353_v30  ;;  %v5033_v51 = vcombine.high %v4981_v41, %v5013_v56 }
 0x4a7   : > { %6414 = vmatpush3.bf16.msra.mxu0 %v6615_v61 }
 0x4a8   : > { %v6549_v20 = vpack.i.bf16 %v5032_v37, %v4896_v31  ;;  %v6544_v24 = vpack.i.bf16 %v5031_v48, %v4895_v58  ;;  %v6554_v31 = vpack.i.bf16 %v5033_v51, %v4897_v27  ;;  %v3699_v58 = vpop.xlane.xlu1 %3698  ;;  %6415 = vmatprep.subr.bf16.mxu0 %v7004_v5 }
 0x4a9   : > { %6719 = vrcp.f32 %v3699_v58 }
 0x4aa   : > { %6550 = vrot.lane.b32.xlu0 %v6549_v20, %s7011_s10  ;;  %6545 = vrot.lane.b32.xlu1 %v6544_v24, %s7012_s18 }
 0x4ab   : > { %6416 = vmatpush3.bf16.msra.mxu0 %v6616_v44 }
 0x4ac   : > { %v3705_v15 = vpop.xlane.xlu1 %3704  ;;  %6417 = vmatprep.subr.bf16.mxu0 %v7004_v5  ;;  %v6716_v38 = vpop.eup %6715 }
 0x4ad   : > { %6721 = vrcp.f32 %v3705_v15 }
 0x4ae   : > { %6555 = vrot.lane.b32.xlu1 %v6554_v31, %s7010_s25  ;;  %v6718_v16 = vpop.eup %6717 }
 0x4af   : > { %v4491_v47 = vmul.f32 %v6718_v16, %v8336_v9  ;;  %6418 = vmatpush3.bf16.msra.mxu0 %v6617_v25 }
 0x4b0   : > { %6419 = vmatprep.subr.bf16.mxu0 %v7004_v5 }
 0x4b6   : > { %v6720_v18 = vpop.eup %6719 }
 0x4b7   : > { %v4490_v2 = vmul.f32 %v6720_v18, %v8326_v6 }
 0x4ba   : > { %v6722_v45 = vpop.eup %6721 }
 0x4bf   : > { %v4456_v12 = vpop.f32.mrf.mxu1 }
 0x4c0   : > { %v4493_v27 = vmul.f32 %v6716_v38, %v4456_v12  ;;  %v6618_v12 = vld [vmem:[%s7276_s16] sm:$0xff]  }
 0x4c1   : > { %v6403_v63 = vpop.f32.mrf.mxu1  ;;  %6420 = vmatpush3.bf16.msra.mxu0 %v6618_v12  ;;  %v6621_v12 = vld [vmem:[%s7282_s20 + $0x74] ss:$8 sps:$4 sm:$0xff]  }
 0x4c2   : > { %v4678_v23 = vcombine.low %v4491_v47, %v4493_v27  ;;  %v4679_v3 = vcombine.high %v4491_v47, %v4493_v27  ;;  %5379 = vmatprep.subr.bf16.mxu1 %v6621_v12 }
 0x4c3   : > { %v4410_v4 = vpop.f32.mrf.mxu0  ;;  %v4459_v11 = vpop.f32.mrf.mxu1 }
 0x4c4   : > { %v4492_v55 = vmul.f32 %v6722_v45, %v4410_v4  ;;  %v4686_v39 = vrot.slane %v4678_v23, %v7467_v62  ;;  %v4693_v53 = vrot.slane %v4679_v3, %v7467_v62 }
 0x4c5   : > { %v6397_v54 = vpop.f32.mrf.mxu0  ;;  %v6404_v49 = vpop.f32.mrf.mxu1 }
 0x4c6   : > { %v4662_v43 = vcombine.low %v4490_v2, %v4492_v55  ;;  %v4663_v29 = vcombine.high %v4490_v2, %v4492_v55 }
 0x4c7   : > { %v4413_v14 = vpop.f32.mrf.mxu0 }
 0x4c8   : > { %v4670_v9 = vrot.slane %v4662_v43, %v7467_v62  ;;  %v4677_v57 = vrot.slane %v4663_v29, %v7467_v62 }
 0x4c9   : > { %v6398_v40 = vpop.f32.mrf.mxu0 }
 0x4ca   : > { %v4726_v1 = vcombine.low %v4670_v9, %v4686_v39  ;;  %v4727_v6 = vcombine.high %v4670_v9, %v4686_v39  ;;  %v4742_v46 = vcombine.low %v4677_v57, %v4693_v53  ;;  %v4743_v41 = vcombine.high %v4677_v57, %v4693_v53 }
 0x4cc   : > { %v4734_v56 = vrot.slane %v4726_v1, %v7472_v7  ;;  %v4741_v28 = vrot.slane %v4727_v6, %v7472_v7  ;;  %v4750_v37 = vrot.slane %v4742_v46, %v7472_v7  ;;  %v4757_v48 = vrot.slane %v4743_v41, %v7472_v7 }
 0x4ce   : > { %v6028_v20 = vcombine.low %v4734_v56, %v4741_v28  ;;  %v6030_v24 = vcombine.high %v4734_v56, %v4741_v28  ;;  %v6032_v51 = vcombine.low %v4750_v37, %v4757_v48  ;;  %v6034_v42 = vcombine.high %v4750_v37, %v4757_v48 }
 0x4d0   : > { %v4917_v31 = vrot.slane %v6028_v20, %v7467_v62  ;;  %v4933_v60 = vrot.slane %v6030_v24, %v7467_v62  ;;  %v4949_v58 = vrot.slane %v6032_v51, %v7467_v62  ;;  %v4965_v22 = vrot.slane %v6034_v42, %v7467_v62  ;;  %v6035_v24 = vld [vmem:[%s8596_s13] ss:$0 sm:$0xff] }
 0x4d2   : > { %v4982_v61 = vcombine.low %v4917_v31, %v4933_v60  ;;  %v5014_v15 = vcombine.low %v4949_v58, %v4965_v22  ;;  %v4983_v44 = vcombine.high %v4917_v31, %v4933_v60  ;;  %v5015_v38 = vcombine.high %v4949_v58, %v4965_v22  ;;  %v6731_v31 = vld [vmem:[#allocation2] sm:$0xff] }
 0x4d4   : > { %v4990_v27 = vrot.slane %v4982_v61, %v7472_v7  ;;  %v5022_v16 = vrot.slane %v5014_v15, %v7472_v7  ;;  %v4997_v63 = vrot.slane %v4983_v44, %v7472_v7  ;;  %v5029_v18 = vrot.slane %v5015_v38, %v7472_v7  ;;  %v6732_v15 = vld [vmem:[#allocation2 + $0x8] sm:$0xff]  ;;  %v6619_v38 = vld [vmem:[%s7282_s20 + $0x70] ss:$8 sps:$4 sm:$0xff]  }
 0x4d5   : > { %5380 = vmatpush1.bf16.msra.mxu1 %v6619_v38 }
 0x4d6   : > { %v5035_v47 = vcombine.high %v4990_v27, %v5022_v16  ;;  %v5034_v45 = vcombine.low %v4990_v27, %v5022_v16  ;;  %v5037_v4 = vcombine.high %v4997_v63, %v5029_v18  ;;  %v5036_v11 = vcombine.low %v4997_v63, %v5029_v18 }
 0x4d8   : > { %v6564_v62 = vpack.i.bf16 %v5035_v47, %v4899_v59  ;;  %v6559_v5 = vpack.i.bf16 %v5034_v45, %v4898_v52  ;;  %v6574_v7 = vpack.i.bf16 %v5037_v4, %v4901_v26  ;;  %v6569_v2 = vpack.i.bf16 %v5036_v11, %v4900_v36  ;;  %v6622_v4 = vld [vmem:[%s7282_s20 + $0x60] ss:$8 sps:$4 sm:$0xff]   ;;  %v6624_v11 = vld [vmem:[%s7282_s20 + $0x64] ss:$8 sps:$4 sm:$0xff]  }
 0x4d9   : > { %5381 = vmatprep.subr.bf16.mxu1 %v6624_v11 }
 0x4da   : > { %6565 = vrot.lane.b32.xlu0 %v6564_v62, %s7006_s7  ;;  %6560 = vrot.lane.b32.xlu1 %v6559_v5, %s7009_s24 }
 0x4db   : > { %5382 = vmatpush1.bf16.msra.mxu1 %v6622_v4 }
 0x4de   : > { %6575 = vrot.lane.b32.xlu0 %v6574_v7, %s7007_s9  ;;  %6570 = vrot.lane.b32.xlu1 %v6569_v2, %s7008_s27  ;;  %v6625_v7 = vld [vmem:[%s7282_s20 + $0x50] ss:$8 sps:$4 sm:$0xff]   ;;  %v6627_v2 = vld [vmem:[%s7282_s20 + $0x54] ss:$8 sps:$4 sm:$0xff]  }
 0x4df   : > { %5383 = vmatprep.subr.bf16.mxu1 %v6627_v2 }
 0x4e0   : > { %5384 = vmatpush1.bf16.msra.mxu1 %v6625_v7 }
 0x51c   : > { %v6546_v10 = vpop.permute.xlu1 %6545  ;;  %v6551_v19 = vpop.permute.xlu0 %6550 }
 0x51d   : > { %v6548_v59 = vunpack.i.h.bf16 %v6546_v10  ;;  %v6547_v52 = vunpack.i.l.bf16 %v6546_v10  ;;  %v6553_v3 = vunpack.i.h.bf16 %v6551_v19  ;;  %v6552_v55 = vunpack.i.l.bf16 %v6551_v19  ;;  %v6630_v10 = vld [vmem:[%s7282_s20 + $0x44] ss:$8 sps:$4 sm:$0xff]   ;;  %v6628_v19 = vld [vmem:[%s7282_s20 + $0x40] ss:$8 sps:$4 sm:$0xff]  }
 0x51e   : > { %5385 = vmatprep.subr.bf16.mxu1 %v6630_v10 }
 0x51f   : > { %v5095_v26 = vsel %vm2827_vm1, %v5030_v0, %v6548_v59  ;;  %v5094_v34 = vsel %vm2827_vm1, %v4894_v13, %v6547_v52  ;;  %v6633_v59 = vld [vmem:[%s7282_s20 + $0x34] ss:$8 sps:$4 sm:$0xff]   ;;  %5386 = vmatpush1.bf16.msra.mxu1 %v6628_v19  ;;  %v6631_v52 = vld [vmem:[%s7282_s20 + $0x30] ss:$8 sps:$4 sm:$0xff]  }
 0x520   : > { %v6556_v23 = vpop.permute.xlu1 %6555  ;;  %v5097_v43 = vsel %vm5096_vm4, %v5094_v34, %v6552_v55  ;;  %v5098_v29 = vsel %vm5096_vm4, %v5095_v26, %v6553_v3  ;;  %5387 = vmatprep.subr.bf16.mxu1 %v6633_v59  ;;  %v6634_v3 = vld [vmem:[%s7282_s20 + $0x20] ss:$8 sps:$4 sm:$0xff]   ;;  %v6639_v55 = vld [vmem:[%s7282_s20 + $0x14] ss:$8 sps:$4 sm:$0xff]   ;;  %v6637_v26 = vld [vmem:[%s7282_s20 + $0x10] ss:$8 sps:$4 sm:$0xff]  }
 0x521   : > { %v6558_v50 = vunpack.i.h.bf16 %v6556_v23  ;;  %v6557_v36 = vunpack.i.l.bf16 %v6556_v23  ;;  %v6636_v23 = vld [vmem:[%s7282_s20 + $0x24] ss:$8 sps:$4 sm:$0xff]  }
 0x522   : > { %v6642_v34 = vld [vmem:[%s7282_s20 + $0x4] ss:$8 sps:$4 sm:$0xff]  }
 0x523   : > { %v5100_v53 = vsel %vm5099_vm5, %v5097_v43, %v6557_v36  ;;  %v5101_v9 = vsel %vm5099_vm5, %v5098_v29, %v6558_v50  ;;  %5388 = vmatpush1.bf16.msra.mxu1 %v6631_v52  ;;  %v6640_v50 = vld [vmem:[%s7282_s20] ss:$8 sps:$4 sm:$0xff]   ;;  %v6643_v36 = vld [vmem:[%s7284_s12 + $0x78] sm:$0xff]   ;;  %v6646_v43 = vld [vmem:[%s7284_s12 + $0x30] sm:$0xff]  }
 0x524   : > { %5389 = vmatprep.subr.bf16.mxu1 %v6636_v23  ;;  %6171 = vmatprep.subr.bf16.mxu0 %v6643_v36  ;;  %v6647_v29 = vld [vmem:[%s7284_s12 + $0x68] sm:$0xff]  }
 0x527   : > { %5390 = vmatpush1.bf16.msra.mxu1 %v6634_v3 }
 0x528   : > { %5391 = vmatprep.subr.bf16.mxu1 %v6639_v55 }
 0x52b   : > { %5392 = vmatpush1.bf16.msra.mxu1 %v6637_v26 }
 0x52c   : > { %5393 = vmatprep.subr.bf16.mxu1 %v6642_v34 }
 0x52f   : > { %5394 = vmatpush1.bf16.msra.mxu1 %v6640_v50 }
 0x54c   : > { %v6566_v54 = vpop.permute.xlu0 %6565  ;;  %v6561_v49 = vpop.permute.xlu1 %6560 }
 0x54d   : > { %v6563_v14 = vunpack.i.h.bf16 %v6561_v49  ;;  %v6562_v39 = vunpack.i.l.bf16 %v6561_v49  ;;  %v6568_v8 = vunpack.i.h.bf16 %v6566_v54  ;;  %v6567_v30 = vunpack.i.l.bf16 %v6566_v54  ;;  %v6644_v54 = vld [vmem:[%s7284_s12 + $0x38] sm:$0xff]   ;;  %v6645_v49 = vld [vmem:[%s7284_s12 + $0x70] sm:$0xff]  }
 0x54f   : > { %v5103_v0 = vsel %vm5102_vm6, %v5100_v53, %v6562_v39  ;;  %v5104_v57 = vsel %vm5102_vm6, %v5101_v9, %v6563_v14  ;;  %v6648_v14 = vld [vmem:[%s7284_s12 + $0x28] sm:$0xff]   ;;  %v6649_v39 = vld [vmem:[%s7284_s12 + $0x60] sm:$0xff]   ;;  %v6651_v9 = vld [vmem:[%s7284_s12 + $0x58] sm:$0xff]  }
 0x550   : > { %v6576_v21 = vpop.permute.xlu0 %6575  ;;  %v6571_v17 = vpop.permute.xlu1 %6570  ;;  %v5106_v46 = vsel %vm5105_vm7, %v5103_v0, %v6567_v30  ;;  %v5107_v41 = vsel %vm5105_vm7, %v5104_v57, %v6568_v8  ;;  %v6650_v53 = vld [vmem:[%s7284_s12 + $0x20] sm:$0xff]   ;;  %v6652_v8 = vld [vmem:[%s7284_s12 + $0x18] sm:$0xff]  }
 0x551   : > { %v6578_v13 = vunpack.i.h.bf16 %v6576_v21  ;;  %v6577_v40 = vunpack.i.l.bf16 %v6576_v21  ;;  %v6573_v1 = vunpack.i.h.bf16 %v6571_v17  ;;  %v6572_v6 = vunpack.i.l.bf16 %v6571_v17 }
 0x553   : > { %v5109_v56 = vsel %vm5108_vm8, %v5106_v46, %v6572_v6  ;;  %v5110_v28 = vsel %vm5108_vm8, %v5107_v41, %v6573_v1  ;;  %v6044_v6 = vld [vmem:[%s8598_s19] ss:$0 sm:$0xff] }
 0x554   : > { %v5112_v37 = vsel %vm5111_vm9, %v5109_v56, %v6577_v40  ;;  %v5113_v48 = vsel %vm5111_vm9, %v5110_v28, %v6578_v13  ;;  %v6045_v28 = vld [vmem:[%s727_s14] ss:$0 sm:$0xff] }
 0x555   : > { %v5114_v20 = vpack.c.bf16 %v5113_v48, %v5112_v37 }
 0x557   : > { %6422 = vmatmul.mubr.bf16.vlgmr.msra.gmra.mxu0 %v5114_v20 }
 0x558   : > { %6172 = vmatpush3.bf16.msra.mxu0 %v6644_v54 }
 0x559   : > { %6173 = vmatprep.subr.bf16.mxu0 %v6645_v49 }
 0x55c   : > { %6174 = vmatpush3.bf16.msra.mxu0 %v6646_v43 }
 0x55d   : > { %6175 = vmatprep.subr.bf16.mxu0 %v6647_v29 }
 0x560   : > { %6176 = vmatpush3.bf16.msra.mxu0 %v6648_v14 }
 0x561   : > { %6177 = vmatprep.subr.bf16.mxu0 %v6649_v39 }
 0x564   : > { %6178 = vmatpush3.bf16.msra.mxu0 %v6650_v53 }
 0x565   : > { %6179 = vmatprep.subr.bf16.mxu0 %v6651_v9 }
 0x568   : > { %6180 = vmatpush3.bf16.msra.mxu0 %v6652_v8 }
 0x617   : > { %v5220_v51 = vpop.f32.mrf.mxu0 }
 0x618   : > { %v5221_v42 = vadd.f32 %v6035_v24, %v5220_v51  ;;  %v6653_v51 = vld [vmem:[%s7284_s12 + $0x50] sm:$0xff]  }
 0x619   : > { %v6423_v25 = vpop.f32.mrf.mxu0  ;;  %6181 = vmatprep.subr.bf16.mxu0 %v6653_v51 }
 0x61a   : > { %v5227_v60 = vadd.f32 %v6731_v31, %v5221_v42  ;;  %v6654_v42 = vld [vmem:[%s7284_s12 + $0x10] sm:$0xff]   ;;  %v6655_v25 = vld [vmem:[%s7284_s12 + $0x48] sm:$0xff]  }
 0x61b   : > { %v5223_v58 = vpop.f32.mrf.mxu0  ;;  %6182 = vmatpush3.bf16.msra.mxu0 %v6654_v42  ;;  %v6656_v31 = vld [vmem:[%s7284_s12 + $0x8] sm:$0xff]  }
 0x61c   : > { %v5224_v22 = vadd.f32 %v6035_v24, %v5223_v58  ;;  %5229 = vadd.xlane.f32.xlu1 %v5227_v60  ;;  %6183 = vmatprep.subr.bf16.mxu0 %v6655_v25  ;;  %v6658_v58 = vld [vmem:[%s7284_s12] sm:$0xff]  }
 0x61d   : > { %v6424_v61 = vpop.f32.mrf.mxu0 }
 0x61e   : > { %v5228_v44 = vadd.f32 %v6732_v15, %v5224_v22  ;;  %v5287_v22 = vld [vmem:[%s7310_s1] sm:$0x3] }
 0x61f   : > { %6184 = vmatpush3.bf16.msra.mxu0 %v6656_v31  ;;  %v5296_v15 = vrot.slane %v5287_v22, %v794_v33 }
 0x620   : > { %5231 = vadd.xlane.f32.xlu0 %v5228_v44 }
 0x6a5   : > { %v5230_v27 = vpop.xlane.xlu1 %5229 }
 0x6a6   : > { %v5234_v16 = vmul.f32 0.0078125, %v5230_v27 }
 0x6a8   : > { %v8434_v63 = vsub.f32 %v5227_v60, %v5234_v16  ;;  %v6657_v60 = vld [vmem:[%s7284_s12 + $0x40] sm:$0xff]  }
 0x6a9   : > { %v5232_v18 = vpop.xlane.xlu0 %5231  ;;  %6185 = vmatprep.subr.bf16.mxu0 %v6657_v60 }
 0x6aa   : > { %v5235_v47 = vmul.f32 0.0078125, %v5232_v18  ;;  %v5238_v45 = vmul.f32 %v8434_v63, %v8434_v63  ;;  %6186 = vmatpush3.bf16.msra.mxu0 %v6658_v58 }
 0x6ac   : > { %v8438_v62 = vsub.f32 %v5228_v44, %v5235_v47  ;;  %5240 = vadd.xlane.f32.xlu0 %v5238_v45  ;;  %v5292_v44 = vrot.slane %v5287_v22, %v790_v35 }
 0x6ae   : > { %v5239_v5 = vmul.f32 %v8438_v62, %v8438_v62 }
 0x6b0   : > { %5242 = vadd.xlane.f32.xlu1 %v5239_v5 }
 0x735   : > { %v5241_v30 = vpop.xlane.xlu0 %5240 }
 0x736   : > { %v5244_v0 = vmul.f32 0.0078125, %v5241_v30 }
 0x738   : > { %v5246_v57 = vadd.f32 1e-05, %v5244_v0 }
 0x739   : > { %v5243_v21 = vpop.xlane.xlu1 %5242 }
 0x73a   : > { %6723 = vrsqrt.f32 %v5246_v57  ;;  %v5245_v17 = vmul.f32 0.0078125, %v5243_v21  ;;  %v6079_v57 = vld [vmem:[%s737_s29] ss:$0 sm:$0xff] }
 0x73c   : > { %v5247_v13 = vadd.f32 1e-05, %v5245_v17  ;;  %v6080_v17 = vld [vmem:[%s740_s2] ss:$0 sm:$0xff] }
 0x73e   : > { %6725 = vrsqrt.f32 %v5247_v13 }
 0x747   : > { %v6724_v40 = vpop.eup %6723 }
 0x748   : > { %v5250_v1 = vmul.f32 %v6724_v40, %v8434_v63 }
 0x74a   : > { %v5259_v56 = vmul.f32 %v6044_v6, %v5250_v1 }
 0x74b   : > { %v6726_v46 = vpop.eup %6725 }
 0x74c   : > { %v5251_v41 = vmul.f32 %v6726_v46, %v8438_v62  ;;  %v5268_v48 = vadd.f32 %v6045_v28, %v5259_v56 }
 0x74e   : > { %v5260_v37 = vmul.f32 %v6044_v6, %v5251_v41 }
 0x750   : > { %v5269_v20 = vadd.f32 %v6045_v28, %v5260_v37 }
 0x752   : > { %v5270_v24 = vpack.c.bf16 %v5269_v20, %v5268_v48 }
 0x754   : > { %5412 = vmatmul.mubr.bf16.vlgmr.msra.gmra.mxu1 %v5270_v24 }
 0x814   : > { %v5413_v61 = vpop.f32.mrf.mxu1 }
 0x815   : > { %v5414_v63 = vadd.f32 %v5413_v61, %v5292_v44 }
 0x816   : > { %v5415_v38 = vpop.f32.mrf.mxu1 }
 0x817   : > { %v5416_v27 = vadd.f32 %v5415_v38, %v5296_v15  ;;  %v5422_v4 = vmax.f32 %v5414_v63, 0.0 }
 0x818   : > { %v5417_v12 = vpop.f32.mrf.mxu1 }
 0x819   : > { %v5418_v16 = vadd.f32 %v5417_v12, %v5292_v44  ;;  %v5423_v62 = vmax.f32 %v5416_v27, 0.0 }
 0x81a   : > { %v5419_v18 = vpop.f32.mrf.mxu1 }
 0x81b   : > { %v5420_v47 = vadd.f32 %v5419_v18, %v5296_v15  ;;  %v5424_v45 = vmax.f32 %v5418_v16, 0.0 }
 0x81d   : > { %v5425_v5 = vmax.f32 %v5420_v47, 0.0  ;;  %v5426_v7 = vpack.c.bf16 %v5424_v45, %v5422_v4 }
 0x81f   : > { %v5427_v11 = vpack.c.bf16 %v5425_v5, %v5423_v62 }
 0x821   : > { %5595 = vmatprep.mubr.bf16.mxu0 %v5427_v11 }
 0x822   : > { %5596 = vmatmul.mubr.bf16.vlgmr.msra.gmra.mxu0 %v5426_v7 }
 0x8e2   : > { %v6187_v33 = vpop.f32.mrf.mxu0 }
 0x8e4   : > { %v6188_v35 = vpop.f32.mrf.mxu0 }
 0x8e5   : > { %v6189_v2 = vadd.f32 %v6188_v35, %v6187_v33 }
 0x8e6   : > { %v6190_v10 = vpop.f32.mrf.mxu0 }
 0x8e7   : > { %v5598_v19 = vadd.f32 %v6189_v2, %v6062_v32 }
 0x8e8   : > { %v6191_v59 = vpop.f32.mrf.mxu0 }
 0x8e9   : > { %v6192_v52 = vadd.f32 %v6191_v59, %v6190_v10  ;;  %v5604_v23 = vadd.f32 %v5598_v19, %v5268_v48 }
 0x8eb   : > { %v5601_v3 = vadd.f32 %v6192_v52, %v6062_v32  ;;  %5606 = vadd.xlane.f32.xlu0 %v5604_v23 }
 0x8ed   : > { %v5605_v55 = vadd.f32 %v5601_v3, %v5269_v20 }
 0x8ef   : > { %5608 = vadd.xlane.f32.xlu1 %v5605_v55 }
 0x974   : > { %v5607_v26 = vpop.xlane.xlu0 %5606 }
 0x975   : > { %v5610_v34 = vmul.f32 0.0078125, %v5607_v26 }
 0x977   : > { %v5612_v50 = vsub.f32 %v5604_v23, %v5610_v34 }
 0x978   : > { %v5609_v36 = vpop.xlane.xlu1 %5608 }
 0x979   : > { %v5611_v54 = vmul.f32 0.0078125, %v5609_v36  ;;  %v5614_v49 = vmul.f32 %v5612_v50, %v5612_v50 }
 0x97b   : > { %v5613_v43 = vsub.f32 %v5605_v55, %v5611_v54  ;;  %5616 = vadd.xlane.f32.xlu0 %v5614_v49 }
 0x97d   : > { %v5615_v29 = vmul.f32 %v5613_v43, %v5613_v43 }
 0x97f   : > { %5618 = vadd.xlane.f32.xlu1 %v5615_v29 }
 0xa04   : > { %v5617_v14 = vpop.xlane.xlu0 %5616 }
 0xa05   : > { %v5620_v39 = vmul.f32 0.0078125, %v5617_v14 }
 0xa07   : > { %v5622_v53 = vadd.f32 1e-05, %v5620_v39 }
 0xa08   : > { %v5619_v9 = vpop.xlane.xlu1 %5618 }
 0xa09   : > { %6727 = vrsqrt.f32 %v5622_v53  ;;  %v5621_v8 = vmul.f32 0.0078125, %v5619_v9 }
 0xa0b   : > { %v5623_v30 = vadd.f32 1e-05, %v5621_v8 }
 0xa0d   : > { %6729 = vrsqrt.f32 %v5623_v30 }
 0xa16   : > { %v6728_v0 = vpop.eup %6727 }
 0xa17   : > { %v5626_v21 = vmul.f32 %v6728_v0, %v5612_v50 }
 0xa19   : > { %v5635_v13 = vmul.f32 %v6079_v57, %v5626_v21 }
 0xa1a   : > { %v6730_v40 = vpop.eup %6729 }
 0xa1b   : > { %v5644_v1 = vadd.f32 %v6080_v17, %v5635_v13  ;;  %v5627_v6 = vmul.f32 %v6730_v40, %v5613_v43 }
 0xa1d   : > { %5646 = vst [vmem:[#allocation2] sm:$0xff] %v5644_v1  ;;  %v5636_v46 = vmul.f32 %v6079_v57, %v5627_v6  ;;  %5651 = sbr.rel (%p6081_p11) target bundleno = 2595 (0xa23), region = 104 }
 0xa1f   : > { %v5645_v41 = vadd.f32 %v6080_v17, %v5636_v46 }
 0xa21   : > { %5647 = vst [vmem:[#allocation2 + $0x8] sm:$0xff] %v5645_v41 }
 0xa22   : > { %5652 = vst [vmem:[#allocation14] sm:$0xff] %v5644_v1  ;;  %5653 = vst [vmem:[#allocation14 + $0x8] sm:$0xff] %v5645_v41 }
 0xa23 PF: > { %p6472_p0 = scmp.eq.s32.totalorder %s7177_s5, 1  ;;  %s7015_s29 = smov [#allocation14]  }
 0xa24   : > { %s5663_s23 = sshll.u32 %s7015_s29, 4  ;;  %s5664_s23 = int_to_ptr.vmem [resolvable:$true] %s5663_s23 }
 0xa25   : > { %s6899_s2 = scalar_lea.vmem %s5664_s23, 256  ;;  %p6906_p10 = scmp.lt.s32.totalorder %s5664_s23, %s5664_s23 }
 0xa26   : > { %p6900_p1 = scmp.ne.s32.totalorder %s5664_s23, %s6899_s2  ;;  %p6907_p12 = scmp.lt.s32.totalorder %s6899_s2, %s6899_s2 }
 0xa28   : > { %p6901_p3 = pnand %p6900_p1, %p6472_p0  ;;  %p6908_p13 = por %p6907_p12, %p6906_p10 }
 0xa2a   : > { %p6902_p9 = pneg %p6901_p3 }
 0xa2c   : > { %p6909_p2 = pnand %p6908_p13, %p6902_p9 }
 0xa2e   : > { %6912 = shalt.err (!%p6909_p2)
}
 0xa2f   : > { %s7016_s28 = smov 128   ;;  %s7017_s27 = smov 8  }
 0xa30   : > { %s8603_s10 = sld [smem:[#allocation37_spill]] }
 0xa36   : > { %6446 = dma.vmem_to_hbm [thread:$0]  (%p6472_p0), %s5664_s23, 256, %s8603_s10, [#allocation5], %s7016_s28, %s7016_s28, %s7017_s27  }
 0xa37   : > { %6964 = dma.done.wait (%p6472_p0), [#allocation5], 256  }
 0xa38   : > { %6966 = vsyncadd (%p6472_p0), [#allocation5], 4294967040 }
 0xa39 PF: > { %s8604_s18 = sld [smem:[#allocation22_spill]]  ;;  %s8609_s25 = smov %s6973_s26 }
 0xa3a   : > { %s8605_s16 = sld [smem:[#allocation20_spill]] }
 0xa3b   : > { %s8606_s27 = sld [smem:[#allocation24_spill]] }
 0xa3c   : > { %s8607_s28 = sld [smem:[#allocation21_spill]] }
 0xa3d   : > { %s8608_s29 = sld [smem:[#allocation23_spill]] }
 0xa3f   : > { %s34_s30 = sadd.s32 1, %s8604_s18  }
 0xa40   : > { %p31_p4 = scmp.ge.s32.totalorder %s34_s30, 4   ;;  %s8610_s26 = smov %s8605_s16 }
 0xa42   :  { %33 = sbr.rel (!%p31_p4) target bundleno = 24 (0x18), region = 193 }
 0xa47   :  { %5679 = vsyncpa [#allocation4], 1 }
 0xa48   :  { %5681 = vsyncpa [#allocation4 + $0x1], 1 }
 0xa49   :  { %5682 = vsyncpa [#allocation7], 1 }
 0xa4a   :  { %5684 = vsyncpa [#allocation7 + $0x1], 1 }
 0xa4b   :  { %5685 = vsyncpa [#allocation10], 1 }
 0xa4c   :  { %5687 = vsyncpa [#allocation10 + $0x1], 1 }
 0xa4d   :  { %5688 = vsyncpa [#allocation13], 1 }
 0xa4e   :  { %5690 = vsyncpa [#allocation13 + $0x1], 1 }
 0xa4f   :  { %5691 = vsyncpa [#allocation5], 1 }
 0xa50   :  { %5693 = vsyncpa [#allocation5 + $0x1], 1 }

</bundles_post_ra>
